<compile_context>
chip_gen: v6e
topology: v6e:2x2x1
jax: 0.10.0
libtpu: 0.0.40
codegen_flags: <defaults>
</compile_context>

<pallas_src>
import functools

import jax
import jax.numpy as jnp
from jax.experimental import pallas as pl
from jax.experimental.pallas import tpu as pltpu


def _dot(a, b):
    return jnp.dot(a, b, preferred_element_type=jnp.float32,
                   precision=jax.lax.Precision.HIGHEST)


# ----------------------------------------------------------------------------
# Fully fused DRQN forward kernel (single program, no grid)
# ----------------------------------------------------------------------------
def fused_drqn_kernel(*refs, num_layers, seq_len, bp, hidden_dim):
    # ---- parse refs: inputs, outputs, scratch ----
    x_ref, h0_ref, c0_ref = refs[0], refs[1], refs[2]
    idx = 3
    lstm_refs = []
    for _ in range(num_layers):
        lstm_refs.append((refs[idx], refs[idx + 1], refs[idx + 2]))  # wih, whh, b
        idx += 3
    w1_ref, b1_ref, w2_ref, b2_ref, w3_ref, b3_ref = refs[idx:idx + 6]
    idx += 6
    q_ref, hT_ref, cT_ref = refs[idx], refs[idx + 1], refs[idx + 2]
    seq_buf = refs[idx + 3]          # VMEM scratch (T*Bp, H): stacked h_t per layer

    H = hidden_dim

    # Layer-by-layer LSTM. `seq` holds the full time-major sequence feeding the
    # current layer: (T*Bp, in_dim) for layer 0, (T*Bp, H) afterwards.
    seq = x_ref[...]
    for l in range(num_layers):
        wih_ref, whh_ref, b_ref = lstm_refs[l]
        whh = whh_ref[...]                                       # (H, 4H)

        # Input projection for ALL timesteps at once, combined bias folded in.
        proj = _dot(seq, wih_ref[...]) + b_ref[...]              # (T*Bp, 4H)

        h = h0_ref[l]                                            # (Bp, H)
        c = c0_ref[l]
        # Static (fully unrolled) time loop; only the hh matmul is on the
        # serial critical path. Gate order i, f, g, o (PyTorch).
        for t in range(seq_len):
            gates = proj[t * bp:(t + 1) * bp, :] + _dot(h, whh)  # (Bp, 4H)
            i_g = jax.nn.sigmoid(gates[:, 0 * H:1 * H])
            f_g = jax.nn.sigmoid(gates[:, 1 * H:2 * H])
            g_g = jnp.tanh(gates[:, 2 * H:3 * H])
            o_g = jax.nn.sigmoid(gates[:, 3 * H:4 * H])
            c = f_g * c + i_g * g_g
            h = o_g * jnp.tanh(c)
            seq_buf[t * bp:(t + 1) * bp, :] = h
        hT_ref[l] = h
        cT_ref[l] = c
        seq = seq_buf[...]                                       # (T*Bp, H)

    # Hoisted MLP head (fc1 -> ReLU -> fc2 -> ReLU -> fc3) on all T*Bp rows.
    z1 = jnp.maximum(_dot(seq, w1_ref[...]) + b1_ref[...], 0.0)
    z2 = jnp.maximum(_dot(z1, w2_ref[...]) + b2_ref[...], 0.0)
    q_ref[...] = _dot(z2, w3_ref[...]) + b3_ref[...]             # dense (T*Bp, Ap) store


# ----------------------------------------------------------------------------
# One-time parameter preparation (keep OFF the per-call path)
# ----------------------------------------------------------------------------
def prepare_params(params):
    """Pre-transpose weights, fold LSTM biases, pad fc3 to a full 128 lane."""
    H = params["lstm"][0]["w_hh"].shape[-1]
    A = params["fc3_w"].shape[0]
    Ap = max(128, -(-A // 128) * 128)

    lstm = []
    for lp in params["lstm"]:
        lstm.append((
            jnp.asarray(lp["w_ih"].T, jnp.float32),                      # (in_dim, 4H)
            jnp.asarray(lp["w_hh"].T, jnp.float32),                      # (H, 4H)
            jnp.asarray((lp["b_ih"] + lp["b_hh"])[None, :], jnp.float32),  # (1, 4H)
        ))

    w3_p = jnp.pad(params["fc3_w"], ((0, Ap - A), (0, 0)))
    b3_p = jnp.pad(params["fc3_b"], (0, Ap - A))
    fc = (jnp.asarray(params["fc1_w"].T, jnp.float32),
          jnp.asarray(params["fc1_b"][None, :], jnp.float32),
          jnp.asarray(params["fc2_w"].T, jnp.float32),
          jnp.asarray(params["fc2_b"][None, :], jnp.float32),
          jnp.asarray(w3_p.T, jnp.float32),
          jnp.asarray(b3_p[None, :], jnp.float32))

    return {"lstm": lstm, "fc": fc, "H": H, "A": A, "Ap": Ap}


# ----------------------------------------------------------------------------
# DRQNNetwork forward (per-call wrapper: only x/h0/c0 padding + reorder)
# ----------------------------------------------------------------------------
def drqn_forward(prepared, state, hidden):
    """state: (B, T, state_size) batch_first (like PyTorch).
    hidden: (h0, c0), each (no_layers, B, hidden_dim).
    Returns (q: (B*T, action_size), (hT, cT))."""
    h0_all, c0_all = hidden
    B, T, D = state.shape
    L = len(prepared["lstm"])
    H, A, Ap = prepared["H"], prepared["A"], prepared["Ap"]

    Bp = max(8, -(-B // 8) * 8)   # pad batch to a full sublane group

    # Time-major, batch-padded, flattened input: row order is (t, b).
    x_p = jnp.pad(state.astype(jnp.float32), ((0, Bp - B), (0, 0), (0, 0)))
    x_p = jnp.transpose(x_p, (1, 0, 2)).reshape(T * Bp, D)
    h0_p = jnp.pad(h0_all.astype(jnp.float32), ((0, 0), (0, Bp - B), (0, 0)))
    c0_p = jnp.pad(c0_all.astype(jnp.float32), ((0, 0), (0, Bp - B), (0, 0)))

    args = [x_p, h0_p, c0_p]
    for wih, whh, b in prepared["lstm"]:
        args += [wih, whh, b]
    args += list(prepared["fc"])

    kernel = functools.partial(fused_drqn_kernel, num_layers=L, seq_len=T,
                               bp=Bp, hidden_dim=H)
    q_p, hT_p, cT_p = pl.pallas_call(
        kernel,
        out_shape=(jax.ShapeDtypeStruct((T * Bp, Ap), jnp.float32),
                   jax.ShapeDtypeStruct((L, Bp, H), jnp.float32),
                   jax.ShapeDtypeStruct((L, Bp, H), jnp.float32)),
        scratch_shapes=[pltpu.VMEM((T * Bp, H), jnp.float32)],
        compiler_params=pltpu.CompilerParams(
            vmem_limit_bytes=16 * 1024 * 1024),
    )(*args)

    # Kernel emits q time-major (t, b); PyTorch's view(-1, H) order is (b, t).
    q = (q_p.reshape(T, Bp, Ap)[:, :B, :A]
             .transpose(1, 0, 2)
             .reshape(B * T, A))
    return q, (hT_p[:, :B, :], cT_p[:, :B, :])


# ----------------------------------------------------------------------------
# Pure-JAX reference (for correctness check)
# ----------------------------------------------------------------------------
def drqn_forward_ref(params, state, hidden):
    hp = jax.lax.Precision.HIGHEST

    def dot(a, b):
        return jnp.dot(a, b, precision=hp)

    h0_all, c0_all = hidden
    B, T, _ = state.shape
    x = state  # (B, T, D)
    h_final, c_final = [], []
    for l, lp in enumerate(params["lstm"]):
        h = h0_all[l]
        c = c0_all[l]
        outs = []
        H = h.shape[-1]
        for t in range(T):
            gates = (dot(x[:, t], lp["w_ih"].T) + lp["b_ih"]
                     + dot(h, lp["w_hh"].T) + lp["b_hh"])
            i_g = jax.nn.sigmoid(gates[:, 0 * H:1 * H])
            f_g = jax.nn.sigmoid(gates[:, 1 * H:2 * H])
            g_g = jnp.tanh(gates[:, 2 * H:3 * H])
            o_g = jax.nn.sigmoid(gates[:, 3 * H:4 * H])
            c = f_g * c + i_g * g_g
            h = o_g * jnp.tanh(c)
            outs.append(h)
        x = jnp.stack(outs, axis=1)  # (B, T, H)
        h_final.append(h)
        c_final.append(c)
    lstm_out = x.reshape(B * T, -1)
    z = jnp.maximum(dot(lstm_out, params["fc1_w"].T) + params["fc1_b"], 0.0)
    z = jnp.maximum(dot(z, params["fc2_w"].T) + params["fc2_b"], 0.0)
    q = dot(z, params["fc3_w"].T) + params["fc3_b"]
    return q, (jnp.stack(h_final), jnp.stack(c_final))


# ----------------------------------------------------------------------------
# Deterministic parameter init (PyTorch-style uniform ranges)
# ----------------------------------------------------------------------------
def init_params(key, state_size, action_size, hidden_dim, no_layers,
                fc1_units=32, fc2_units=16):
    params = {"lstm": []}
    k_lstm = 1.0 / jnp.sqrt(hidden_dim)
    for l in range(no_layers):
        in_dim = state_size if l == 0 else hidden_dim
        key, k1, k2, k3, k4 = jax.random.split(key, 5)
        params["lstm"].append({
            "w_ih": jax.random.uniform(k1, (4 * hidden_dim, in_dim), jnp.float32,
                                       -k_lstm, k_lstm),
            "w_hh": jax.random.uniform(k2, (4 * hidden_dim, hidden_dim), jnp.float32,
                                       -k_lstm, k_lstm),
            "b_ih": jax.random.uniform(k3, (4 * hidden_dim,), jnp.float32,
                                       -k_lstm, k_lstm),
            "b_hh": jax.random.uniform(k4, (4 * hidden_dim,), jnp.float32,
                                       -k_lstm, k_lstm),
        })

    def linear(key, out_f, in_f):
        k = 1.0 / jnp.sqrt(in_f)
        kw, kb = jax.random.split(key)
        return (jax.random.uniform(kw, (out_f, in_f), jnp.float32, -k, k),
                jax.random.uniform(kb, (out_f,), jnp.float32, -k, k))

    key, k1, k2, k3 = jax.random.split(key, 4)
    params["fc1_w"], params["fc1_b"] = linear(k1, fc1_units, hidden_dim)
    params["fc2_w"], params["fc2_b"] = linear(k2, fc2_units, fc1_units)
    params["fc3_w"], params["fc3_b"] = linear(k3, action_size, fc2_units)
    return params


if __name__ == "__main__":
    # small shapes consistent with the module's forward
    B, T = 2, 8
    state_size, action_size = 16, 4
    hidden_dim, no_layers = 32, 2

    key = jax.random.PRNGKey(0)
    key, kp, ks, kh, kc = jax.random.split(key, 5)

    params = init_params(kp, state_size, action_size, hidden_dim, no_layers)
    state = jax.random.normal(ks, (B, T, state_size), jnp.float32)
    h0 = jax.random.normal(kh, (no_layers, B, hidden_dim), jnp.float32)
    c0 = jax.random.normal(kc, (no_layers, B, hidden_dim), jnp.float32)

    prepared = prepare_params(params)   # one-time weight prep (off hot path)

    q, (hT, cT) = drqn_forward(prepared, state, (h0, c0))
    jax.block_until_ready((q, hT, cT))

    q_ref, (hT_ref, cT_ref) = drqn_forward_ref(params, state, (h0, c0))
    assert q.shape == (B * T, action_size)
    assert hT.shape == (no_layers, B, hidden_dim)
    assert cT.shape == (no_layers, B, hidden_dim)
    assert jnp.allclose(q, q_ref, atol=1e-4), "q mismatch vs reference"
    assert jnp.allclose(hT, hT_ref, atol=1e-4), "h mismatch vs reference"
    assert jnp.allclose(cT, cT_ref, atol=1e-4), "c mismatch vs reference"

    print("KERNEL_OK")
</pallas_src>

<mosaic_0001>
module attributes {stable_mosaic.version = 11 : i64} {
  func.func @fused_drqn_kernel(%arg0: memref<64x16xf32, #tpu.memory_space<vmem>>, %arg1: memref<2x8x32xf32, #tpu.memory_space<vmem>>, %arg2: memref<2x8x32xf32, #tpu.memory_space<vmem>>, %arg3: memref<16x128xf32, #tpu.memory_space<vmem>>, %arg4: memref<32x128xf32, #tpu.memory_space<vmem>>, %arg5: memref<1x128xf32, #tpu.memory_space<vmem>>, %arg6: memref<32x128xf32, #tpu.memory_space<vmem>>, %arg7: memref<32x128xf32, #tpu.memory_space<vmem>>, %arg8: memref<1x128xf32, #tpu.memory_space<vmem>>, %arg9: memref<32x32xf32, #tpu.memory_space<vmem>>, %arg10: memref<1x32xf32, #tpu.memory_space<vmem>>, %arg11: memref<32x16xf32, #tpu.memory_space<vmem>>, %arg12: memref<1x16xf32, #tpu.memory_space<vmem>>, %arg13: memref<16x128xf32, #tpu.memory_space<vmem>>, %arg14: memref<1x128xf32, #tpu.memory_space<vmem>>, %arg15: memref<64x128xf32, #tpu.memory_space<vmem>>, %arg16: memref<2x8x32xf32, #tpu.memory_space<vmem>>, %arg17: memref<2x8x32xf32, #tpu.memory_space<vmem>>, %arg18: memref<64x32xf32, #tpu.memory_space<vmem>>) attributes {dimension_semantics = [], scalar_prefetch = 0 : i64, scratch_operands = 1 : i64, tpu.core_type = #tpu.core_type<tc>} {
    %c0 = arith.constant 0 : index
    %c0_0 = arith.constant 0 : index
    %0 = vector.load %arg0[%c0, %c0_0] : memref<64x16xf32, #tpu.memory_space<vmem>>, vector<64x16xf32>
    %c0_1 = arith.constant 0 : index
    %c0_2 = arith.constant 0 : index
    %1 = vector.load %arg4[%c0_1, %c0_2] : memref<32x128xf32, #tpu.memory_space<vmem>>, vector<32x128xf32>
    %c0_3 = arith.constant 0 : index
    %c0_4 = arith.constant 0 : index
    %2 = vector.load %arg3[%c0_3, %c0_4] : memref<16x128xf32, #tpu.memory_space<vmem>>, vector<16x128xf32>
    %cst = arith.constant dense<0.000000e+00> : vector<64x128xf32>
    %3 = tpu.matmul %0, %2, %cst {dimension_numbers = #tpu.dot_dimension_numbers<[1], [0], [0], [1], [0, 0, 1, 1], [], []>, precision = #tpu.contract_precision<fp32>} : vector<64x16xf32>, vector<16x128xf32>, vector<64x128xf32> -> vector<64x128xf32>
    %c0_5 = arith.constant 0 : index
    %c0_6 = arith.constant 0 : index
    %4 = vector.load %arg5[%c0_5, %c0_6] : memref<1x128xf32, #tpu.memory_space<vmem>>, vector<1x128xf32>
    %5 = vector.broadcast %4 : vector<1x128xf32> to vector<64x128xf32>
    %6 = arith.addf %3, %5 : vector<64x128xf32>
    %c0_7 = arith.constant 0 : index
    %c0_8 = arith.constant 0 : index
    %c0_9 = arith.constant 0 : index
    %7 = vector.load %arg1[%c0_7, %c0_8, %c0_9] : memref<2x8x32xf32, #tpu.memory_space<vmem>>, vector<1x8x32xf32>
    %8 = vector.shape_cast %7 : vector<1x8x32xf32> to vector<8x32xf32>
    %c0_10 = arith.constant 0 : index
    %c0_11 = arith.constant 0 : index
    %c0_12 = arith.constant 0 : index
    %9 = vector.load %arg2[%c0_10, %c0_11, %c0_12] : memref<2x8x32xf32, #tpu.memory_space<vmem>>, vector<1x8x32xf32>
    %10 = vector.shape_cast %9 : vector<1x8x32xf32> to vector<8x32xf32>
    %11 = vector.extract_strided_slice %6 {offsets = [0, 0], sizes = [8, 128], strides = [1, 1]} : vector<64x128xf32> to vector<8x128xf32>
    %cst_13 = arith.constant dense<0.000000e+00> : vector<8x128xf32>
    %12 = tpu.matmul %8, %1, %cst_13 {dimension_numbers = #tpu.dot_dimension_numbers<[1], [0], [0], [1], [0, 0, 1, 1], [], []>, precision = #tpu.contract_precision<fp32>} : vector<8x32xf32>, vector<32x128xf32>, vector<8x128xf32> -> vector<8x128xf32>
    %13 = arith.addf %11, %12 : vector<8x128xf32>
    %14 = vector.extract_strided_slice %13 {offsets = [0, 0], sizes = [8, 32], strides = [1, 1]} : vector<8x128xf32> to vector<8x32xf32>
    %15 = arith.negf %14 : vector<8x32xf32>
    %16 = math.exp %15 : vector<8x32xf32>
    %cst_14 = arith.constant 1.000000e+00 : f32
    %17 = vector.broadcast %cst_14 : f32 to vector<8x32xf32>
    %18 = arith.addf %17, %16 : vector<8x32xf32>
    %19 = arith.divf %17, %18 : vector<8x32xf32>
    %20 = vector.extract_strided_slice %13 {offsets = [0, 32], sizes = [8, 32], strides = [1, 1]} : vector<8x128xf32> to vector<8x32xf32>
    %21 = arith.negf %20 : vector<8x32xf32>
    %22 = math.exp %21 : vector<8x32xf32>
    %cst_15 = arith.constant 1.000000e+00 : f32
    %23 = vector.broadcast %cst_15 : f32 to vector<8x32xf32>
    %24 = arith.addf %23, %22 : vector<8x32xf32>
    %25 = arith.divf %23, %24 : vector<8x32xf32>
    %26 = vector.extract_strided_slice %13 {offsets = [0, 64], sizes = [8, 32], strides = [1, 1]} : vector<8x128xf32> to vector<8x32xf32>
    %27 = math.tanh %26 : vector<8x32xf32>
    %28 = vector.extract_strided_slice %13 {offsets = [0, 96], sizes = [8, 32], strides = [1, 1]} : vector<8x128xf32> to vector<8x32xf32>
    %29 = arith.negf %28 : vector<8x32xf32>
    %30 = math.exp %29 : vector<8x32xf32>
    %cst_16 = arith.constant 1.000000e+00 : f32
    %31 = vector.broadcast %cst_16 : f32 to vector<8x32xf32>
    %32 = arith.addf %31, %30 : vector<8x32xf32>
    %33 = arith.divf %31, %32 : vector<8x32xf32>
    %34 = arith.mulf %25, %10 : vector<8x32xf32>
    %35 = arith.mulf %19, %27 : vector<8x32xf32>
    %36 = arith.addf %34, %35 : vector<8x32xf32>
    %37 = math.tanh %36 : vector<8x32xf32>
    %38 = arith.mulf %33, %37 : vector<8x32xf32>
    %c0_17 = arith.constant 0 : index
    %c0_18 = arith.constant 0 : index
    %39 = vector.load %arg18[%c0_17, %c0_18] : memref<64x32xf32, #tpu.memory_space<vmem>>, vector<8x32xf32>
    tpu.vector_store %arg18[%c0_17, %c0_18], %38 {strides = array<i32>} : memref<64x32xf32, #tpu.memory_space<vmem>>, vector<8x32xf32>,
    %40 = vector.extract_strided_slice %6 {offsets = [8, 0], sizes = [8, 128], strides = [1, 1]} : vector<64x128xf32> to vector<8x128xf32>
    %cst_19 = arith.constant dense<0.000000e+00> : vector<8x128xf32>
    %41 = tpu.matmul %38, %1, %cst_19 {dimension_numbers = #tpu.dot_dimension_numbers<[1], [0], [0], [1], [0, 0, 1, 1], [], []>, precision = #tpu.contract_precision<fp32>} : vector<8x32xf32>, vector<32x128xf32>, vector<8x128xf32> -> vector<8x128xf32>
    %42 = arith.addf %40, %41 : vector<8x128xf32>
    %43 = vector.extract_strided_slice %42 {offsets = [0, 0], sizes = [8, 32], strides = [1, 1]} : vector<8x128xf32> to vector<8x32xf32>
    %44 = arith.negf %43 : vector<8x32xf32>
    %45 = math.exp %44 : vector<8x32xf32>
    %cst_20 = arith.constant 1.000000e+00 : f32
    %46 = vector.broadcast %cst_20 : f32 to vector<8x32xf32>
    %47 = arith.addf %46, %45 : vector<8x32xf32>
    %48 = arith.divf %46, %47 : vector<8x32xf32>
    %49 = vector.extract_strided_slice %42 {offsets = [0, 32], sizes = [8, 32], strides = [1, 1]} : vector<8x128xf32> to vector<8x32xf32>
    %50 = arith.negf %49 : vector<8x32xf32>
    %51 = math.exp %50 : vector<8x32xf32>
    %cst_21 = arith.constant 1.000000e+00 : f32
    %52 = vector.broadcast %cst_21 : f32 to vector<8x32xf32>
    %53 = arith.addf %52, %51 : vector<8x32xf32>
    %54 = arith.divf %52, %53 : vector<8x32xf32>
    %55 = vector.extract_strided_slice %42 {offsets = [0, 64], sizes = [8, 32], strides = [1, 1]} : vector<8x128xf32> to vector<8x32xf32>
    %56 = math.tanh %55 : vector<8x32xf32>
    %57 = vector.extract_strided_slice %42 {offsets = [0, 96], sizes = [8, 32], strides = [1, 1]} : vector<8x128xf32> to vector<8x32xf32>
    %58 = arith.negf %57 : vector<8x32xf32>
    %59 = math.exp %58 : vector<8x32xf32>
    %cst_22 = arith.constant 1.000000e+00 : f32
    %60 = vector.broadcast %cst_22 : f32 to vector<8x32xf32>
    %61 = arith.addf %60, %59 : vector<8x32xf32>
    %62 = arith.divf %60, %61 : vector<8x32xf32>
    %63 = arith.mulf %54, %36 : vector<8x32xf32>
    %64 = arith.mulf %48, %56 : vector<8x32xf32>
    %65 = arith.addf %63, %64 : vector<8x32xf32>
    %66 = math.tanh %65 : vector<8x32xf32>
    %67 = arith.mulf %62, %66 : vector<8x32xf32>
    %c8 = arith.constant 8 : index
    %c0_23 = arith.constant 0 : index
    %68 = vector.load %arg18[%c8, %c0_23] : memref<64x32xf32, #tpu.memory_space<vmem>>, vector<8x32xf32>
    tpu.vector_store %arg18[%c8, %c0_23], %67 {strides = array<i32>} : memref<64x32xf32, #tpu.memory_space<vmem>>, vector<8x32xf32>,
    %69 = vector.extract_strided_slice %6 {offsets = [16, 0], sizes = [8, 128], strides = [1, 1]} : vector<64x128xf32> to vector<8x128xf32>
    %cst_24 = arith.constant dense<0.000000e+00> : vector<8x128xf32>
    %70 = tpu.matmul %67, %1, %cst_24 {dimension_numbers = #tpu.dot_dimension_numbers<[1], [0], [0], [1], [0, 0, 1, 1], [], []>, precision = #tpu.contract_precision<fp32>} : vector<8x32xf32>, vector<32x128xf32>, vector<8x128xf32> -> vector<8x128xf32>
    %71 = arith.addf %69, %70 : vector<8x128xf32>
    %72 = vector.extract_strided_slice %71 {offsets = [0, 0], sizes = [8, 32], strides = [1, 1]} : vector<8x128xf32> to vector<8x32xf32>
    %73 = arith.negf %72 : vector<8x32xf32>
    %74 = math.exp %73 : vector<8x32xf32>
    %cst_25 = arith.constant 1.000000e+00 : f32
    %75 = vector.broadcast %cst_25 : f32 to vector<8x32xf32>
    %76 = arith.addf %75, %74 : vector<8x32xf32>
    %77 = arith.divf %75, %76 : vector<8x32xf32>
    %78 = vector.extract_strided_slice %71 {offsets = [0, 32], sizes = [8, 32], strides = [1, 1]} : vector<8x128xf32> to vector<8x32xf32>
    %79 = arith.negf %78 : vector<8x32xf32>
    %80 = math.exp %79 : vector<8x32xf32>
    %cst_26 = arith.constant 1.000000e+00 : f32
    %81 = vector.broadcast %cst_26 : f32 to vector<8x32xf32>
    %82 = arith.addf %81, %80 : vector<8x32xf32>
    %83 = arith.divf %81, %82 : vector<8x32xf32>
    %84 = vector.extract_strided_slice %71 {offsets = [0, 64], sizes = [8, 32], strides = [1, 1]} : vector<8x128xf32> to vector<8x32xf32>
    %85 = math.tanh %84 : vector<8x32xf32>
    %86 = vector.extract_strided_slice %71 {offsets = [0, 96], sizes = [8, 32], strides = [1, 1]} : vector<8x128xf32> to vector<8x32xf32>
    %87 = arith.negf %86 : vector<8x32xf32>
    %88 = math.exp %87 : vector<8x32xf32>
    %cst_27 = arith.constant 1.000000e+00 : f32
    %89 = vector.broadcast %cst_27 : f32 to vector<8x32xf32>
    %90 = arith.addf %89, %88 : vector<8x32xf32>
    %91 = arith.divf %89, %90 : vector<8x32xf32>
    %92 = arith.mulf %83, %65 : vector<8x32xf32>
    %93 = arith.mulf %77, %85 : vector<8x32xf32>
    %94 = arith.addf %92, %93 : vector<8x32xf32>
    %95 = math.tanh %94 : vector<8x32xf32>
    %96 = arith.mulf %91, %95 : vector<8x32xf32>
    %c16 = arith.constant 16 : index
    %c0_28 = arith.constant 0 : index
    %97 = vector.load %arg18[%c16, %c0_28] : memref<64x32xf32, #tpu.memory_space<vmem>>, vector<8x32xf32>
    tpu.vector_store %arg18[%c16, %c0_28], %96 {strides = array<i32>} : memref<64x32xf32, #tpu.memory_space<vmem>>, vector<8x32xf32>,
    %98 = vector.extract_strided_slice %6 {offsets = [24, 0], sizes = [8, 128], strides = [1, 1]} : vector<64x128xf32> to vector<8x128xf32>
    %cst_29 = arith.constant dense<0.000000e+00> : vector<8x128xf32>
    %99 = tpu.matmul %96, %1, %cst_29 {dimension_numbers = #tpu.dot_dimension_numbers<[1], [0], [0], [1], [0, 0, 1, 1], [], []>, precision = #tpu.contract_precision<fp32>} : vector<8x32xf32>, vector<32x128xf32>, vector<8x128xf32> -> vector<8x128xf32>
    %100 = arith.addf %98, %99 : vector<8x128xf32>
    %101 = vector.extract_strided_slice %100 {offsets = [0, 0], sizes = [8, 32], strides = [1, 1]} : vector<8x128xf32> to vector<8x32xf32>
    %102 = arith.negf %101 : vector<8x32xf32>
    %103 = math.exp %102 : vector<8x32xf32>
    %cst_30 = arith.constant 1.000000e+00 : f32
    %104 = vector.broadcast %cst_30 : f32 to vector<8x32xf32>
    %105 = arith.addf %104, %103 : vector<8x32xf32>
    %106 = arith.divf %104, %105 : vector<8x32xf32>
    %107 = vector.extract_strided_slice %100 {offsets = [0, 32], sizes = [8, 32], strides = [1, 1]} : vector<8x128xf32> to vector<8x32xf32>
    %108 = arith.negf %107 : vector<8x32xf32>
    %109 = math.exp %108 : vector<8x32xf32>
    %cst_31 = arith.constant 1.000000e+00 : f32
    %110 = vector.broadcast %cst_31 : f32 to vector<8x32xf32>
    %111 = arith.addf %110, %109 : vector<8x32xf32>
    %112 = arith.divf %110, %111 : vector<8x32xf32>
    %113 = vector.extract_strided_slice %100 {offsets = [0, 64], sizes = [8, 32], strides = [1, 1]} : vector<8x128xf32> to vector<8x32xf32>
    %114 = math.tanh %113 : vector<8x32xf32>
    %115 = vector.extract_strided_slice %100 {offsets = [0, 96], sizes = [8, 32], strides = [1, 1]} : vector<8x128xf32> to vector<8x32xf32>
    %116 = arith.negf %115 : vector<8x32xf32>
    %117 = math.exp %116 : vector<8x32xf32>
    %cst_32 = arith.constant 1.000000e+00 : f32
    %118 = vector.broadcast %cst_32 : f32 to vector<8x32xf32>
    %119 = arith.addf %118, %117 : vector<8x32xf32>
    %120 = arith.divf %118, %119 : vector<8x32xf32>
    %121 = arith.mulf %112, %94 : vector<8x32xf32>
    %122 = arith.mulf %106, %114 : vector<8x32xf32>
    %123 = arith.addf %121, %122 : vector<8x32xf32>
    %124 = math.tanh %123 : vector<8x32xf32>
    %125 = arith.mulf %120, %124 : vector<8x32xf32>
    %c24 = arith.constant 24 : index
    %c0_33 = arith.constant 0 : index
    %126 = vector.load %arg18[%c24, %c0_33] : memref<64x32xf32, #tpu.memory_space<vmem>>, vector<8x32xf32>
    tpu.vector_store %arg18[%c24, %c0_33], %125 {strides = array<i32>} : memref<64x32xf32, #tpu.memory_space<vmem>>, vector<8x32xf32>,
    %127 = vector.extract_strided_slice %6 {offsets = [32, 0], sizes = [8, 128], strides = [1, 1]} : vector<64x128xf32> to vector<8x128xf32>
    %cst_34 = arith.constant dense<0.000000e+00> : vector<8x128xf32>
    %128 = tpu.matmul %125, %1, %cst_34 {dimension_numbers = #tpu.dot_dimension_numbers<[1], [0], [0], [1], [0, 0, 1, 1], [], []>, precision = #tpu.contract_precision<fp32>} : vector<8x32xf32>, vector<32x128xf32>, vector<8x128xf32> -> vector<8x128xf32>
    %129 = arith.addf %127, %128 : vector<8x128xf32>
    %130 = vector.extract_strided_slice %129 {offsets = [0, 0], sizes = [8, 32], strides = [1, 1]} : vector<8x128xf32> to vector<8x32xf32>
    %131 = arith.negf %130 : vector<8x32xf32>
    %132 = math.exp %131 : vector<8x32xf32>
    %cst_35 = arith.constant 1.000000e+00 : f32
    %133 = vector.broadcast %cst_35 : f32 to vector<8x32xf32>
    %134 = arith.addf %133, %132 : vector<8x32xf32>
    %135 = arith.divf %133, %134 : vector<8x32xf32>
    %136 = vector.extract_strided_slice %129 {offsets = [0, 32], sizes = [8, 32], strides = [1, 1]} : vector<8x128xf32> to vector<8x32xf32>
    %137 = arith.negf %136 : vector<8x32xf32>
    %138 = math.exp %137 : vector<8x32xf32>
    %cst_36 = arith.constant 1.000000e+00 : f32
    %139 = vector.broadcast %cst_36 : f32 to vector<8x32xf32>
    %140 = arith.addf %139, %138 : vector<8x32xf32>
    %141 = arith.divf %139, %140 : vector<8x32xf32>
    %142 = vector.extract_strided_slice %129 {offsets = [0, 64], sizes = [8, 32], strides = [1, 1]} : vector<8x128xf32> to vector<8x32xf32>
    %143 = math.tanh %142 : vector<8x32xf32>
    %144 = vector.extract_strided_slice %129 {offsets = [0, 96], sizes = [8, 32], strides = [1, 1]} : vector<8x128xf32> to vector<8x32xf32>
    %145 = arith.negf %144 : vector<8x32xf32>
    %146 = math.exp %145 : vector<8x32xf32>
    %cst_37 = arith.constant 1.000000e+00 : f32
    %147 = vector.broadcast %cst_37 : f32 to vector<8x32xf32>
    %148 = arith.addf %147, %146 : vector<8x32xf32>
    %149 = arith.divf %147, %148 : vector<8x32xf32>
    %150 = arith.mulf %141, %123 : vector<8x32xf32>
    %151 = arith.mulf %135, %143 : vector<8x32xf32>
    %152 = arith.addf %150, %151 : vector<8x32xf32>
    %153 = math.tanh %152 : vector<8x32xf32>
    %154 = arith.mulf %149, %153 : vector<8x32xf32>
    %c32 = arith.constant 32 : index
    %c0_38 = arith.constant 0 : index
    %155 = vector.load %arg18[%c32, %c0_38] : memref<64x32xf32, #tpu.memory_space<vmem>>, vector<8x32xf32>
    tpu.vector_store %arg18[%c32, %c0_38], %154 {strides = array<i32>} : memref<64x32xf32, #tpu.memory_space<vmem>>, vector<8x32xf32>,
    %156 = vector.extract_strided_slice %6 {offsets = [40, 0], sizes = [8, 128], strides = [1, 1]} : vector<64x128xf32> to vector<8x128xf32>
    %cst_39 = arith.constant dense<0.000000e+00> : vector<8x128xf32>
    %157 = tpu.matmul %154, %1, %cst_39 {dimension_numbers = #tpu.dot_dimension_numbers<[1], [0], [0], [1], [0, 0, 1, 1], [], []>, precision = #tpu.contract_precision<fp32>} : vector<8x32xf32>, vector<32x128xf32>, vector<8x128xf32> -> vector<8x128xf32>
    %158 = arith.addf %156, %157 : vector<8x128xf32>
    %159 = vector.extract_strided_slice %158 {offsets = [0, 0], sizes = [8, 32], strides = [1, 1]} : vector<8x128xf32> to vector<8x32xf32>
    %160 = arith.negf %159 : vector<8x32xf32>
    %161 = math.exp %160 : vector<8x32xf32>
    %cst_40 = arith.constant 1.000000e+00 : f32
    %162 = vector.broadcast %cst_40 : f32 to vector<8x32xf32>
    %163 = arith.addf %162, %161 : vector<8x32xf32>
    %164 = arith.divf %162, %163 : vector<8x32xf32>
    %165 = vector.extract_strided_slice %158 {offsets = [0, 32], sizes = [8, 32], strides = [1, 1]} : vector<8x128xf32> to vector<8x32xf32>
    %166 = arith.negf %165 : vector<8x32xf32>
    %167 = math.exp %166 : vector<8x32xf32>
    %cst_41 = arith.constant 1.000000e+00 : f32
    %168 = vector.broadcast %cst_41 : f32 to vector<8x32xf32>
    %169 = arith.addf %168, %167 : vector<8x32xf32>
    %170 = arith.divf %168, %169 : vector<8x32xf32>
    %171 = vector.extract_strided_slice %158 {offsets = [0, 64], sizes = [8, 32], strides = [1, 1]} : vector<8x128xf32> to vector<8x32xf32>
    %172 = math.tanh %171 : vector<8x32xf32>
    %173 = vector.extract_strided_slice %158 {offsets = [0, 96], sizes = [8, 32], strides = [1, 1]} : vector<8x128xf32> to vector<8x32xf32>
    %174 = arith.negf %173 : vector<8x32xf32>
    %175 = math.exp %174 : vector<8x32xf32>
    %cst_42 = arith.constant 1.000000e+00 : f32
    %176 = vector.broadcast %cst_42 : f32 to vector<8x32xf32>
    %177 = arith.addf %176, %175 : vector<8x32xf32>
    %178 = arith.divf %176, %177 : vector<8x32xf32>
    %179 = arith.mulf %170, %152 : vector<8x32xf32>
    %180 = arith.mulf %164, %172 : vector<8x32xf32>
    %181 = arith.addf %179, %180 : vector<8x32xf32>
    %182 = math.tanh %181 : vector<8x32xf32>
    %183 = arith.mulf %178, %182 : vector<8x32xf32>
    %c40 = arith.constant 40 : index
    %c0_43 = arith.constant 0 : index
    %184 = vector.load %arg18[%c40, %c0_43] : memref<64x32xf32, #tpu.memory_space<vmem>>, vector<8x32xf32>
    tpu.vector_store %arg18[%c40, %c0_43], %183 {strides = array<i32>} : memref<64x32xf32, #tpu.memory_space<vmem>>, vector<8x32xf32>,
    %185 = vector.extract_strided_slice %6 {offsets = [48, 0], sizes = [8, 128], strides = [1, 1]} : vector<64x128xf32> to vector<8x128xf32>
    %cst_44 = arith.constant dense<0.000000e+00> : vector<8x128xf32>
    %186 = tpu.matmul %183, %1, %cst_44 {dimension_numbers = #tpu.dot_dimension_numbers<[1], [0], [0], [1], [0, 0, 1, 1], [], []>, precision = #tpu.contract_precision<fp32>} : vector<8x32xf32>, vector<32x128xf32>, vector<8x128xf32> -> vector<8x128xf32>
    %187 = arith.addf %185, %186 : vector<8x128xf32>
    %188 = vector.extract_strided_slice %187 {offsets = [0, 0], sizes = [8, 32], strides = [1, 1]} : vector<8x128xf32> to vector<8x32xf32>
    %189 = arith.negf %188 : vector<8x32xf32>
    %190 = math.exp %189 : vector<8x32xf32>
    %cst_45 = arith.constant 1.000000e+00 : f32
    %191 = vector.broadcast %cst_45 : f32 to vector<8x32xf32>
    %192 = arith.addf %191, %190 : vector<8x32xf32>
    %193 = arith.divf %191, %192 : vector<8x32xf32>
    %194 = vector.extract_strided_slice %187 {offsets = [0, 32], sizes = [8, 32], strides = [1, 1]} : vector<8x128xf32> to vector<8x32xf32>
    %195 = arith.negf %194 : vector<8x32xf32>
    %196 = math.exp %195 : vector<8x32xf32>
    %cst_46 = arith.constant 1.000000e+00 : f32
    %197 = vector.broadcast %cst_46 : f32 to vector<8x32xf32>
    %198 = arith.addf %197, %196 : vector<8x32xf32>
    %199 = arith.divf %197, %198 : vector<8x32xf32>
    %200 = vector.extract_strided_slice %187 {offsets = [0, 64], sizes = [8, 32], strides = [1, 1]} : vector<8x128xf32> to vector<8x32xf32>
    %201 = math.tanh %200 : vector<8x32xf32>
    %202 = vector.extract_strided_slice %187 {offsets = [0, 96], sizes = [8, 32], strides = [1, 1]} : vector<8x128xf32> to vector<8x32xf32>
    %203 = arith.negf %202 : vector<8x32xf32>
    %204 = math.exp %203 : vector<8x32xf32>
    %cst_47 = arith.constant 1.000000e+00 : f32
    %205 = vector.broadcast %cst_47 : f32 to vector<8x32xf32>
    %206 = arith.addf %205, %204 : vector<8x32xf32>
    %207 = arith.divf %205, %206 : vector<8x32xf32>
    %208 = arith.mulf %199, %181 : vector<8x32xf32>
    %209 = arith.mulf %193, %201 : vector<8x32xf32>
    %210 = arith.addf %208, %209 : vector<8x32xf32>
    %211 = math.tanh %210 : vector<8x32xf32>
    %212 = arith.mulf %207, %211 : vector<8x32xf32>
    %c48 = arith.constant 48 : index
    %c0_48 = arith.constant 0 : index
    %213 = vector.load %arg18[%c48, %c0_48] : memref<64x32xf32, #tpu.memory_space<vmem>>, vector<8x32xf32>
    tpu.vector_store %arg18[%c48, %c0_48], %212 {strides = array<i32>} : memref<64x32xf32, #tpu.memory_space<vmem>>, vector<8x32xf32>,
    %214 = vector.extract_strided_slice %6 {offsets = [56, 0], sizes = [8, 128], strides = [1, 1]} : vector<64x128xf32> to vector<8x128xf32>
    %cst_49 = arith.constant dense<0.000000e+00> : vector<8x128xf32>
    %215 = tpu.matmul %212, %1, %cst_49 {dimension_numbers = #tpu.dot_dimension_numbers<[1], [0], [0], [1], [0, 0, 1, 1], [], []>, precision = #tpu.contract_precision<fp32>} : vector<8x32xf32>, vector<32x128xf32>, vector<8x128xf32> -> vector<8x128xf32>
    %216 = arith.addf %214, %215 : vector<8x128xf32>
    %217 = vector.extract_strided_slice %216 {offsets = [0, 0], sizes = [8, 32], strides = [1, 1]} : vector<8x128xf32> to vector<8x32xf32>
    %218 = arith.negf %217 : vector<8x32xf32>
    %219 = math.exp %218 : vector<8x32xf32>
    %cst_50 = arith.constant 1.000000e+00 : f32
    %220 = vector.broadcast %cst_50 : f32 to vector<8x32xf32>
    %221 = arith.addf %220, %219 : vector<8x32xf32>
    %222 = arith.divf %220, %221 : vector<8x32xf32>
    %223 = vector.extract_strided_slice %216 {offsets = [0, 32], sizes = [8, 32], strides = [1, 1]} : vector<8x128xf32> to vector<8x32xf32>
    %224 = arith.negf %223 : vector<8x32xf32>
    %225 = math.exp %224 : vector<8x32xf32>
    %cst_51 = arith.constant 1.000000e+00 : f32
    %226 = vector.broadcast %cst_51 : f32 to vector<8x32xf32>
    %227 = arith.addf %226, %225 : vector<8x32xf32>
    %228 = arith.divf %226, %227 : vector<8x32xf32>
    %229 = vector.extract_strided_slice %216 {offsets = [0, 64], sizes = [8, 32], strides = [1, 1]} : vector<8x128xf32> to vector<8x32xf32>
    %230 = math.tanh %229 : vector<8x32xf32>
    %231 = vector.extract_strided_slice %216 {offsets = [0, 96], sizes = [8, 32], strides = [1, 1]} : vector<8x128xf32> to vector<8x32xf32>
    %232 = arith.negf %231 : vector<8x32xf32>
    %233 = math.exp %232 : vector<8x32xf32>
    %cst_52 = arith.constant 1.000000e+00 : f32
    %234 = vector.broadcast %cst_52 : f32 to vector<8x32xf32>
    %235 = arith.addf %234, %233 : vector<8x32xf32>
    %236 = arith.divf %234, %235 : vector<8x32xf32>
    %237 = arith.mulf %228, %210 : vector<8x32xf32>
    %238 = arith.mulf %222, %230 : vector<8x32xf32>
    %239 = arith.addf %237, %238 : vector<8x32xf32>
    %240 = math.tanh %239 : vector<8x32xf32>
    %241 = arith.mulf %236, %240 : vector<8x32xf32>
    %c56 = arith.constant 56 : index
    %c0_53 = arith.constant 0 : index
    %242 = vector.load %arg18[%c56, %c0_53] : memref<64x32xf32, #tpu.memory_space<vmem>>, vector<8x32xf32>
    tpu.vector_store %arg18[%c56, %c0_53], %241 {strides = array<i32>} : memref<64x32xf32, #tpu.memory_space<vmem>>, vector<8x32xf32>,
    %c0_54 = arith.constant 0 : index
    %c0_55 = arith.constant 0 : index
    %c0_56 = arith.constant 0 : index
    %243 = vector.load %arg16[%c0_54, %c0_55, %c0_56] : memref<2x8x32xf32, #tpu.memory_space<vmem>>, vector<1x8x32xf32>
    %244 = vector.shape_cast %243 : vector<1x8x32xf32> to vector<8x32xf32>
    %245 = vector.shape_cast %241 : vector<8x32xf32> to vector<1x8x32xf32>
    tpu.vector_store %arg16[%c0_54, %c0_55, %c0_56], %245 {strides = array<i32>} : memref<2x8x32xf32, #tpu.memory_space<vmem>>, vector<1x8x32xf32>,
    %c0_57 = arith.constant 0 : index
    %c0_58 = arith.constant 0 : index
    %c0_59 = arith.constant 0 : index
    %246 = vector.load %arg17[%c0_57, %c0_58, %c0_59] : memref<2x8x32xf32, #tpu.memory_space<vmem>>, vector<1x8x32xf32>
    %247 = vector.shape_cast %246 : vector<1x8x32xf32> to vector<8x32xf32>
    %248 = vector.shape_cast %239 : vector<8x32xf32> to vector<1x8x32xf32>
    tpu.vector_store %arg17[%c0_57, %c0_58, %c0_59], %248 {strides = array<i32>} : memref<2x8x32xf32, #tpu.memory_space<vmem>>, vector<1x8x32xf32>,
    %c0_60 = arith.constant 0 : index
    %c0_61 = arith.constant 0 : index
    %249 = vector.load %arg18[%c0_60, %c0_61] : memref<64x32xf32, #tpu.memory_space<vmem>>, vector<64x32xf32>
    %c0_62 = arith.constant 0 : index
    %c0_63 = arith.constant 0 : index
    %250 = vector.load %arg7[%c0_62, %c0_63] : memref<32x128xf32, #tpu.memory_space<vmem>>, vector<32x128xf32>
    %c0_64 = arith.constant 0 : index
    %c0_65 = arith.constant 0 : index
    %251 = vector.load %arg6[%c0_64, %c0_65] : memref<32x128xf32, #tpu.memory_space<vmem>>, vector<32x128xf32>
    %cst_66 = arith.constant dense<0.000000e+00> : vector<64x128xf32>
    %252 = tpu.matmul %249, %251, %cst_66 {dimension_numbers = #tpu.dot_dimension_numbers<[1], [0], [0], [1], [0, 0, 1, 1], [], []>, precision = #tpu.contract_precision<fp32>} : vector<64x32xf32>, vector<32x128xf32>, vector<64x128xf32> -> vector<64x128xf32>
    %c0_67 = arith.constant 0 : index
    %c0_68 = arith.constant 0 : index
    %253 = vector.load %arg8[%c0_67, %c0_68] : memref<1x128xf32, #tpu.memory_space<vmem>>, vector<1x128xf32>
    %254 = vector.broadcast %253 : vector<1x128xf32> to vector<64x128xf32>
    %255 = arith.addf %252, %254 : vector<64x128xf32>
    %c1 = arith.constant 1 : index
    %c0_69 = arith.constant 0 : index
    %c0_70 = arith.constant 0 : index
    %256 = vector.load %arg1[%c1, %c0_69, %c0_70] : memref<2x8x32xf32, #tpu.memory_space<vmem>>, vector<1x8x32xf32>
    %257 = vector.shape_cast %256 : vector<1x8x32xf32> to vector<8x32xf32>
    %c1_71 = arith.constant 1 : index
    %c0_72 = arith.constant 0 : index
    %c0_73 = arith.constant 0 : index
    %258 = vector.load %arg2[%c1_71, %c0_72, %c0_73] : memref<2x8x32xf32, #tpu.memory_space<vmem>>, vector<1x8x32xf32>
    %259 = vector.shape_cast %258 : vector<1x8x32xf32> to vector<8x32xf32>
    %260 = vector.extract_strided_slice %255 {offsets = [0, 0], sizes = [8, 128], strides = [1, 1]} : vector<64x128xf32> to vector<8x128xf32>
    %cst_74 = arith.constant dense<0.000000e+00> : vector<8x128xf32>
    %261 = tpu.matmul %257, %250, %cst_74 {dimension_numbers = #tpu.dot_dimension_numbers<[1], [0], [0], [1], [0, 0, 1, 1], [], []>, precision = #tpu.contract_precision<fp32>} : vector<8x32xf32>, vector<32x128xf32>, vector<8x128xf32> -> vector<8x128xf32>
    %262 = arith.addf %260, %261 : vector<8x128xf32>
    %263 = vector.extract_strided_slice %262 {offsets = [0, 0], sizes = [8, 32], strides = [1, 1]} : vector<8x128xf32> to vector<8x32xf32>
    %264 = arith.negf %263 : vector<8x32xf32>
    %265 = math.exp %264 : vector<8x32xf32>
    %cst_75 = arith.constant 1.000000e+00 : f32
    %266 = vector.broadcast %cst_75 : f32 to vector<8x32xf32>
    %267 = arith.addf %266, %265 : vector<8x32xf32>
    %268 = arith.divf %266, %267 : vector<8x32xf32>
    %269 = vector.extract_strided_slice %262 {offsets = [0, 32], sizes = [8, 32], strides = [1, 1]} : vector<8x128xf32> to vector<8x32xf32>
    %270 = arith.negf %269 : vector<8x32xf32>
    %271 = math.exp %270 : vector<8x32xf32>
    %cst_76 = arith.constant 1.000000e+00 : f32
    %272 = vector.broadcast %cst_76 : f32 to vector<8x32xf32>
    %273 = arith.addf %272, %271 : vector<8x32xf32>
    %274 = arith.divf %272, %273 : vector<8x32xf32>
    %275 = vector.extract_strided_slice %262 {offsets = [0, 64], sizes = [8, 32], strides = [1, 1]} : vector<8x128xf32> to vector<8x32xf32>
    %276 = math.tanh %275 : vector<8x32xf32>
    %277 = vector.extract_strided_slice %262 {offsets = [0, 96], sizes = [8, 32], strides = [1, 1]} : vector<8x128xf32> to vector<8x32xf32>
    %278 = arith.negf %277 : vector<8x32xf32>
    %279 = math.exp %278 : vector<8x32xf32>
    %cst_77 = arith.constant 1.000000e+00 : f32
    %280 = vector.broadcast %cst_77 : f32 to vector<8x32xf32>
    %281 = arith.addf %280, %279 : vector<8x32xf32>
    %282 = arith.divf %280, %281 : vector<8x32xf32>
    %283 = arith.mulf %274, %259 : vector<8x32xf32>
    %284 = arith.mulf %268, %276 : vector<8x32xf32>
    %285 = arith.addf %283, %284 : vector<8x32xf32>
    %286 = math.tanh %285 : vector<8x32xf32>
    %287 = arith.mulf %282, %286 : vector<8x32xf32>
    %c0_78 = arith.constant 0 : index
    %c0_79 = arith.constant 0 : index
    %288 = vector.load %arg18[%c0_78, %c0_79] : memref<64x32xf32, #tpu.memory_space<vmem>>, vector<8x32xf32>
    tpu.vector_store %arg18[%c0_78, %c0_79], %287 {strides = array<i32>} : memref<64x32xf32, #tpu.memory_space<vmem>>, vector<8x32xf32>,
    %289 = vector.extract_strided_slice %255 {offsets = [8, 0], sizes = [8, 128], strides = [1, 1]} : vector<64x128xf32> to vector<8x128xf32>
    %cst_80 = arith.constant dense<0.000000e+00> : vector<8x128xf32>
    %290 = tpu.matmul %287, %250, %cst_80 {dimension_numbers = #tpu.dot_dimension_numbers<[1], [0], [0], [1], [0, 0, 1, 1], [], []>, precision = #tpu.contract_precision<fp32>} : vector<8x32xf32>, vector<32x128xf32>, vector<8x128xf32> -> vector<8x128xf32>
    %291 = arith.addf %289, %290 : vector<8x128xf32>
    %292 = vector.extract_strided_slice %291 {offsets = [0, 0], sizes = [8, 32], strides = [1, 1]} : vector<8x128xf32> to vector<8x32xf32>
    %293 = arith.negf %292 : vector<8x32xf32>
    %294 = math.exp %293 : vector<8x32xf32>
    %cst_81 = arith.constant 1.000000e+00 : f32
    %295 = vector.broadcast %cst_81 : f32 to vector<8x32xf32>
    %296 = arith.addf %295, %294 : vector<8x32xf32>
    %297 = arith.divf %295, %296 : vector<8x32xf32>
    %298 = vector.extract_strided_slice %291 {offsets = [0, 32], sizes = [8, 32], strides = [1, 1]} : vector<8x128xf32> to vector<8x32xf32>
    %299 = arith.negf %298 : vector<8x32xf32>
    %300 = math.exp %299 : vector<8x32xf32>
    %cst_82 = arith.constant 1.000000e+00 : f32
    %301 = vector.broadcast %cst_82 : f32 to vector<8x32xf32>
    %302 = arith.addf %301, %300 : vector<8x32xf32>
    %303 = arith.divf %301, %302 : vector<8x32xf32>
    %304 = vector.extract_strided_slice %291 {offsets = [0, 64], sizes = [8, 32], strides = [1, 1]} : vector<8x128xf32> to vector<8x32xf32>
    %305 = math.tanh %304 : vector<8x32xf32>
    %306 = vector.extract_strided_slice %291 {offsets = [0, 96], sizes = [8, 32], strides = [1, 1]} : vector<8x128xf32> to vector<8x32xf32>
    %307 = arith.negf %306 : vector<8x32xf32>
    %308 = math.exp %307 : vector<8x32xf32>
    %cst_83 = arith.constant 1.000000e+00 : f32
    %309 = vector.broadcast %cst_83 : f32 to vector<8x32xf32>
    %310 = arith.addf %309, %308 : vector<8x32xf32>
    %311 = arith.divf %309, %310 : vector<8x32xf32>
    %312 = arith.mulf %303, %285 : vector<8x32xf32>
    %313 = arith.mulf %297, %305 : vector<8x32xf32>
    %314 = arith.addf %312, %313 : vector<8x32xf32>
    %315 = math.tanh %314 : vector<8x32xf32>
    %316 = arith.mulf %311, %315 : vector<8x32xf32>
    %c8_84 = arith.constant 8 : index
    %c0_85 = arith.constant 0 : index
    %317 = vector.load %arg18[%c8_84, %c0_85] : memref<64x32xf32, #tpu.memory_space<vmem>>, vector<8x32xf32>
    tpu.vector_store %arg18[%c8_84, %c0_85], %316 {strides = array<i32>} : memref<64x32xf32, #tpu.memory_space<vmem>>, vector<8x32xf32>,
    %318 = vector.extract_strided_slice %255 {offsets = [16, 0], sizes = [8, 128], strides = [1, 1]} : vector<64x128xf32> to vector<8x128xf32>
    %cst_86 = arith.constant dense<0.000000e+00> : vector<8x128xf32>
    %319 = tpu.matmul %316, %250, %cst_86 {dimension_numbers = #tpu.dot_dimension_numbers<[1], [0], [0], [1], [0, 0, 1, 1], [], []>, precision = #tpu.contract_precision<fp32>} : vector<8x32xf32>, vector<32x128xf32>, vector<8x128xf32> -> vector<8x128xf32>
    %320 = arith.addf %318, %319 : vector<8x128xf32>
    %321 = vector.extract_strided_slice %320 {offsets = [0, 0], sizes = [8, 32], strides = [1, 1]} : vector<8x128xf32> to vector<8x32xf32>
    %322 = arith.negf %321 : vector<8x32xf32>
    %323 = math.exp %322 : vector<8x32xf32>
    %cst_87 = arith.constant 1.000000e+00 : f32
    %324 = vector.broadcast %cst_87 : f32 to vector<8x32xf32>
    %325 = arith.addf %324, %323 : vector<8x32xf32>
    %326 = arith.divf %324, %325 : vector<8x32xf32>
    %327 = vector.extract_strided_slice %320 {offsets = [0, 32], sizes = [8, 32], strides = [1, 1]} : vector<8x128xf32> to vector<8x32xf32>
    %328 = arith.negf %327 : vector<8x32xf32>
    %329 = math.exp %328 : vector<8x32xf32>
    %cst_88 = arith.constant 1.000000e+00 : f32
    %330 = vector.broadcast %cst_88 : f32 to vector<8x32xf32>
    %331 = arith.addf %330, %329 : vector<8x32xf32>
    %332 = arith.divf %330, %331 : vector<8x32xf32>
    %333 = vector.extract_strided_slice %320 {offsets = [0, 64], sizes = [8, 32], strides = [1, 1]} : vector<8x128xf32> to vector<8x32xf32>
    %334 = math.tanh %333 : vector<8x32xf32>
    %335 = vector.extract_strided_slice %320 {offsets = [0, 96], sizes = [8, 32], strides = [1, 1]} : vector<8x128xf32> to vector<8x32xf32>
    %336 = arith.negf %335 : vector<8x32xf32>
    %337 = math.exp %336 : vector<8x32xf32>
    %cst_89 = arith.constant 1.000000e+00 : f32
    %338 = vector.broadcast %cst_89 : f32 to vector<8x32xf32>
    %339 = arith.addf %338, %337 : vector<8x32xf32>
    %340 = arith.divf %338, %339 : vector<8x32xf32>
    %341 = arith.mulf %332, %314 : vector<8x32xf32>
    %342 = arith.mulf %326, %334 : vector<8x32xf32>
    %343 = arith.addf %341, %342 : vector<8x32xf32>
    %344 = math.tanh %343 : vector<8x32xf32>
    %345 = arith.mulf %340, %344 : vector<8x32xf32>
    %c16_90 = arith.constant 16 : index
    %c0_91 = arith.constant 0 : index
    %346 = vector.load %arg18[%c16_90, %c0_91] : memref<64x32xf32, #tpu.memory_space<vmem>>, vector<8x32xf32>
    tpu.vector_store %arg18[%c16_90, %c0_91], %345 {strides = array<i32>} : memref<64x32xf32, #tpu.memory_space<vmem>>, vector<8x32xf32>,
    %347 = vector.extract_strided_slice %255 {offsets = [24, 0], sizes = [8, 128], strides = [1, 1]} : vector<64x128xf32> to vector<8x128xf32>
    %cst_92 = arith.constant dense<0.000000e+00> : vector<8x128xf32>
    %348 = tpu.matmul %345, %250, %cst_92 {dimension_numbers = #tpu.dot_dimension_numbers<[1], [0], [0], [1], [0, 0, 1, 1], [], []>, precision = #tpu.contract_precision<fp32>} : vector<8x32xf32>, vector<32x128xf32>, vector<8x128xf32> -> vector<8x128xf32>
    %349 = arith.addf %347, %348 : vector<8x128xf32>
    %350 = vector.extract_strided_slice %349 {offsets = [0, 0], sizes = [8, 32], strides = [1, 1]} : vector<8x128xf32> to vector<8x32xf32>
    %351 = arith.negf %350 : vector<8x32xf32>
    %352 = math.exp %351 : vector<8x32xf32>
    %cst_93 = arith.constant 1.000000e+00 : f32
    %353 = vector.broadcast %cst_93 : f32 to vector<8x32xf32>
    %354 = arith.addf %353, %352 : vector<8x32xf32>
    %355 = arith.divf %353, %354 : vector<8x32xf32>
    %356 = vector.extract_strided_slice %349 {offsets = [0, 32], sizes = [8, 32], strides = [1, 1]} : vector<8x128xf32> to vector<8x32xf32>
    %357 = arith.negf %356 : vector<8x32xf32>
    %358 = math.exp %357 : vector<8x32xf32>
    %cst_94 = arith.constant 1.000000e+00 : f32
    %359 = vector.broadcast %cst_94 : f32 to vector<8x32xf32>
    %360 = arith.addf %359, %358 : vector<8x32xf32>
    %361 = arith.divf %359, %360 : vector<8x32xf32>
    %362 = vector.extract_strided_slice %349 {offsets = [0, 64], sizes = [8, 32], strides = [1, 1]} : vector<8x128xf32> to vector<8x32xf32>
    %363 = math.tanh %362 : vector<8x32xf32>
    %364 = vector.extract_strided_slice %349 {offsets = [0, 96], sizes = [8, 32], strides = [1, 1]} : vector<8x128xf32> to vector<8x32xf32>
    %365 = arith.negf %364 : vector<8x32xf32>
    %366 = math.exp %365 : vector<8x32xf32>
    %cst_95 = arith.constant 1.000000e+00 : f32
    %367 = vector.broadcast %cst_95 : f32 to vector<8x32xf32>
    %368 = arith.addf %367, %366 : vector<8x32xf32>
    %369 = arith.divf %367, %368 : vector<8x32xf32>
    %370 = arith.mulf %361, %343 : vector<8x32xf32>
    %371 = arith.mulf %355, %363 : vector<8x32xf32>
    %372 = arith.addf %370, %371 : vector<8x32xf32>
    %373 = math.tanh %372 : vector<8x32xf32>
    %374 = arith.mulf %369, %373 : vector<8x32xf32>
    %c24_96 = arith.constant 24 : index
    %c0_97 = arith.constant 0 : index
    %375 = vector.load %arg18[%c24_96, %c0_97] : memref<64x32xf32, #tpu.memory_space<vmem>>, vector<8x32xf32>
    tpu.vector_store %arg18[%c24_96, %c0_97], %374 {strides = array<i32>} : memref<64x32xf32, #tpu.memory_space<vmem>>, vector<8x32xf32>,
    %376 = vector.extract_strided_slice %255 {offsets = [32, 0], sizes = [8, 128], strides = [1, 1]} : vector<64x128xf32> to vector<8x128xf32>
    %cst_98 = arith.constant dense<0.000000e+00> : vector<8x128xf32>
    %377 = tpu.matmul %374, %250, %cst_98 {dimension_numbers = #tpu.dot_dimension_numbers<[1], [0], [0], [1], [0, 0, 1, 1], [], []>, precision = #tpu.contract_precision<fp32>} : vector<8x32xf32>, vector<32x128xf32>, vector<8x128xf32> -> vector<8x128xf32>
    %378 = arith.addf %376, %377 : vector<8x128xf32>
    %379 = vector.extract_strided_slice %378 {offsets = [0, 0], sizes = [8, 32], strides = [1, 1]} : vector<8x128xf32> to vector<8x32xf32>
    %380 = arith.negf %379 : vector<8x32xf32>
    %381 = math.exp %380 : vector<8x32xf32>
    %cst_99 = arith.constant 1.000000e+00 : f32
    %382 = vector.broadcast %cst_99 : f32 to vector<8x32xf32>
    %383 = arith.addf %382, %381 : vector<8x32xf32>
    %384 = arith.divf %382, %383 : vector<8x32xf32>
    %385 = vector.extract_strided_slice %378 {offsets = [0, 32], sizes = [8, 32], strides = [1, 1]} : vector<8x128xf32> to vector<8x32xf32>
    %386 = arith.negf %385 : vector<8x32xf32>
    %387 = math.exp %386 : vector<8x32xf32>
    %cst_100 = arith.constant 1.000000e+00 : f32
    %388 = vector.broadcast %cst_100 : f32 to vector<8x32xf32>
    %389 = arith.addf %388, %387 : vector<8x32xf32>
    %390 = arith.divf %388, %389 : vector<8x32xf32>
    %391 = vector.extract_strided_slice %378 {offsets = [0, 64], sizes = [8, 32], strides = [1, 1]} : vector<8x128xf32> to vector<8x32xf32>
    %392 = math.tanh %391 : vector<8x32xf32>
    %393 = vector.extract_strided_slice %378 {offsets = [0, 96], sizes = [8, 32], strides = [1, 1]} : vector<8x128xf32> to vector<8x32xf32>
    %394 = arith.negf %393 : vector<8x32xf32>
    %395 = math.exp %394 : vector<8x32xf32>
    %cst_101 = arith.constant 1.000000e+00 : f32
    %396 = vector.broadcast %cst_101 : f32 to vector<8x32xf32>
    %397 = arith.addf %396, %395 : vector<8x32xf32>
    %398 = arith.divf %396, %397 : vector<8x32xf32>
    %399 = arith.mulf %390, %372 : vector<8x32xf32>
    %400 = arith.mulf %384, %392 : vector<8x32xf32>
    %401 = arith.addf %399, %400 : vector<8x32xf32>
    %402 = math.tanh %401 : vector<8x32xf32>
    %403 = arith.mulf %398, %402 : vector<8x32xf32>
    %c32_102 = arith.constant 32 : index
    %c0_103 = arith.constant 0 : index
    %404 = vector.load %arg18[%c32_102, %c0_103] : memref<64x32xf32, #tpu.memory_space<vmem>>, vector<8x32xf32>
    tpu.vector_store %arg18[%c32_102, %c0_103], %403 {strides = array<i32>} : memref<64x32xf32, #tpu.memory_space<vmem>>, vector<8x32xf32>,
    %405 = vector.extract_strided_slice %255 {offsets = [40, 0], sizes = [8, 128], strides = [1, 1]} : vector<64x128xf32> to vector<8x128xf32>
    %cst_104 = arith.constant dense<0.000000e+00> : vector<8x128xf32>
    %406 = tpu.matmul %403, %250, %cst_104 {dimension_numbers = #tpu.dot_dimension_numbers<[1], [0], [0], [1], [0, 0, 1, 1], [], []>, precision = #tpu.contract_precision<fp32>} : vector<8x32xf32>, vector<32x128xf32>, vector<8x128xf32> -> vector<8x128xf32>
    %407 = arith.addf %405, %406 : vector<8x128xf32>
    %408 = vector.extract_strided_slice %407 {offsets = [0, 0], sizes = [8, 32], strides = [1, 1]} : vector<8x128xf32> to vector<8x32xf32>
    %409 = arith.negf %408 : vector<8x32xf32>
    %410 = math.exp %409 : vector<8x32xf32>
    %cst_105 = arith.constant 1.000000e+00 : f32
    %411 = vector.broadcast %cst_105 : f32 to vector<8x32xf32>
    %412 = arith.addf %411, %410 : vector<8x32xf32>
    %413 = arith.divf %411, %412 : vector<8x32xf32>
    %414 = vector.extract_strided_slice %407 {offsets = [0, 32], sizes = [8, 32], strides = [1, 1]} : vector<8x128xf32> to vector<8x32xf32>
    %415 = arith.negf %414 : vector<8x32xf32>
    %416 = math.exp %415 : vector<8x32xf32>
    %cst_106 = arith.constant 1.000000e+00 : f32
    %417 = vector.broadcast %cst_106 : f32 to vector<8x32xf32>
    %418 = arith.addf %417, %416 : vector<8x32xf32>
    %419 = arith.divf %417, %418 : vector<8x32xf32>
    %420 = vector.extract_strided_slice %407 {offsets = [0, 64], sizes = [8, 32], strides = [1, 1]} : vector<8x128xf32> to vector<8x32xf32>
    %421 = math.tanh %420 : vector<8x32xf32>
    %422 = vector.extract_strided_slice %407 {offsets = [0, 96], sizes = [8, 32], strides = [1, 1]} : vector<8x128xf32> to vector<8x32xf32>
    %423 = arith.negf %422 : vector<8x32xf32>
    %424 = math.exp %423 : vector<8x32xf32>
    %cst_107 = arith.constant 1.000000e+00 : f32
    %425 = vector.broadcast %cst_107 : f32 to vector<8x32xf32>
    %426 = arith.addf %425, %424 : vector<8x32xf32>
    %427 = arith.divf %425, %426 : vector<8x32xf32>
    %428 = arith.mulf %419, %401 : vector<8x32xf32>
    %429 = arith.mulf %413, %421 : vector<8x32xf32>
    %430 = arith.addf %428, %429 : vector<8x32xf32>
    %431 = math.tanh %430 : vector<8x32xf32>
    %432 = arith.mulf %427, %431 : vector<8x32xf32>
    %c40_108 = arith.constant 40 : index
    %c0_109 = arith.constant 0 : index
    %433 = vector.load %arg18[%c40_108, %c0_109] : memref<64x32xf32, #tpu.memory_space<vmem>>, vector<8x32xf32>
    tpu.vector_store %arg18[%c40_108, %c0_109], %432 {strides = array<i32>} : memref<64x32xf32, #tpu.memory_space<vmem>>, vector<8x32xf32>,
    %434 = vector.extract_strided_slice %255 {offsets = [48, 0], sizes = [8, 128], strides = [1, 1]} : vector<64x128xf32> to vector<8x128xf32>
    %cst_110 = arith.constant dense<0.000000e+00> : vector<8x128xf32>
    %435 = tpu.matmul %432, %250, %cst_110 {dimension_numbers = #tpu.dot_dimension_numbers<[1], [0], [0], [1], [0, 0, 1, 1], [], []>, precision = #tpu.contract_precision<fp32>} : vector<8x32xf32>, vector<32x128xf32>, vector<8x128xf32> -> vector<8x128xf32>
    %436 = arith.addf %434, %435 : vector<8x128xf32>
    %437 = vector.extract_strided_slice %436 {offsets = [0, 0], sizes = [8, 32], strides = [1, 1]} : vector<8x128xf32> to vector<8x32xf32>
    %438 = arith.negf %437 : vector<8x32xf32>
    %439 = math.exp %438 : vector<8x32xf32>
    %cst_111 = arith.constant 1.000000e+00 : f32
    %440 = vector.broadcast %cst_111 : f32 to vector<8x32xf32>
    %441 = arith.addf %440, %439 : vector<8x32xf32>
    %442 = arith.divf %440, %441 : vector<8x32xf32>
    %443 = vector.extract_strided_slice %436 {offsets = [0, 32], sizes = [8, 32], strides = [1, 1]} : vector<8x128xf32> to vector<8x32xf32>
    %444 = arith.negf %443 : vector<8x32xf32>
    %445 = math.exp %444 : vector<8x32xf32>
    %cst_112 = arith.constant 1.000000e+00 : f32
    %446 = vector.broadcast %cst_112 : f32 to vector<8x32xf32>
    %447 = arith.addf %446, %445 : vector<8x32xf32>
    %448 = arith.divf %446, %447 : vector<8x32xf32>
    %449 = vector.extract_strided_slice %436 {offsets = [0, 64], sizes = [8, 32], strides = [1, 1]} : vector<8x128xf32> to vector<8x32xf32>
    %450 = math.tanh %449 : vector<8x32xf32>
    %451 = vector.extract_strided_slice %436 {offsets = [0, 96], sizes = [8, 32], strides = [1, 1]} : vector<8x128xf32> to vector<8x32xf32>
    %452 = arith.negf %451 : vector<8x32xf32>
    %453 = math.exp %452 : vector<8x32xf32>
    %cst_113 = arith.constant 1.000000e+00 : f32
    %454 = vector.broadcast %cst_113 : f32 to vector<8x32xf32>
    %455 = arith.addf %454, %453 : vector<8x32xf32>
    %456 = arith.divf %454, %455 : vector<8x32xf32>
    %457 = arith.mulf %448, %430 : vector<8x32xf32>
    %458 = arith.mulf %442, %450 : vector<8x32xf32>
    %459 = arith.addf %457, %458 : vector<8x32xf32>
    %460 = math.tanh %459 : vector<8x32xf32>
    %461 = arith.mulf %456, %460 : vector<8x32xf32>
    %c48_114 = arith.constant 48 : index
    %c0_115 = arith.constant 0 : index
    %462 = vector.load %arg18[%c48_114, %c0_115] : memref<64x32xf32, #tpu.memory_space<vmem>>, vector<8x32xf32>
    tpu.vector_store %arg18[%c48_114, %c0_115], %461 {strides = array<i32>} : memref<64x32xf32, #tpu.memory_space<vmem>>, vector<8x32xf32>,
    %463 = vector.extract_strided_slice %255 {offsets = [56, 0], sizes = [8, 128], strides = [1, 1]} : vector<64x128xf32> to vector<8x128xf32>
    %cst_116 = arith.constant dense<0.000000e+00> : vector<8x128xf32>
    %464 = tpu.matmul %461, %250, %cst_116 {dimension_numbers = #tpu.dot_dimension_numbers<[1], [0], [0], [1], [0, 0, 1, 1], [], []>, precision = #tpu.contract_precision<fp32>} : vector<8x32xf32>, vector<32x128xf32>, vector<8x128xf32> -> vector<8x128xf32>
    %465 = arith.addf %463, %464 : vector<8x128xf32>
    %466 = vector.extract_strided_slice %465 {offsets = [0, 0], sizes = [8, 32], strides = [1, 1]} : vector<8x128xf32> to vector<8x32xf32>
    %467 = arith.negf %466 : vector<8x32xf32>
    %468 = math.exp %467 : vector<8x32xf32>
    %cst_117 = arith.constant 1.000000e+00 : f32
    %469 = vector.broadcast %cst_117 : f32 to vector<8x32xf32>
    %470 = arith.addf %469, %468 : vector<8x32xf32>
    %471 = arith.divf %469, %470 : vector<8x32xf32>
    %472 = vector.extract_strided_slice %465 {offsets = [0, 32], sizes = [8, 32], strides = [1, 1]} : vector<8x128xf32> to vector<8x32xf32>
    %473 = arith.negf %472 : vector<8x32xf32>
    %474 = math.exp %473 : vector<8x32xf32>
    %cst_118 = arith.constant 1.000000e+00 : f32
    %475 = vector.broadcast %cst_118 : f32 to vector<8x32xf32>
    %476 = arith.addf %475, %474 : vector<8x32xf32>
    %477 = arith.divf %475, %476 : vector<8x32xf32>
    %478 = vector.extract_strided_slice %465 {offsets = [0, 64], sizes = [8, 32], strides = [1, 1]} : vector<8x128xf32> to vector<8x32xf32>
    %479 = math.tanh %478 : vector<8x32xf32>
    %480 = vector.extract_strided_slice %465 {offsets = [0, 96], sizes = [8, 32], strides = [1, 1]} : vector<8x128xf32> to vector<8x32xf32>
    %481 = arith.negf %480 : vector<8x32xf32>
    %482 = math.exp %481 : vector<8x32xf32>
    %cst_119 = arith.constant 1.000000e+00 : f32
    %483 = vector.broadcast %cst_119 : f32 to vector<8x32xf32>
    %484 = arith.addf %483, %482 : vector<8x32xf32>
    %485 = arith.divf %483, %484 : vector<8x32xf32>
    %486 = arith.mulf %477, %459 : vector<8x32xf32>
    %487 = arith.mulf %471, %479 : vector<8x32xf32>
    %488 = arith.addf %486, %487 : vector<8x32xf32>
    %489 = math.tanh %488 : vector<8x32xf32>
    %490 = arith.mulf %485, %489 : vector<8x32xf32>
    %c56_120 = arith.constant 56 : index
    %c0_121 = arith.constant 0 : index
    %491 = vector.load %arg18[%c56_120, %c0_121] : memref<64x32xf32, #tpu.memory_space<vmem>>, vector<8x32xf32>
    tpu.vector_store %arg18[%c56_120, %c0_121], %490 {strides = array<i32>} : memref<64x32xf32, #tpu.memory_space<vmem>>, vector<8x32xf32>,
    %c1_122 = arith.constant 1 : index
    %c0_123 = arith.constant 0 : index
    %c0_124 = arith.constant 0 : index
    %492 = vector.load %arg16[%c1_122, %c0_123, %c0_124] : memref<2x8x32xf32, #tpu.memory_space<vmem>>, vector<1x8x32xf32>
    %493 = vector.shape_cast %492 : vector<1x8x32xf32> to vector<8x32xf32>
    %494 = vector.shape_cast %490 : vector<8x32xf32> to vector<1x8x32xf32>
    tpu.vector_store %arg16[%c1_122, %c0_123, %c0_124], %494 {strides = array<i32>} : memref<2x8x32xf32, #tpu.memory_space<vmem>>, vector<1x8x32xf32>,
    %c1_125 = arith.constant 1 : index
    %c0_126 = arith.constant 0 : index
    %c0_127 = arith.constant 0 : index
    %495 = vector.load %arg17[%c1_125, %c0_126, %c0_127] : memref<2x8x32xf32, #tpu.memory_space<vmem>>, vector<1x8x32xf32>
    %496 = vector.shape_cast %495 : vector<1x8x32xf32> to vector<8x32xf32>
    %497 = vector.shape_cast %488 : vector<8x32xf32> to vector<1x8x32xf32>
    tpu.vector_store %arg17[%c1_125, %c0_126, %c0_127], %497 {strides = array<i32>} : memref<2x8x32xf32, #tpu.memory_space<vmem>>, vector<1x8x32xf32>,
    %c0_128 = arith.constant 0 : index
    %c0_129 = arith.constant 0 : index
    %498 = vector.load %arg18[%c0_128, %c0_129] : memref<64x32xf32, #tpu.memory_space<vmem>>, vector<64x32xf32>
    %c0_130 = arith.constant 0 : index
    %c0_131 = arith.constant 0 : index
    %499 = vector.load %arg9[%c0_130, %c0_131] : memref<32x32xf32, #tpu.memory_space<vmem>>, vector<32x32xf32>
    %cst_132 = arith.constant dense<0.000000e+00> : vector<64x32xf32>
    %500 = tpu.matmul %498, %499, %cst_132 {dimension_numbers = #tpu.dot_dimension_numbers<[1], [0], [0], [1], [0, 0, 1, 1], [], []>, precision = #tpu.contract_precision<fp32>} : vector<64x32xf32>, vector<32x32xf32>, vector<64x32xf32> -> vector<64x32xf32>
    %c0_133 = arith.constant 0 : index
    %c0_134 = arith.constant 0 : index
    %501 = vector.load %arg10[%c0_133, %c0_134] : memref<1x32xf32, #tpu.memory_space<vmem>>, vector<1x32xf32>
    %502 = vector.broadcast %501 : vector<1x32xf32> to vector<64x32xf32>
    %503 = arith.addf %500, %502 : vector<64x32xf32>
    %cst_135 = arith.constant 0.000000e+00 : f32
    %504 = vector.broadcast %cst_135 : f32 to vector<64x32xf32>
    %505 = arith.maximumf %503, %504 : vector<64x32xf32>
    %c0_136 = arith.constant 0 : index
    %c0_137 = arith.constant 0 : index
    %506 = vector.load %arg11[%c0_136, %c0_137] : memref<32x16xf32, #tpu.memory_space<vmem>>, vector<32x16xf32>
    %cst_138 = arith.constant dense<0.000000e+00> : vector<64x16xf32>
    %507 = tpu.matmul %505, %506, %cst_138 {dimension_numbers = #tpu.dot_dimension_numbers<[1], [0], [0], [1], [0, 0, 1, 1], [], []>, precision = #tpu.contract_precision<fp32>} : vector<64x32xf32>, vector<32x16xf32>, vector<64x16xf32> -> vector<64x16xf32>
    %c0_139 = arith.constant 0 : index
    %c0_140 = arith.constant 0 : index
    %508 = vector.load %arg12[%c0_139, %c0_140] : memref<1x16xf32, #tpu.memory_space<vmem>>, vector<1x16xf32>
    %509 = vector.broadcast %508 : vector<1x16xf32> to vector<64x16xf32>
    %510 = arith.addf %507, %509 : vector<64x16xf32>
    %cst_141 = arith.constant 0.000000e+00 : f32
    %511 = vector.broadcast %cst_141 : f32 to vector<64x16xf32>
    %512 = arith.maximumf %510, %511 : vector<64x16xf32>
    %c0_142 = arith.constant 0 : index
    %c0_143 = arith.constant 0 : index
    %513 = vector.load %arg13[%c0_142, %c0_143] : memref<16x128xf32, #tpu.memory_space<vmem>>, vector<16x128xf32>
    %cst_144 = arith.constant dense<0.000000e+00> : vector<64x128xf32>
    %514 = tpu.matmul %512, %513, %cst_144 {dimension_numbers = #tpu.dot_dimension_numbers<[1], [0], [0], [1], [0, 0, 1, 1], [], []>, precision = #tpu.contract_precision<fp32>} : vector<64x16xf32>, vector<16x128xf32>, vector<64x128xf32> -> vector<64x128xf32>
    %c0_145 = arith.constant 0 : index
    %c0_146 = arith.constant 0 : index
    %515 = vector.load %arg14[%c0_145, %c0_146] : memref<1x128xf32, #tpu.memory_space<vmem>>, vector<1x128xf32>
    %516 = vector.broadcast %515 : vector<1x128xf32> to vector<64x128xf32>
    %517 = arith.addf %514, %516 : vector<64x128xf32>
    %c0_147 = arith.constant 0 : index
    %c0_148 = arith.constant 0 : index
    %518 = vector.load %arg15[%c0_147, %c0_148] : memref<64x128xf32, #tpu.memory_space<vmem>>, vector<64x128xf32>
    tpu.vector_store %arg15[%c0_147, %c0_148], %517 {strides = array<i32>} : memref<64x128xf32, #tpu.memory_space<vmem>>, vector<64x128xf32>,
    return
  }
}

</mosaic_0001>

<bundles_post_ra>
// kernel: tpu_custom_call.1
= control target key start
LH: loop header
LB: loop body
LE: loop exit
PB: predicated region body
PF: predicated region fallthrough
CT: control target
= control target key end

     0   :  { %s17839_s0 = inlined_call_operand.vmem [shape: f32[64,16], index: 0, kind: input, shape index: {}]   ;;  %s17840_s1 = inlined_call_operand.hbm [shape: f32[2,8,32], index: 1, kind: input, shape index: {}]   ;;  %s17841_s2 = inlined_call_operand.hbm [shape: f32[2,8,32], index: 2, kind: input, shape index: {}]   ;;  %s17842_s3 = inlined_call_operand.hbm [shape: f32[16,128], index: 3, kind: input, shape index: {}]   ;;  %s17843_s4 = inlined_call_operand.vmem [shape: f32[32,128], index: 4, kind: input, shape index: {}]   ;;  %s17844_s5 = inlined_call_operand.vmem [shape: f32[1,128], index: 5, kind: input, shape index: {}]   ;;  %s17845_s6 = inlined_call_operand.vmem [shape: f32[32,128], index: 6, kind: input, shape index: {}]   ;;  %s17846_s7 = inlined_call_operand.vmem [shape: f32[32,128], index: 7, kind: input, shape index: {}]   ;;  %s17847_s8 = inlined_call_operand.vmem [shape: f32[1,128], index: 8, kind: input, shape index: {}]   ;;  %s17848_s9 = inlined_call_operand.vmem [shape: f32[32,32], index: 9, kind: input, shape index: {}]   ;;  %s17849_s10 = inlined_call_operand.vmem [shape: f32[1,32], index: 10, kind: input, shape index: {}]   ;;  %s17850_s11 = inlined_call_operand.vmem [shape: f32[32,16], index: 11, kind: input, shape index: {}]   ;;  %s17851_s12 = inlined_call_operand.vmem [shape: f32[1,16], index: 12, kind: input, shape index: {}]   ;;  %s17852_s13 = inlined_call_operand.hbm [shape: f32[16,128], index: 13, kind: input, shape index: {}]   ;;  %s17853_s14 = inlined_call_operand.vmem [shape: f32[1,128], index: 14, kind: input, shape index: {}]   ;;  %s17854_s15 = inlined_call_operand.hbm [shape: f32[64,128], index: 15, kind: output, shape index: {0}]   ;;  %s17855_s16 = inlined_call_operand.hbm [shape: f32[2,8,32], index: 16, kind: output, shape index: {1}]   ;;  %s17856_s17 = inlined_call_operand.hbm [shape: f32[2,8,32], index: 17, kind: output, shape index: {2}]  }
   0x1   :  { %17861 = sst [smem:[#allocation24_spill]] %s17839_s0 }
   0x2   :  { %17862 = sst [smem:[#allocation25_spill]] %s17840_s1 }
   0x3   :  { %23 = vsyncpa [#allocation4], 0 }
   0x4   :  { %24 = vsyncpa [#allocation7], 0 }
   0x5   :  { %25 = vsyncpa [#allocation10], 0 }
   0x6   :  { %26 = vsyncpa [#allocation5], 0 }
   0x7   :  { %27 = vsyncpa [#allocation13], 0  ;;  %s15308_s24 = smov [#allocation6]   ;;  %s15309_s26 = smov [#allocation3]  }
   0x8   :  { %s47_s25 = sshll.u32 %s15308_s24, 4  ;;  %s35_s27 = sshll.u32 %s15309_s26, 4  ;;  %s48_s25 = int_to_ptr.vmem [resolvable:$true] %s47_s25  ;;  %s36_s27 = int_to_ptr.vmem [resolvable:$true] %s35_s27 }
   0x9   :  { %s15166_s28 = scalar_lea.vmem %s48_s25, 256  ;;  %p15171_p1 = scmp.lt.s32.totalorder %s48_s25, %s48_s25 }
   0xa   :  { %p15167_p0 = scmp.ne.s32.totalorder %s48_s25, %s15166_s28  ;;  %p15172_p2 = scmp.lt.s32.totalorder %s15166_s28, %s15166_s28 }
   0xc   :  { %p15173_p3 = por %p15172_p2, %p15171_p1 }
   0xe   :  { %p15174_p4 = pnand %p15173_p3, %p15167_p0 }
  0x10   :  { %15177 = shalt.err (!%p15174_p4)
}
  0x11   :  { %s15310_s29 = smov 128   ;;  %s15311_s0 = smov 8  }
  0x12   :  { %53 = dma.hbm_to_vmem [thread:$0]  %s17841_s2, 256, %s48_s25, [#allocation7], %s15310_s29, %s15310_s29, %s15311_s0  }
  0x13   :  { %s15186_s19 = scalar_lea.vmem %s36_s27, 256  ;;  %p15191_p6 = scmp.lt.s32.totalorder %s36_s27, %s36_s27 }
  0x14   :  { %p15187_p5 = scmp.ne.s32.totalorder %s36_s27, %s15186_s19  ;;  %p15192_p7 = scmp.lt.s32.totalorder %s15186_s19, %s15186_s19 }
  0x16   :  { %p15193_p8 = por %p15192_p7, %p15191_p6 }
  0x18   :  { %p15194_p9 = pnand %p15193_p8, %p15187_p5 }
  0x1a   :  { %15197 = shalt.err (!%p15194_p9)
}
  0x1b   :  { %s17863_s21 = sld [smem:[#allocation25_spill]]  ;;  %s15312_s22 = smov [#allocation8]  }
  0x1c   :  { %s59_s23 = sshll.u32 %s15312_s22, 4  ;;  %s15313_s24 = smov [#allocation9]   ;;  %s60_s23 = int_to_ptr.vmem [resolvable:$true] %s59_s23 }
  0x1d   :  { %s89_s26 = sshll.u32 %s15313_s24, 4  ;;  %s15206_s2 = scalar_lea.vmem %s60_s23, 256  ;;  %s90_s26 = int_to_ptr.vmem [resolvable:$true] %s89_s26 }
  0x1e   :  { %p15207_p10 = scmp.ne.s32.totalorder %s60_s23, %s15206_s2  ;;  %p15211_p11 = scmp.lt.s32.totalorder %s60_s23, %s60_s23 }
  0x1f   :  { %p15212_p12 = scmp.lt.s32.totalorder %s15206_s2, %s15206_s2 }
  0x21   :  { %41 = dma.hbm_to_vmem [thread:$0]  %s17863_s21, 256, %s36_s27, [#allocation4], %s15310_s29, %s15310_s29, %s15311_s0  }
  0x22   :  { %p15213_p13 = por %p15212_p12, %p15211_p11 }
  0x24   :  { %p15214_p0 = pnand %p15213_p13, %p15207_p10 }
  0x26   :  { %15217 = shalt.err (!%p15214_p0)
}
  0x27   :  { %65 = dma.hbm_to_vmem [thread:$0]  %s17842_s3, 256, %s60_s23, [#allocation7], %s15310_s29, %s15310_s29, %s15311_s0  }
  0x28   :  { %s15226_s27 = scalar_lea.vmem %s90_s26, 256  ;;  %p15231_p2 = scmp.lt.s32.totalorder %s90_s26, %s90_s26 }
  0x29   :  { %p15227_p1 = scmp.ne.s32.totalorder %s90_s26, %s15226_s27  ;;  %p15232_p3 = scmp.lt.s32.totalorder %s15226_s27, %s15226_s27 }
  0x2b   :  { %p15233_p4 = por %p15232_p3, %p15231_p2 }
  0x2d   :  { %p15234_p5 = pnand %p15233_p4, %p15227_p1 }
  0x2f   :  { %15237 = shalt.err (!%p15234_p5)
}
  0x30   :  { %95 = dma.hbm_to_vmem [thread:$0]  %s17852_s13, 256, %s90_s26, [#allocation10], %s15310_s29, %s15310_s29, %s15311_s0  }
  0x31   :  { %15298 = dma.done.wait [#allocation4], 256  }
  0x32   :  { %15299 = vsyncadd [#allocation4], 4294967040 }
  0x33   :  { %15300 = dma.done.wait [#allocation7], 512  }
  0x34   :  { %15301 = vsyncadd [#allocation7], 4294966784 }
  0x35   :  { %15302 = dma.done.wait [#allocation10], 256  }
  0x36   :  { %15303 = vsyncadd [#allocation10], 4294967040  ;;  %vm131_vm0 = vcmask 130048   ;;  %v123_v0 = vld [vmem:[#allocation8 + $0x8] sm:$0xff]  ;;  %v122_v1 = vld [vmem:[#allocation8] sm:$0xff]  ;;  %s17864_s1 = sld [smem:[#allocation24_spill]] }
  0x37   :  { %v15439_v3 = vand.u32 4294901760, %v123_v0  ;;  %v15441_v4 = vand.u32 4294901760, %v122_v1  ;;  %vm918_vm1 = vcmask 261120   ;;  %vm15315_vm2 = vmmov 0   ;;  %s15316_s2 = smov 64   ;;  %s15317_s25 = smov 32  }
  0x39   :  { %13406 = vmatprep.subr.mxu0 %v15439_v3  ;;  %v333_v15 = vsub.f32 %v123_v0, %v15439_v3  ;;  %v15469_v17 = vsub.f32 %v122_v1, %v15441_v4 }
  0x3a   :  { %13407 = vmatpush3.msra.mxu0 %v15439_v3 }
  0x3b   :  { %13408 = vmatprep.subr.mxu0 %v15441_v4  ;;  %v15483_v23 = vand.u32 4294901760, %v333_v15  ;;  %v15489_v25 = vand.u32 4294901760, %v15469_v17 }
  0x3c   :  { %v110_v2 = vld [vmem:[%s17864_s1] sm:$0xff]  ;;  %v111_v6 = vld [vmem:[%s17864_s1 + $0x8] sm:$0xff]  ;;  %v112_v7 = vld [vmem:[%s17864_s1 + $0x10] sm:$0xff]  ;;  %13409 = vmatpush3.msra.mxu0 %v15441_v4 }
  0x3d   :  { %v133_v5 = vsel %vm131_vm0, %v110_v2, 0  ;;  %v113_v8 = vld [vmem:[%s17864_s1 + $0x18] sm:$0xff]  ;;  %v136_v10 = vsel %vm131_vm0, %v111_v6, 0  ;;  %v139_v11 = vsel %vm131_vm0, %v112_v7, 0  ;;  %v114_v13 = vld [vmem:[%s17864_s1 + $0x20] sm:$0xff]  ;;  %v115_v14 = vld [vmem:[%s17864_s1 + $0x28] sm:$0xff]  ;;  %v335_v31 = vsub.f32 %v333_v15, %v15483_v23  ;;  %13438 = vmatprep.subr.mxu0 %v333_v15 }
  0x3e   :  { %v15453_v9 = vand.u32 4294901760, %v133_v5  ;;  %v142_v12 = vsel %vm131_vm0, %v113_v8, 0  ;;  %v15466_v16 = vand.u32 4294901760, %v136_v10  ;;  %v15471_v18 = vand.u32 4294901760, %v139_v11  ;;  %v116_v39 = vld [vmem:[%s17864_s1 + $0x30] sm:$0xff]  ;;  %v117_v40 = vld [vmem:[%s17864_s1 + $0x38] sm:$0xff] }
  0x3f   :  { %v15478_v20 = vand.u32 4294901760, %v142_v12  ;;  %v145_v21 = vsel %vm131_vm0, %v114_v13, 0  ;;  %v148_v22 = vsel %vm131_vm0, %v115_v14, 0  ;;  %v342_v33 = vsub.f32 %v15469_v17, %v15489_v25  ;;  %v121_v6 = vld [vmem:[%s17843_s4 + $0x18] sm:$0xff]  ;;  %v120_v8 = vld [vmem:[%s17843_s4 + $0x10] sm:$0xff]  ;;  %v916_v13 = vld [vmem:[#allocation3] sm:$0xff] }
  0x40   :  { %v15475_v19 = vsub.f32 %v133_v5, %v15453_v9  ;;  %13426 = vmatprep.mubr.f32.mxu1 %v15453_v9  ;;  %v15486_v24 = vsub.f32 %v136_v10, %v15466_v16  ;;  %v15492_v26 = vsub.f32 %v139_v11, %v15471_v18  ;;  %v15499_v29 = vand.u32 4294901760, %v145_v21 }
  0x41   :  { %v15497_v28 = vsub.f32 %v142_v12, %v15478_v20  ;;  %v15501_v30 = vand.u32 4294901760, %v148_v22  ;;  %v336_v41 = vand.u32 4294901760, %v335_v31  ;;  %v343_v43 = vand.u32 4294901760, %v342_v33  ;;  %v119_v12 = vld [vmem:[%s17843_s4 + $0x8] sm:$0xff] }
  0x42   :  { %v225_v27 = vand.u32 4294901760, %v15475_v19  ;;  %v235_v32 = vand.u32 4294901760, %v15486_v24  ;;  %v245_v34 = vand.u32 4294901760, %v15492_v26  ;;  %v15513_v37 = vsub.f32 %v145_v21, %v15499_v29 }
  0x43   :  { %v255_v36 = vand.u32 4294901760, %v15497_v28  ;;  %v15516_v38 = vsub.f32 %v148_v22, %v15501_v30  ;;  %13422 = vmatprep.subr.mxu1 %v336_v41  ;;  %v151_v50 = vsel %vm131_vm0, %v116_v39, 0  ;;  %v154_v51 = vsel %vm131_vm0, %v117_v40, 0 }
  0x44   :  { %v226_v35 = vsub.f32 %v15475_v19, %v225_v27  ;;  %v236_v42 = vsub.f32 %v15486_v24, %v235_v32  ;;  %v246_v44 = vsub.f32 %v15492_v26, %v245_v34  ;;  %v265_v47 = vand.u32 4294901760, %v15513_v37  ;;  %13423 = vmatpush3.msra.mxu1 %v336_v41 }
  0x45   :  { %v256_v46 = vsub.f32 %v15497_v28, %v255_v36  ;;  %v275_v48 = vand.u32 4294901760, %v15516_v38  ;;  %v15540_v54 = vand.u32 4294901760, %v151_v50  ;;  %13424 = vmatprep.subr.mxu1 %v343_v43  ;;  %v15545_v57 = vand.u32 4294901760, %v154_v51 }
  0x46   :  { %v227_v45 = vand.u32 4294901760, %v226_v35  ;;  %v237_v49 = vand.u32 4294901760, %v236_v42  ;;  %v247_v52 = vand.u32 4294901760, %v246_v44  ;;  %v266_v53 = vsub.f32 %v15513_v37, %v265_v47  ;;  %13425 = vmatpush3.msra.mxu1 %v343_v43 }
  0x47   :  { %v257_v55 = vand.u32 4294901760, %v256_v46  ;;  %v276_v56 = vsub.f32 %v15516_v38, %v275_v48  ;;  %v15548_v59 = vsub.f32 %v151_v50, %v15540_v54  ;;  %13427 = vmatmul.mubr.f32.vlgmr.msra.gmra.mxu1 %v15466_v16  ;;  %13454 = vmatprep.subr.mxu1 %v15439_v3  ;;  %v15553_v60 = vsub.f32 %v154_v51, %v15545_v57 }
  0x48   :  { %13410 = vmatprep.mubr.f32.mxu0 %v227_v45  ;;  %v267_v58 = vand.u32 4294901760, %v266_v53  ;;  %13455 = vmatpush3.msra.mxu1 %v15439_v3  ;;  %v15578_v7 = vand.u32 4294901760, %v121_v6  ;;  %v15595_v11 = vand.u32 4294901760, %v120_v8 }
  0x49   :  { %13411 = vmatmul.mubr.f32.vlgmr.msra.gmra.mxu0 %v237_v49  ;;  %v285_v61 = vand.u32 4294901760, %v15548_v59  ;;  %13429 = vmatprep.mubr.f32.mxu1 %v15471_v18  ;;  %v277_v62 = vand.u32 4294901760, %v276_v56  ;;  %v295_v63 = vand.u32 4294901760, %v15553_v60 }
  0x4a   :  { %13439 = vmatpush3.msra.mxu0 %v333_v15  ;;  %13413 = vmatprep.mubr.f32.mxu0 %v247_v52  ;;  %v15593_v10 = vsub.f32 %v121_v6, %v15578_v7  ;;  %v15614_v15 = vsub.f32 %v120_v8, %v15595_v11 }
  0x4b   :  { %13440 = vmatprep.subr.mxu0 %v15469_v17  ;;  %v286_v0 = vsub.f32 %v15548_v59, %v285_v61  ;;  %13430 = vmatmul.mubr.f32.gmra.mxu1 %v15478_v20  ;;  %v296_v1 = vsub.f32 %v15553_v60, %v295_v63 }
  0x4c   :  { %13441 = vmatpush3.msra.mxu0 %v15469_v17  ;;  %13432 = vmatprep.mubr.f32.mxu1 %v15499_v29  ;;  %v15611_v14 = vand.u32 4294901760, %v15593_v10  ;;  %v15616_v17 = vand.u32 4294901760, %v119_v12  ;;  %v15630_v22 = vand.u32 4294901760, %v15614_v15 }
  0x4d   :  { %13414 = vmatmul.mubr.f32.gmra.mxu0 %v257_v55  ;;  %13456 = vmatprep.subr.mxu1 %v15441_v4  ;;  %v287_v2 = vand.u32 4294901760, %v286_v0  ;;  %v297_v5 = vand.u32 4294901760, %v296_v1 }
  0x4e   :  { %13416 = vmatprep.mubr.f32.mxu0 %v267_v58  ;;  %13457 = vmatpush3.msra.mxu1 %v15441_v4  ;;  %v1029_v21 = vsub.f32 %v15593_v10, %v15611_v14 }
  0x4f   :  { %13470 = vmatprep.subr.mxu0 %v15483_v23  ;;  %13433 = vmatmul.mubr.f32.gmra.mxu1 %v15501_v30 }
  0x50   :  { %13486 = vmatprep.subr.mxu1 %v15439_v3  ;;  %13435 = vmatprep.mubr.f32.mxu1 %v15540_v54 }
  0x51   :  { %13417 = vmatmul.mubr.f32.gmra.mxu0 %v277_v62 }
  0x52   :  { %13419 = vmatprep.mubr.f32.mxu0 %v287_v2 }
  0x53   :  { %13436 = vmatmul.mubr.f32.gmra.mxu1 %v15545_v57 }
  0x54   :  { %13458 = vmatprep.mubr.f32.mxu1 %v225_v27  ;;  %v1036_v27 = vsub.f32 %v15614_v15, %v15630_v22 }
  0x55   :  { %13420 = vmatmul.mubr.f32.gmra.mxu0 %v297_v5 }
  0x56   :  { %13442 = vmatprep.mubr.f32.mxu0 %v15475_v19  ;;  %v118_v19 = vld [vmem:[%s17843_s4] sm:$0xff] }
  0x57   :  { %13459 = vmatmul.mubr.f32.vlgmr.msra.gmra.mxu1 %v235_v32 }
  0x58   :  { %13487 = vmatpush3.msra.mxu1 %v15439_v3  ;;  %13461 = vmatprep.mubr.f32.mxu1 %v245_v34  ;;  %v17858_v3 = vmov 0.0  }
  0x59   :  { %13443 = vmatmul.mubr.f32.vlgmr.msra.gmra.mxu0 %v15486_v24  ;;  %13488 = vmatprep.subr.mxu1 %v15441_v4  ;;  %v15635_v24 = vand.u32 4294901760, %v118_v19 }
  0x5a   :  { %13471 = vmatpush3.msra.mxu0 %v15483_v23  ;;  %13445 = vmatprep.mubr.f32.mxu0 %v15492_v26  ;;  %v15633_v23 = vsub.f32 %v119_v12, %v15616_v17  ;;  %v15642_v26 = vand.u32 4294901760, %v1029_v21 }
  0x5b   :  { %13472 = vmatprep.subr.mxu0 %v15489_v25  ;;  %13462 = vmatmul.mubr.f32.gmra.mxu1 %v255_v36  ;;  %v15650_v31 = vsub.f32 %v118_v19, %v15635_v24 }
  0x5c   :  { %13473 = vmatpush3.msra.mxu0 %v15489_v25  ;;  %13464 = vmatprep.mubr.f32.mxu1 %v265_v47 }
  0x5d   :  { %13446 = vmatmul.mubr.f32.gmra.mxu0 %v15497_v28  ;;  %13502 = vmatprep.subr.mxu0 %v17858_v3  ;;  %v15647_v28 = vand.u32 4294901760, %v15633_v23  ;;  %v15667_v34 = vand.u32 4294901760, %v15650_v31 }
  0x5e   :  { %13448 = vmatprep.mubr.f32.mxu0 %v15513_v37  ;;  %13489 = vmatpush3.msra.mxu1 %v15441_v4  ;;  %v920_v4 = vsel %vm918_vm1, %v916_v13, 0 }
  0x5f   :  { %13513 = vmatprep.subr.mxu1 %v17858_v3  ;;  %13465 = vmatmul.mubr.f32.gmra.mxu1 %v275_v48  ;;  %v15638_v25 = vand.u32 4294901760, %v920_v4  ;;  %v1043_v33 = vsub.f32 %v15633_v23, %v15647_v28  ;;  %v1050_v35 = vsub.f32 %v15650_v31, %v15667_v34 }
  0x60   :  { %13467 = vmatprep.mubr.f32.mxu1 %v285_v61 }
  0x61   :  { %13449 = vmatmul.mubr.f32.gmra.mxu0 %v15516_v38  ;;  %v15654_v32 = vsub.f32 %v920_v4, %v15638_v25 }
  0x62   :  { %13451 = vmatprep.mubr.f32.mxu0 %v15548_v59 }
  0x63   :  { %13468 = vmatmul.mubr.f32.gmra.mxu1 %v295_v63 }
  0x64   :  { %13490 = vmatprep.mubr.f32.mxu1 %v15453_v9 }
  0x65   :  { %13452 = vmatmul.mubr.f32.gmra.mxu0 %v15553_v60 }
  0x66   :  { %13474 = vmatprep.mubr.f32.mxu0 %v15453_v9  ;;  %v15662_v9 = vand.u32 4294901760, %v1036_v27 }
  0x67   :  { %13491 = vmatmul.mubr.f32.vlgmr.msra.gmra.mxu1 %v15466_v16 }
  0x68   :  { %13514 = vmatpush3.msra.mxu1 %v15642_v26  ;;  %13493 = vmatprep.mubr.f32.mxu1 %v15471_v18 }
  0x69   :  { %13475 = vmatmul.mubr.f32.vlgmr.msra.gmra.mxu0 %v15466_v16  ;;  %13515 = vmatprep.subr.mxu1 %v17858_v3  ;;  %v993_v16 = vand.u32 4294901760, %v15654_v32 }
  0x6a   :  { %13503 = vmatpush3.msra.mxu0 %v15578_v7  ;;  %13477 = vmatprep.mubr.f32.mxu0 %v15471_v18  ;;  %v15678_v18 = vand.u32 4294901760, %v1043_v33 }
  0x6b   :  { %13504 = vmatprep.subr.mxu0 %v17858_v3  ;;  %13494 = vmatmul.mubr.f32.gmra.mxu1 %v15478_v20  ;;  %v994_v36 = vsub.f32 %v15654_v32, %v993_v16 }
  0x6c   :  { %13505 = vmatpush3.msra.mxu0 %v15595_v11  ;;  %13516 = vmatpush3.msra.mxu1 %v15662_v9 }
  0x6d   :  { %13478 = vmatmul.mubr.f32.gmra.mxu0 %v15478_v20  ;;  %13506 = vmatprep.subr.mxu0 %v17858_v3  ;;  %v15691_v20 = vand.u32 4294901760, %v1050_v35 }
  0x6e   :  { %13480 = vmatprep.mubr.f32.mxu0 %v15499_v29  ;;  %13496 = vmatprep.mubr.f32.mxu1 %v15499_v29  ;;  %v995_v29 = vand.u32 4294901760, %v994_v36 }
  0x6f   :  { %13517 = vmatprep.subr.mxu1 %v17858_v3  ;;  %13507 = vmatpush3.msra.mxu0 %v15616_v17 }
  0x70   :  { %13497 = vmatmul.mubr.f32.gmra.mxu1 %v15501_v30  ;;  %13508 = vmatprep.subr.mxu0 %v17858_v3 }
  0x71   :  { %13481 = vmatmul.mubr.f32.gmra.mxu0 %v15501_v30  ;;  %13518 = vmatpush3.msra.mxu1 %v15678_v18  ;;  %v15771_v30 = vld [vmem:[%s17844_s5] ss:$0 sm:$0xff] }
  0x72   :  { %13483 = vmatprep.mubr.f32.mxu0 %v15540_v54  ;;  %13499 = vmatprep.mubr.f32.mxu1 %v15540_v54 }
  0x73   :  { %13519 = vmatprep.subr.mxu1 %v17858_v3  ;;  %13509 = vmatpush3.msra.mxu0 %v15635_v24 }
  0x74   :  { %13500 = vmatmul.mubr.f32.gmra.mxu1 %v15545_v57  ;;  %13524 = vmatprep.subr.mxu0 %v17858_v3 }
  0x75   :  { %13484 = vmatmul.mubr.f32.gmra.mxu0 %v15545_v57  ;;  %13520 = vmatpush3.msra.mxu1 %v15691_v20 }
  0x76   :  { %13510 = vmatprep.mubr.msk.f32.mxu0 %vm15315_vm2, %v17858_v3  ;;  %13521 = vmatprep.mubr.msk.f32.mxu1 %vm15315_vm2, %v17858_v3 }
  0x77   :  { %13535 = vmatprep.subr.mxu1 %v17858_v3 }
  0x78   :  { %13522 = vmatmul.mubr.f32.vlgmr.msra.gmra.mxu1 %v15638_v25 }
  0x79   :  { %13511 = vmatmul.mubr.f32.vlgmr.msra.gmra.mxu0 %v995_v29  ;;  %13536 = vmatpush3.msra.mxu1 %v15578_v7 }
  0x7a   :  { %13525 = vmatpush3.msra.mxu0 %v15593_v10  ;;  %13532 = vmatprep.mubr.msk.f32.mxu0 %vm15315_vm2, %v17858_v3 }
  0x7b   :  { %13526 = vmatprep.subr.mxu0 %v17858_v3  ;;  %13537 = vmatprep.subr.mxu1 %v17858_v3 }
  0x7c   :  { %13527 = vmatpush3.msra.mxu0 %v15614_v15  ;;  %13538 = vmatpush3.msra.mxu1 %v15595_v11 }
  0x7d   :  { %13528 = vmatprep.subr.mxu0 %v17858_v3  ;;  %13539 = vmatprep.subr.mxu1 %v17858_v3 }
  0x7e   :  { %13529 = vmatpush3.msra.mxu0 %v15633_v23  ;;  %13540 = vmatpush3.msra.mxu1 %v15616_v17 }
  0x7f   :  { %13530 = vmatprep.subr.mxu0 %v17858_v3  ;;  %13541 = vmatprep.subr.mxu1 %v17858_v3 }
  0x80   :  { %13531 = vmatpush3.msra.mxu0 %v15650_v31  ;;  %13542 = vmatpush3.msra.mxu1 %v15635_v24 }
  0x81   :  { %13533 = vmatmul.mubr.f32.vlgmr.msra.gmra.mxu0 %v15654_v32  ;;  %13546 = vmatprep.subr.mxu0 %v17858_v3 }
  0x82   :  { %13543 = vmatprep.mubr.msk.f32.mxu1 %vm15315_vm2, %v17858_v3  ;;  %13547 = vmatpush3.msra.mxu0 %v15611_v14 }
  0x83   :  { %13544 = vmatmul.mubr.f32.vlgmr.msra.gmra.mxu1 %v993_v16  ;;  %13548 = vmatprep.subr.mxu0 %v17858_v3 }
  0x84   :  { %13557 = vmatprep.subr.mxu1 %v17858_v3  ;;  %13549 = vmatpush3.msra.mxu0 %v15630_v22 }
  0x85   :  { %13558 = vmatpush3.msra.mxu1 %v15578_v7  ;;  %13550 = vmatprep.subr.mxu0 %v17858_v3 }
  0x86   :  { %13559 = vmatprep.subr.mxu1 %v17858_v3  ;;  %13551 = vmatpush3.msra.mxu0 %v15647_v28 }
  0x87   :  { %13560 = vmatpush3.msra.mxu1 %v15595_v11  ;;  %13552 = vmatprep.subr.mxu0 %v17858_v3 }
  0x88   :  { %13561 = vmatprep.subr.mxu1 %v17858_v3  ;;  %13553 = vmatpush3.msra.mxu0 %v15667_v34 }
  0x89   :  { %13554 = vmatprep.mubr.msk.f32.mxu0 %vm15315_vm2, %v17858_v3  ;;  %13562 = vmatpush3.msra.mxu1 %v15616_v17 }
  0x8a   :  { %13555 = vmatmul.mubr.f32.vlgmr.msra.gmra.mxu0 %v15638_v25  ;;  %13563 = vmatprep.subr.mxu1 %v17858_v3 }
  0x8b   :  { %13564 = vmatpush3.msra.mxu1 %v15635_v24  ;;  %13565 = vmatprep.mubr.msk.f32.mxu1 %vm15315_vm2, %v17858_v3 }
  0x8c   :  { %13566 = vmatmul.mubr.f32.vlgmr.msra.gmra.mxu1 %v15638_v25  ;;  %13579 = vmatprep.subr.mxu1 %v17858_v3 }
  0x8d   :  { %13580 = vmatpush3.msra.mxu1 %v15642_v26  ;;  %13568 = vmatprep.subr.mxu0 %v17858_v3 }
  0x8e   :  { %13581 = vmatprep.subr.mxu1 %v17858_v3  ;;  %13587 = vmatprep.mubr.msk.f32.mxu1 %vm15315_vm2, %v17858_v3 }
  0x8f   :  { %13582 = vmatpush3.msra.mxu1 %v15662_v9  ;;  %13569 = vmatpush3.msra.mxu0 %v15578_v7 }
  0x90   :  { %13583 = vmatprep.subr.mxu1 %v17858_v3  ;;  %13570 = vmatprep.subr.mxu0 %v17858_v3 }
  0x91   :  { %13584 = vmatpush3.msra.mxu1 %v15678_v18  ;;  %13571 = vmatpush3.msra.mxu0 %v15595_v11 }
  0x92   :  { %13585 = vmatprep.subr.mxu1 %v17858_v3  ;;  %13572 = vmatprep.subr.mxu0 %v17858_v3 }
  0x93   :  { %13586 = vmatpush3.msra.mxu1 %v15691_v20  ;;  %13573 = vmatpush3.msra.mxu0 %v15616_v17 }
  0x94   :  { %13601 = vmatprep.subr.mxu1 %v17858_v3  ;;  %13574 = vmatprep.subr.mxu0 %v17858_v3 }
  0x95   :  { %13575 = vmatpush3.msra.mxu0 %v15635_v24  ;;  %13576 = vmatprep.mubr.msk.f32.mxu0 %vm15315_vm2, %v17858_v3 }
  0x96   :  { %13590 = vmatprep.subr.mxu0 %v17858_v3 }
 0x107   :  { %v13428_v40 = vpop.f32.mrf.mxu1 }
 0x109   :  { %v13412_v37 = vpop.f32.mrf.mxu0  ;;  %v15776_v43 = vpop.f32.mrf.mxu1 }
 0x10a   :  { %v240_v38 = vadd.f32 %v13412_v37, %v15771_v30 }
 0x10b   :  { %v15774_v39 = vpop.f32.mrf.mxu0  ;;  %v13431_v46 = vpop.f32.mrf.mxu1 }
 0x10c   :  { %v387_v41 = vadd.f32 %v13428_v40, %v240_v38 }
 0x10d   :  { %v13415_v42 = vpop.f32.mrf.mxu0  ;;  %v15781_v49 = vpop.f32.mrf.mxu1 }
 0x10e   :  { %v260_v44 = vadd.f32 %v13415_v42, %v15771_v30 }
 0x10f   :  { %v15779_v45 = vpop.f32.mrf.mxu0  ;;  %v13434_v52 = vpop.f32.mrf.mxu1 }
 0x110   :  { %v399_v47 = vadd.f32 %v13431_v46, %v260_v44 }
 0x111   :  { %v13418_v48 = vpop.f32.mrf.mxu0  ;;  %v15786_v55 = vpop.f32.mrf.mxu1 }
 0x112   :  { %v280_v50 = vadd.f32 %v13418_v48, %v15771_v30 }
 0x113   :  { %v15784_v51 = vpop.f32.mrf.mxu0  ;;  %v13437_v58 = vpop.f32.mrf.mxu1 }
 0x114   :  { %v411_v53 = vadd.f32 %v13434_v52, %v280_v50 }
 0x115   :  { %v13421_v54 = vpop.f32.mrf.mxu0  ;;  %v15791_v60 = vpop.f32.mrf.mxu1 }
 0x116   :  { %v300_v56 = vadd.f32 %v13421_v54, %v15771_v30 }
 0x117   :  { %v15789_v57 = vpop.f32.mrf.mxu0  ;;  %v13460_v0 = vpop.f32.mrf.mxu1 }
 0x118   :  { %v423_v59 = vadd.f32 %v13437_v58, %v300_v56 }
 0x119   :  { %v13444_v61 = vpop.f32.mrf.mxu0  ;;  %v622_v5 = vpop.f32.mrf.mxu1 }
 0x11a   :  { %v506_v62 = vadd.f32 %v13444_v61, %v387_v41 }
 0x11b   :  { %v498_v63 = vpop.f32.mrf.mxu0  ;;  %v13463_v12 = vpop.f32.mrf.mxu1 }
 0x11c   :  { %v631_v1 = vadd.f32 %v13460_v0, %v506_v62 }
 0x11d   :  { %v13447_v2 = vpop.f32.mrf.mxu0  ;;  %v15795_v4 = vpop.f32.mrf.mxu1 }
 0x11e   :  { %v520_v6 = vadd.f32 %v13447_v2, %v399_v47 }
 0x11f   :  { %v15793_v8 = vpop.f32.mrf.mxu0  ;;  %v13466_v27 = vpop.f32.mrf.mxu1 }
 0x120   :  { %v647_v13 = vadd.f32 %v13463_v12, %v520_v6 }
 0x121   :  { %v13450_v19 = vpop.f32.mrf.mxu0  ;;  %v15799_v16 = vpop.f32.mrf.mxu1 }
 0x122   :  { %v534_v21 = vadd.f32 %v13450_v19, %v411_v53 }
 0x123   :  { %v15797_v25 = vpop.f32.mrf.mxu0  ;;  %v13469_v29 = vpop.f32.mrf.mxu1 }
 0x124   :  { %v663_v32 = vadd.f32 %v13466_v27, %v534_v21 }
 0x125   :  { %v13453_v33 = vpop.f32.mrf.mxu0  ;;  %v15803_v38 = vpop.f32.mrf.mxu1 }
 0x126   :  { %v548_v35 = vadd.f32 %v13453_v33, %v423_v59 }
 0x127   :  { %v15801_v36 = vpop.f32.mrf.mxu0  ;;  %v13492_v44 = vpop.f32.mrf.mxu1 }
 0x128   :  { %v679_v37 = vadd.f32 %v13469_v29, %v548_v35  ;;  %v230_v29 = vadd.f32 %v15771_v30, %v15774_v39 }
 0x129   :  { %v13476_v40 = vpop.f32.mrf.mxu0  ;;  %v870_v48 = vpop.f32.mrf.mxu1 }
 0x12a   :  { %v762_v41 = vadd.f32 %v13476_v40, %v631_v1 }
 0x12b   :  { %v755_v42 = vpop.f32.mrf.mxu0  ;;  %v13495_v53 = vpop.f32.mrf.mxu1 }
 0x12c   :  { %v15805_v46 = vadd.f32 %v13492_v44, %v762_v41  ;;  %v381_v41 = vadd.f32 %v15776_v43, %v230_v29  ;;  %v917_v43 = vld [vmem:[#allocation6] sm:$0xff] }
 0x12d   :  { %v13479_v47 = vpop.f32.mrf.mxu0  ;;  %v15811_v58 = vpop.f32.mrf.mxu1 }
 0x12e   :  { %v774_v50 = vadd.f32 %v13479_v47, %v647_v13  ;;  %v499_v47 = vadd.f32 %v498_v63, %v381_v41 }
 0x12f   :  { %v15807_v52 = vpop.f32.mrf.mxu0 }
 0x130   :  { %v15809_v54 = vadd.f32 %v13495_v53, %v774_v50  ;;  %v13498_v62 = vpop.f32.mrf.mxu1 }
 0x131   :  { %v13482_v56 = vpop.f32.mrf.mxu0 }
 0x132   :  { %v786_v59 = vadd.f32 %v13482_v56, %v663_v32  ;;  %v15817_v2 = vpop.f32.mrf.mxu1 }
 0x133   :  { %v15813_v61 = vpop.f32.mrf.mxu0 }
 0x134   :  { %v15815_v0 = vadd.f32 %v13498_v62, %v786_v59  ;;  %v13501_v13 = vpop.f32.mrf.mxu1  ;;  %v623_v59 = vadd.f32 %v622_v5, %v499_v47 }
 0x135   :  { %v13485_v1 = vpop.f32.mrf.mxu0 }
 0x136   :  { %v798_v6 = vadd.f32 %v13485_v1, %v679_v37  ;;  %v15823_v21 = vpop.f32.mrf.mxu1  ;;  %v756_v62 = vadd.f32 %v755_v42, %v623_v59 }
 0x137   :  { %v15819_v12 = vpop.f32.mrf.mxu0  ;;  %17867 = vst [vmem:[#allocation22_spill] sm:$0xff] %v15823_v21 }
 0x138   :  { %17865 = vst [vmem:[#allocation20_spill] sm:$0xff] %v15819_v12  ;;  %v15821_v19 = vadd.f32 %v13501_v13, %v798_v6  ;;  %v1088_v35 = vpop.f32.mrf.mxu1 }
 0x139   :  { %v997_v27 = vpop.f32.mrf.mxu0 }
 0x13a   :  { %17866 = vst [vmem:[#allocation21_spill] sm:$0xff] %v15821_v19  ;;  %v13523_v32 = vpop.f32.mrf.mxu1  ;;  %v1089_v37 = vadd.f32 %v1088_v35, %v997_v27 }
 0x13b   :  { %v13512_v33 = vpop.f32.mrf.mxu0  ;;  %v871_v32 = vadd.f32 %v870_v48, %v756_v62 }
 0x141   :  { %v1168_v40 = vpop.f32.mrf.mxu0 }
 0x142   :  { %v1169_v53 = vadd.f32 %v1168_v40, %v1089_v37 }
 0x143   :  { %v13534_v44 = vpop.f32.mrf.mxu0  ;;  %v1245_v50 = vpop.f32.mrf.mxu1 }
 0x144   :  { %v1246_v1 = vadd.f32 %v1245_v50, %v1169_v53  ;;  %v17868_v53 = vmov 0.0  }
 0x145   :  { %v13545_v56 = vpop.f32.mrf.mxu1 }
 0x14a   :  { %v1328_v6 = vpop.f32.mrf.mxu0 }
 0x14b   :  { %v1329_v13 = vadd.f32 %v1328_v6, %v1246_v1 }
 0x14c   :  { %v13556_v33 = vpop.f32.mrf.mxu0  ;;  %v1403_v3 = vpop.f32.mrf.mxu1 }
 0x14d   :  { %v1404_v19 = vadd.f32 %v1403_v3, %v1329_v13 }
 0x14e   :  { %v13567_v21 = vpop.f32.mrf.mxu1 }
 0x14f   :  { %v1407_v39 = vadd.f32 %v1404_v19, %v871_v32 }
 0x151   :  { %15028 = vtanh.f32 %v1407_v39  ;;  %v12570_v63 = vmul.f32 -1.442695, %v1407_v39 }
 0x153   :  { %15030 = vpow2.f32 %v12570_v63 }
 0x15e   :  { %v15029_v12 = vpop.eup %15028 }
 0x15f   :  { %1421 = vrot.lane.b32.xlu0 %v15029_v12, %s15316_s2 }
 0x160   :  { %v15031_v5 = vpop.eup %15030 }
 0x161   :  { %v1411_v42 = vadd.f32 1.0, %v15031_v5 }
 0x163   :  { %1416 = vrot.lane.b32.xlu0 %v917_v43, %s15317_s25  ;;  %15032 = vrcp.f32 %v1411_v42 }
 0x170   :  { %v15033_v27 = vpop.eup %15032 }
 0x1d1   :  { %v1422_v35 = vpop.permute.xlu0 %1421 }
 0x1d2   :  { %v1424_v48 = vmul.f32 %v15033_v27, %v1422_v35 }
 0x1d4   :  { %1426 = vrot.lane.b32.xlu1 %v1424_v48, %s15317_s25 }
 0x1d5   :  { %v1417_v3 = vpop.permute.xlu0 %1416 }
 0x1d6   :  { %v1419_v19 = vmul.f32 %v15033_v27, %v1417_v3 }
 0x246   :  { %v1427_v21 = vpop.permute.xlu1 %1426 }
 0x247   :  { %v15831_v29 = vadd.f32 %v1427_v21, %v1419_v19 }
 0x249   :  { %15034 = vtanh.f32 %v15831_v29 }
 0x256   :  { %v15035_v12 = vpop.eup %15034 }
 0x257   :  { %1432 = vrot.lane.b32.xlu1 %v15035_v12, %s15316_s2 }
 0x2c9   :  { %v1433_v40 = vpop.permute.xlu1 %1432 }
 0x2ca   :  { %v1435_v41 = vmul.f32 %v15033_v27, %v1433_v40 }
 0x2cc   :  { %1437 = vrot.lane.b32.xlu0 %v1435_v41, %s15317_s25 }
 0x33e   :  { %v1438_v44 = vpop.permute.xlu0 %1437 }
 0x33f   :  { %1440 = vst.msk [vmem:[#allocation2] sm:$0xff] %vm918_vm1, %v1438_v44  ;;  %v1441_v47 = vsel %vm918_vm1, %v1438_v44, 0 }
 0x340   :  { %v1512_v37 = vand.u32 4294901760, %v1441_v47 }
 0x342   :  { %v1513_v50 = vsub.f32 %v1441_v47, %v1512_v37  ;;  %13588 = vmatmul.mubr.f32.vlgmr.msra.gmra.mxu1 %v1512_v37 }
 0x343   :  { %13602 = vmatpush3.msra.mxu1 %v15578_v7  ;;  %13609 = vmatprep.mubr.msk.f32.mxu1 %vm15315_vm2, %v17868_v53 }
 0x344   :  { %v1514_v56 = vand.u32 4294901760, %v1513_v50  ;;  %13603 = vmatprep.subr.mxu1 %v17868_v53 }
 0x345   :  { %13604 = vmatpush3.msra.mxu1 %v15595_v11 }
 0x346   :  { %v1515_v59 = vsub.f32 %v1513_v50, %v1514_v56  ;;  %13605 = vmatprep.subr.mxu1 %v17868_v53 }
 0x347   :  { %13606 = vmatpush3.msra.mxu1 %v15616_v17 }
 0x348   :  { %13607 = vmatprep.subr.mxu1 %v17868_v53  ;;  %v1516_v62 = vand.u32 4294901760, %v1515_v59 }
 0x349   :  { %13608 = vmatpush3.msra.mxu1 %v15635_v24 }
 0x34a   :  { %13610 = vmatmul.mubr.f32.vlgmr.msra.gmra.mxu1 %v1514_v56  ;;  %13623 = vmatprep.subr.mxu1 %v17868_v53 }
 0x34b   :  { %13577 = vmatmul.mubr.f32.vlgmr.msra.gmra.mxu0 %v1516_v62  ;;  %13624 = vmatpush3.msra.mxu1 %v15578_v7 }
 0x34c   :  { %13591 = vmatpush3.msra.mxu0 %v15593_v10  ;;  %13625 = vmatprep.subr.mxu1 %v17868_v53 }
 0x34d   :  { %13592 = vmatprep.subr.mxu0 %v17868_v53  ;;  %13626 = vmatpush3.msra.mxu1 %v15595_v11 }
 0x34e   :  { %13593 = vmatpush3.msra.mxu0 %v15614_v15  ;;  %13627 = vmatprep.subr.mxu1 %v17868_v53 }
 0x34f   :  { %13594 = vmatprep.subr.mxu0 %v17868_v53  ;;  %13628 = vmatpush3.msra.mxu1 %v15616_v17 }
 0x350   :  { %13595 = vmatpush3.msra.mxu0 %v15633_v23  ;;  %13629 = vmatprep.subr.mxu1 %v17868_v53 }
 0x351   :  { %13596 = vmatprep.subr.mxu0 %v17868_v53  ;;  %13598 = vmatprep.mubr.msk.f32.mxu0 %vm15315_vm2, %v17868_v53 }
 0x352   :  { %13597 = vmatpush3.msra.mxu0 %v15650_v31  ;;  %13630 = vmatpush3.msra.mxu1 %v15635_v24 }
 0x353   :  { %13631 = vmatprep.mubr.msk.f32.mxu1 %vm15315_vm2, %v17868_v53  ;;  %13599 = vmatmul.mubr.f32.vlgmr.msra.gmra.mxu0 %v1513_v50 }
 0x354   :  { %13612 = vmatprep.subr.mxu0 %v17868_v53  ;;  %13632 = vmatmul.mubr.f32.vlgmr.msra.gmra.mxu1 %v1512_v37 }
 0x355   :  { %13613 = vmatpush3.msra.mxu0 %v15611_v14  ;;  %13620 = vmatprep.mubr.msk.f32.mxu0 %vm15315_vm2, %v17868_v53 }
 0x356   :  { %13614 = vmatprep.subr.mxu0 %v17868_v53  ;;  %13645 = vmatprep.subr.mxu1 %v17868_v53 }
 0x357   :  { %13615 = vmatpush3.msra.mxu0 %v15630_v22  ;;  %13646 = vmatpush3.msra.mxu1 %v15642_v26 }
 0x358   :  { %13616 = vmatprep.subr.mxu0 %v17868_v53  ;;  %13647 = vmatprep.subr.mxu1 %v17868_v53 }
 0x359   :  { %13617 = vmatpush3.msra.mxu0 %v15647_v28  ;;  %13648 = vmatpush3.msra.mxu1 %v15662_v9 }
 0x35a   :  { %13618 = vmatprep.subr.mxu0 %v17868_v53  ;;  %13649 = vmatprep.subr.mxu1 %v17868_v53 }
 0x35b   :  { %13619 = vmatpush3.msra.mxu0 %v15667_v34  ;;  %13650 = vmatpush3.msra.mxu1 %v15678_v18 }
 0x35c   :  { %13621 = vmatmul.mubr.f32.vlgmr.msra.gmra.mxu0 %v1512_v37  ;;  %13651 = vmatprep.subr.mxu1 %v17868_v53 }
 0x35d   :  { %13652 = vmatpush3.msra.mxu1 %v15691_v20  ;;  %13634 = vmatprep.subr.mxu0 %v17868_v53 }
 0x35e   :  { %13653 = vmatprep.mubr.msk.f32.mxu1 %vm15315_vm2, %v17868_v53  ;;  %13667 = vmatprep.subr.mxu1 %v17868_v53 }
 0x35f   :  { %13635 = vmatpush3.msra.mxu0 %v15578_v7  ;;  %13642 = vmatprep.mubr.msk.f32.mxu0 %vm15315_vm2, %v17868_v53 }
 0x360   :  { %13636 = vmatprep.subr.mxu0 %v17868_v53 }
 0x361   :  { %13637 = vmatpush3.msra.mxu0 %v15595_v11 }
 0x362   :  { %13638 = vmatprep.subr.mxu0 %v17868_v53 }
 0x363   :  { %13639 = vmatpush3.msra.mxu0 %v15616_v17 }
 0x364   :  { %13640 = vmatprep.subr.mxu0 %v17868_v53 }
 0x365   :  { %13641 = vmatpush3.msra.mxu0 %v15635_v24 }
 0x366   :  { %13656 = vmatprep.subr.mxu0 %v17868_v53 }
 0x402   :  { %v1609_v1 = vpop.f32.mrf.mxu1 }
 0x404   :  { %v13589_v6 = vpop.f32.mrf.mxu1 }
 0x40a   :  { %v1766_v13 = vpop.f32.mrf.mxu1 }
 0x40b   :  { %v1518_v33 = vpop.f32.mrf.mxu0 }
 0x40c   :  { %v13611_v32 = vpop.f32.mrf.mxu1  ;;  %v1610_v5 = vadd.f32 %v1609_v1, %v1518_v33 }
 0x40d   :  { %v13578_v39 = vpop.f32.mrf.mxu0 }
 0x413   :  { %v1689_v43 = vpop.f32.mrf.mxu0 }
 0x414   :  { %v1924_v63 = vpop.f32.mrf.mxu1  ;;  %v1690_v35 = vadd.f32 %v1689_v43, %v1610_v5 }
 0x415   :  { %v13600_v42 = vpop.f32.mrf.mxu0 }
 0x416   :  { %v13633_v27 = vpop.f32.mrf.mxu1  ;;  %v1767_v48 = vadd.f32 %v1766_v13, %v1690_v35 }
 0x41c   :  { %v1849_v3 = vpop.f32.mrf.mxu0 }
 0x41d   :  { %v1850_v19 = vadd.f32 %v1849_v3, %v1767_v48 }
 0x41e   :  { %v13622_v21 = vpop.f32.mrf.mxu0 }
 0x41f   :  { %v1925_v12 = vadd.f32 %v1924_v63, %v1850_v19 }
 0x421   :  { %v1928_v40 = vadd.f32 %v1925_v12, %v15805_v46  ;;  %v250_v12 = vadd.f32 %v15771_v30, %v15779_v45 }
 0x423   :  { %15036 = vtanh.f32 %v1928_v40  ;;  %v12571_v44 = vmul.f32 -1.442695, %v1928_v40  ;;  %v393_v40 = vadd.f32 %v15781_v49, %v250_v12 }
 0x425   :  { %15038 = vpow2.f32 %v12571_v44 }
 0x430   :  { %v15037_v41 = vpop.eup %15036 }
 0x431   :  { %1938 = vrot.lane.b32.xlu1 %v15037_v41, %s15316_s2 }
 0x432   :  { %v15039_v47 = vpop.eup %15038 }
 0x433   :  { %v1932_v37 = vadd.f32 1.0, %v15039_v47  ;;  %v513_v47 = vadd.f32 %v15793_v8, %v393_v40 }
 0x435   :  { %15040 = vrcp.f32 %v1932_v37 }
 0x442   :  { %v15041_v50 = vpop.eup %15040 }
 0x443   :  { %v1936_v62 = vmul.f32 %v15041_v50, %v15831_v29 }
 0x4a3   :  { %v1939_v56 = vpop.permute.xlu1 %1938 }
 0x4a4   :  { %v1941_v59 = vmul.f32 %v15041_v50, %v1939_v56 }
 0x4a6   :  { %1943 = vrot.lane.b32.xlu0 %v1941_v59, %s15317_s25 }
 0x518   :  { %v1944_v1 = vpop.permute.xlu0 %1943 }
 0x519   :  { %v15902_v6 = vadd.f32 %v1944_v1, %v1936_v62  ;;  %v639_v62 = vadd.f32 %v15795_v4, %v513_v47 }
 0x51b   :  { %15042 = vtanh.f32 %v15902_v6  ;;  %v768_v1 = vadd.f32 %v15807_v52, %v639_v62 }
 0x51d   :  { %v883_v30 = vadd.f32 %v15811_v58, %v768_v1 }
 0x528   :  { %v15043_v46 = vpop.eup %15042 }
 0x529   :  { %1949 = vrot.lane.b32.xlu1 %v15043_v46, %s15316_s2 }
 0x59b   :  { %v1950_v13 = vpop.permute.xlu1 %1949 }
 0x59c   :  { %v1952_v33 = vmul.f32 %v15041_v50, %v1950_v13 }
 0x59e   :  { %1954 = vrot.lane.b32.xlu0 %v1952_v33, %s15317_s25 }
 0x610   :  { %v1955_v32 = vpop.permute.xlu0 %1954 }
 0x611   :  { %1957 = vst.msk [vmem:[#allocation2 + $0x8] sm:$0xff] %vm918_vm1, %v1955_v32  ;;  %v1958_v39 = vsel %vm918_vm1, %v1955_v32, 0 }
 0x612   :  { %v2029_v43 = vand.u32 4294901760, %v1958_v39 }
 0x614   :  { %v2030_v63 = vsub.f32 %v1958_v39, %v2029_v43  ;;  %13654 = vmatmul.mubr.f32.vlgmr.msra.gmra.mxu1 %v2029_v43 }
 0x615   :  { %13668 = vmatpush3.msra.mxu1 %v15578_v7  ;;  %13675 = vmatprep.mubr.msk.f32.mxu1 %vm15315_vm2, %v17868_v53 }
 0x616   :  { %v2031_v29 = vand.u32 4294901760, %v2030_v63  ;;  %13669 = vmatprep.subr.mxu1 %v17868_v53 }
 0x617   :  { %13670 = vmatpush3.msra.mxu1 %v15595_v11 }
 0x618   :  { %v2032_v5 = vsub.f32 %v2030_v63, %v2031_v29  ;;  %13671 = vmatprep.subr.mxu1 %v17868_v53 }
 0x619   :  { %13672 = vmatpush3.msra.mxu1 %v15616_v17 }
 0x61a   :  { %13673 = vmatprep.subr.mxu1 %v17868_v53  ;;  %v2033_v42 = vand.u32 4294901760, %v2032_v5 }
 0x61b   :  { %13674 = vmatpush3.msra.mxu1 %v15635_v24 }
 0x61c   :  { %13676 = vmatmul.mubr.f32.vlgmr.msra.gmra.mxu1 %v2031_v29  ;;  %13689 = vmatprep.subr.mxu1 %v17868_v53 }
 0x61d   :  { %13643 = vmatmul.mubr.f32.vlgmr.msra.gmra.mxu0 %v2033_v42  ;;  %13690 = vmatpush3.msra.mxu1 %v15578_v7 }
 0x61e   :  { %13657 = vmatpush3.msra.mxu0 %v15593_v10  ;;  %13691 = vmatprep.subr.mxu1 %v17868_v53 }
 0x61f   :  { %13658 = vmatprep.subr.mxu0 %v17868_v53  ;;  %13692 = vmatpush3.msra.mxu1 %v15595_v11 }
 0x620   :  { %13659 = vmatpush3.msra.mxu0 %v15614_v15  ;;  %13693 = vmatprep.subr.mxu1 %v17868_v53 }
 0x621   :  { %13660 = vmatprep.subr.mxu0 %v17868_v53  ;;  %13694 = vmatpush3.msra.mxu1 %v15616_v17 }
 0x622   :  { %13661 = vmatpush3.msra.mxu0 %v15633_v23  ;;  %13695 = vmatprep.subr.mxu1 %v17868_v53 }
 0x623   :  { %13662 = vmatprep.subr.mxu0 %v17868_v53  ;;  %13664 = vmatprep.mubr.msk.f32.mxu0 %vm15315_vm2, %v17868_v53 }
 0x624   :  { %13663 = vmatpush3.msra.mxu0 %v15650_v31  ;;  %13696 = vmatpush3.msra.mxu1 %v15635_v24 }
 0x625   :  { %13697 = vmatprep.mubr.msk.f32.mxu1 %vm15315_vm2, %v17868_v53  ;;  %13665 = vmatmul.mubr.f32.vlgmr.msra.gmra.mxu0 %v2030_v63 }
 0x626   :  { %13678 = vmatprep.subr.mxu0 %v17868_v53  ;;  %13698 = vmatmul.mubr.f32.vlgmr.msra.gmra.mxu1 %v2029_v43 }
 0x627   :  { %13679 = vmatpush3.msra.mxu0 %v15611_v14  ;;  %13686 = vmatprep.mubr.msk.f32.mxu0 %vm15315_vm2, %v17868_v53 }
 0x628   :  { %13680 = vmatprep.subr.mxu0 %v17868_v53  ;;  %13711 = vmatprep.subr.mxu1 %v17868_v53 }
 0x629   :  { %13681 = vmatpush3.msra.mxu0 %v15630_v22  ;;  %13712 = vmatpush3.msra.mxu1 %v15642_v26 }
 0x62a   :  { %13682 = vmatprep.subr.mxu0 %v17868_v53  ;;  %13713 = vmatprep.subr.mxu1 %v17868_v53 }
 0x62b   :  { %13683 = vmatpush3.msra.mxu0 %v15647_v28  ;;  %13714 = vmatpush3.msra.mxu1 %v15662_v9 }
 0x62c   :  { %13684 = vmatprep.subr.mxu0 %v17868_v53  ;;  %13715 = vmatprep.subr.mxu1 %v17868_v53 }
 0x62d   :  { %13685 = vmatpush3.msra.mxu0 %v15667_v34  ;;  %13716 = vmatpush3.msra.mxu1 %v15678_v18 }
 0x62e   :  { %13687 = vmatmul.mubr.f32.vlgmr.msra.gmra.mxu0 %v2029_v43  ;;  %13717 = vmatprep.subr.mxu1 %v17868_v53 }
 0x62f   :  { %13718 = vmatpush3.msra.mxu1 %v15691_v20  ;;  %13700 = vmatprep.subr.mxu0 %v17868_v53 }
 0x630   :  { %13719 = vmatprep.mubr.msk.f32.mxu1 %vm15315_vm2, %v17868_v53  ;;  %13733 = vmatprep.subr.mxu1 %v17868_v53 }
 0x631   :  { %13701 = vmatpush3.msra.mxu0 %v15578_v7  ;;  %13708 = vmatprep.mubr.msk.f32.mxu0 %vm15315_vm2, %v17868_v53 }
 0x632   :  { %13702 = vmatprep.subr.mxu0 %v17868_v53 }
 0x633   :  { %13703 = vmatpush3.msra.mxu0 %v15595_v11 }
 0x634   :  { %13704 = vmatprep.subr.mxu0 %v17868_v53 }
 0x635   :  { %13705 = vmatpush3.msra.mxu0 %v15616_v17 }
 0x636   :  { %13706 = vmatprep.subr.mxu0 %v17868_v53 }
 0x637   :  { %13707 = vmatpush3.msra.mxu0 %v15635_v24 }
 0x638   :  { %13722 = vmatprep.subr.mxu0 %v17868_v53 }
 0x6d4   :  { %v2126_v27 = vpop.f32.mrf.mxu1 }
 0x6d6   :  { %v13655_v35 = vpop.f32.mrf.mxu1 }
 0x6dc   :  { %v2283_v48 = vpop.f32.mrf.mxu1 }
 0x6dd   :  { %v2035_v3 = vpop.f32.mrf.mxu0 }
 0x6de   :  { %v13677_v19 = vpop.f32.mrf.mxu1  ;;  %v2127_v37 = vadd.f32 %v2126_v27, %v2035_v3 }
 0x6df   :  { %v13644_v21 = vpop.f32.mrf.mxu0 }
 0x6e5   :  { %v2206_v41 = vpop.f32.mrf.mxu0 }
 0x6e6   :  { %v2441_v44 = vpop.f32.mrf.mxu1  ;;  %v2207_v59 = vadd.f32 %v2206_v41, %v2127_v37 }
 0x6e7   :  { %v13666_v50 = vpop.f32.mrf.mxu0 }
 0x6e8   :  { %v13699_v56 = vpop.f32.mrf.mxu1  ;;  %v2284_v46 = vadd.f32 %v2283_v48, %v2207_v59 }
 0x6ee   :  { %v2366_v13 = vpop.f32.mrf.mxu0 }
 0x6ef   :  { %v2367_v33 = vadd.f32 %v2366_v13, %v2284_v46 }
 0x6f0   :  { %v13688_v32 = vpop.f32.mrf.mxu0 }
 0x6f1   :  { %v2442_v45 = vadd.f32 %v2441_v44, %v2367_v33 }
 0x6f3   :  { %v2445_v49 = vadd.f32 %v2442_v45, %v883_v30 }
 0x6f5   :  { %15044 = vtanh.f32 %v2445_v49  ;;  %v12572_v8 = vmul.f32 -1.442695, %v2445_v49 }
 0x6f7   :  { %15046 = vpow2.f32 %v12572_v8 }
 0x702   :  { %v15045_v39 = vpop.eup %15044 }
 0x703   :  { %2455 = vrot.lane.b32.xlu1 %v15045_v39, %s15316_s2 }
 0x704   :  { %v15047_v43 = vpop.eup %15046 }
 0x705   :  { %v2449_v63 = vadd.f32 1.0, %v15047_v43 }
 0x707   :  { %15048 = vrcp.f32 %v2449_v63 }
 0x714   :  { %v15049_v4 = vpop.eup %15048 }
 0x715   :  { %v2453_v5 = vmul.f32 %v15049_v4, %v15902_v6 }
 0x775   :  { %v2456_v29 = vpop.permute.xlu1 %2455 }
 0x776   :  { %v2458_v52 = vmul.f32 %v15049_v4, %v2456_v29 }
 0x778   :  { %2460 = vrot.lane.b32.xlu0 %v2458_v52, %s15317_s25 }
 0x7ea   :  { %v2461_v42 = vpop.permute.xlu0 %2460 }
 0x7eb   :  { %v15979_v58 = vadd.f32 %v2461_v42, %v2453_v5 }
 0x7ed   :  { %15050 = vtanh.f32 %v15979_v58 }
 0x7fa   :  { %v15051_v27 = vpop.eup %15050 }
 0x7fb   :  { %2466 = vrot.lane.b32.xlu1 %v15051_v27, %s15316_s2 }
 0x86d   :  { %v2467_v35 = vpop.permute.xlu1 %2466 }
 0x86e   :  { %v2469_v48 = vmul.f32 %v15049_v4, %v2467_v35 }
 0x870   :  { %2471 = vrot.lane.b32.xlu0 %v2469_v48, %s15317_s25 }
 0x8e2   :  { %v2472_v3 = vpop.permute.xlu0 %2471 }
 0x8e3   :  { %2474 = vst.msk [vmem:[#allocation2 + $0x10] sm:$0xff] %vm918_vm1, %v2472_v3  ;;  %v2475_v19 = vsel %vm918_vm1, %v2472_v3, 0 }
 0x8e4   :  { %v2546_v21 = vand.u32 4294901760, %v2475_v19 }
 0x8e6   :  { %v2547_v12 = vsub.f32 %v2475_v19, %v2546_v21  ;;  %13720 = vmatmul.mubr.f32.vlgmr.msra.gmra.mxu1 %v2546_v21 }
 0x8e7   :  { %13734 = vmatpush3.msra.mxu1 %v15578_v7  ;;  %13741 = vmatprep.mubr.msk.f32.mxu1 %vm15315_vm2, %v17868_v53 }
 0x8e8   :  { %v2548_v6 = vand.u32 4294901760, %v2547_v12  ;;  %13735 = vmatprep.subr.mxu1 %v17868_v53 }
 0x8e9   :  { %13736 = vmatpush3.msra.mxu1 %v15595_v11 }
 0x8ea   :  { %v2549_v40 = vsub.f32 %v2547_v12, %v2548_v6  ;;  %13737 = vmatprep.subr.mxu1 %v17868_v53 }
 0x8eb   :  { %13738 = vmatpush3.msra.mxu1 %v15616_v17 }
 0x8ec   :  { %13739 = vmatprep.subr.mxu1 %v17868_v53  ;;  %v2550_v41 = vand.u32 4294901760, %v2549_v40 }
 0x8ed   :  { %13740 = vmatpush3.msra.mxu1 %v15635_v24 }
 0x8ee   :  { %13742 = vmatmul.mubr.f32.vlgmr.msra.gmra.mxu1 %v2548_v6  ;;  %13755 = vmatprep.subr.mxu1 %v17868_v53 }
 0x8ef   :  { %13709 = vmatmul.mubr.f32.vlgmr.msra.gmra.mxu0 %v2550_v41  ;;  %13756 = vmatpush3.msra.mxu1 %v15578_v7 }
 0x8f0   :  { %13723 = vmatpush3.msra.mxu0 %v15593_v10  ;;  %13757 = vmatprep.subr.mxu1 %v17868_v53 }
 0x8f1   :  { %13724 = vmatprep.subr.mxu0 %v17868_v53  ;;  %13758 = vmatpush3.msra.mxu1 %v15595_v11 }
 0x8f2   :  { %13725 = vmatpush3.msra.mxu0 %v15614_v15  ;;  %13759 = vmatprep.subr.mxu1 %v17868_v53 }
 0x8f3   :  { %13726 = vmatprep.subr.mxu0 %v17868_v53  ;;  %13760 = vmatpush3.msra.mxu1 %v15616_v17 }
 0x8f4   :  { %13727 = vmatpush3.msra.mxu0 %v15633_v23  ;;  %13761 = vmatprep.subr.mxu1 %v17868_v53 }
 0x8f5   :  { %13728 = vmatprep.subr.mxu0 %v17868_v53  ;;  %13730 = vmatprep.mubr.msk.f32.mxu0 %vm15315_vm2, %v17868_v53 }
 0x8f6   :  { %13729 = vmatpush3.msra.mxu0 %v15650_v31  ;;  %13762 = vmatpush3.msra.mxu1 %v15635_v24 }
 0x8f7   :  { %13763 = vmatprep.mubr.msk.f32.mxu1 %vm15315_vm2, %v17868_v53  ;;  %13731 = vmatmul.mubr.f32.vlgmr.msra.gmra.mxu0 %v2547_v12 }
 0x8f8   :  { %13744 = vmatprep.subr.mxu0 %v17868_v53  ;;  %13764 = vmatmul.mubr.f32.vlgmr.msra.gmra.mxu1 %v2546_v21 }
 0x8f9   :  { %13745 = vmatpush3.msra.mxu0 %v15611_v14  ;;  %13752 = vmatprep.mubr.msk.f32.mxu0 %vm15315_vm2, %v17868_v53 }
 0x8fa   :  { %13746 = vmatprep.subr.mxu0 %v17868_v53  ;;  %13777 = vmatprep.subr.mxu1 %v17868_v53 }
 0x8fb   :  { %13747 = vmatpush3.msra.mxu0 %v15630_v22  ;;  %13778 = vmatpush3.msra.mxu1 %v15642_v26 }
 0x8fc   :  { %13748 = vmatprep.subr.mxu0 %v17868_v53  ;;  %13779 = vmatprep.subr.mxu1 %v17868_v53 }
 0x8fd   :  { %13749 = vmatpush3.msra.mxu0 %v15647_v28  ;;  %13780 = vmatpush3.msra.mxu1 %v15662_v9 }
 0x8fe   :  { %13750 = vmatprep.subr.mxu0 %v17868_v53  ;;  %13781 = vmatprep.subr.mxu1 %v17868_v53 }
 0x8ff   :  { %13751 = vmatpush3.msra.mxu0 %v15667_v34  ;;  %13782 = vmatpush3.msra.mxu1 %v15678_v18 }
 0x900   :  { %13753 = vmatmul.mubr.f32.vlgmr.msra.gmra.mxu0 %v2546_v21  ;;  %13783 = vmatprep.subr.mxu1 %v17868_v53 }
 0x901   :  { %13784 = vmatpush3.msra.mxu1 %v15691_v20  ;;  %13766 = vmatprep.subr.mxu0 %v17868_v53 }
 0x902   :  { %13785 = vmatprep.mubr.msk.f32.mxu1 %vm15315_vm2, %v17868_v53  ;;  %13799 = vmatprep.subr.mxu1 %v17868_v53 }
 0x903   :  { %13767 = vmatpush3.msra.mxu0 %v15578_v7  ;;  %13774 = vmatprep.mubr.msk.f32.mxu0 %vm15315_vm2, %v17868_v53 }
 0x904   :  { %13768 = vmatprep.subr.mxu0 %v17868_v53 }
 0x905   :  { %13769 = vmatpush3.msra.mxu0 %v15595_v11 }
 0x906   :  { %13770 = vmatprep.subr.mxu0 %v17868_v53 }
 0x907   :  { %13771 = vmatpush3.msra.mxu0 %v15616_v17 }
 0x908   :  { %13772 = vmatprep.subr.mxu0 %v17868_v53 }
 0x909   :  { %13773 = vmatpush3.msra.mxu0 %v15635_v24 }
 0x90a   :  { %13788 = vmatprep.subr.mxu0 %v17868_v53 }
 0x9a6   :  { %v2643_v44 = vpop.f32.mrf.mxu1 }
 0x9a8   :  { %v13721_v47 = vpop.f32.mrf.mxu1 }
 0x9ae   :  { %v2800_v37 = vpop.f32.mrf.mxu1 }
 0x9af   :  { %v2552_v50 = vpop.f32.mrf.mxu0 }
 0x9b0   :  { %v13743_v56 = vpop.f32.mrf.mxu1  ;;  %v2644_v46 = vadd.f32 %v2643_v44, %v2552_v50 }
 0x9b1   :  { %v13710_v59 = vpop.f32.mrf.mxu0 }
 0x9b7   :  { %v2723_v62 = vpop.f32.mrf.mxu0 }
 0x9b8   :  { %v2958_v1 = vpop.f32.mrf.mxu1  ;;  %v2724_v32 = vadd.f32 %v2723_v62, %v2644_v46  ;;  %v16120_v46 = vld [vmem:[%s17844_s5] ss:$0 sm:$0xff] }
 0x9b9   :  { %v13732_v13 = vpop.f32.mrf.mxu0 }
 0x9ba   :  { %v13765_v33 = vpop.f32.mrf.mxu1  ;;  %v2801_v30 = vadd.f32 %v2800_v37, %v2724_v32  ;;  %v270_v13 = vadd.f32 %v16120_v46, %v15784_v51 }
 0x9bc   :  { %v405_v33 = vadd.f32 %v15786_v55, %v270_v13 }
 0x9c0   :  { %v2883_v45 = vpop.f32.mrf.mxu0 }
 0x9c1   :  { %v2884_v49 = vadd.f32 %v2883_v45, %v2801_v30  ;;  %v527_v45 = vadd.f32 %v15797_v25, %v405_v33 }
 0x9c2   :  { %v13754_v39 = vpop.f32.mrf.mxu0 }
 0x9c3   :  { %v2959_v8 = vadd.f32 %v2958_v1, %v2884_v49 }
 0x9c5   :  { %v2962_v43 = vadd.f32 %v2959_v8, %v15809_v54 }
 0x9c7   :  { %15052 = vtanh.f32 %v2962_v43  ;;  %v12573_v4 = vmul.f32 -1.442695, %v2962_v43 }
 0x9c9   :  { %15054 = vpow2.f32 %v12573_v4 }
 0x9d4   :  { %v15053_v63 = vpop.eup %15052 }
 0x9d5   :  { %2972 = vrot.lane.b32.xlu1 %v15053_v63, %s15316_s2  ;;  %v655_v63 = vadd.f32 %v15799_v16, %v527_v45 }
 0x9d6   :  { %v15055_v29 = vpop.eup %15054 }
 0x9d7   :  { %v2966_v52 = vadd.f32 1.0, %v15055_v29  ;;  %v780_v4 = vadd.f32 %v15813_v61, %v655_v63 }
 0x9d9   :  { %15056 = vrcp.f32 %v2966_v52  ;;  %v895_v51 = vadd.f32 %v15817_v2, %v780_v4 }
 0x9e6   :  { %v15057_v5 = vpop.eup %15056 }
 0x9e7   :  { %v2970_v35 = vmul.f32 %v15057_v5, %v15979_v58 }
 0xa47   :  { %v2973_v42 = vpop.permute.xlu1 %2972 }
 0xa48   :  { %v2975_v27 = vmul.f32 %v15057_v5, %v2973_v42 }
 0xa4a   :  { %2977 = vrot.lane.b32.xlu0 %v2975_v27, %s15317_s25 }
 0xabc   :  { %v2978_v48 = vpop.permute.xlu0 %2977 }
 0xabd   :  { %v16050_v3 = vadd.f32 %v2978_v48, %v2970_v35 }
 0xabf   :  { %15058 = vtanh.f32 %v16050_v3 }
 0xacc   :  { %v15059_v54 = vpop.eup %15058 }
 0xacd   :  { %2983 = vrot.lane.b32.xlu1 %v15059_v54, %s15316_s2 }
 0xb3f   :  { %v2984_v19 = vpop.permute.xlu1 %2983 }
 0xb40   :  { %v2986_v21 = vmul.f32 %v15057_v5, %v2984_v19 }
 0xb42   :  { %2988 = vrot.lane.b32.xlu0 %v2986_v21, %s15317_s25 }
 0xbb4   :  { %v2989_v12 = vpop.permute.xlu0 %2988 }
 0xbb5   :  { %2991 = vst.msk [vmem:[#allocation2 + $0x18] sm:$0xff] %vm918_vm1, %v2989_v12  ;;  %v2992_v6 = vsel %vm918_vm1, %v2989_v12, 0 }
 0xbb6   :  { %v3063_v40 = vand.u32 4294901760, %v2992_v6 }
 0xbb8   :  { %v3064_v41 = vsub.f32 %v2992_v6, %v3063_v40  ;;  %13786 = vmatmul.mubr.f32.vlgmr.msra.gmra.mxu1 %v3063_v40 }
 0xbb9   :  { %13800 = vmatpush3.msra.mxu1 %v15578_v7  ;;  %13807 = vmatprep.mubr.msk.f32.mxu1 %vm15315_vm2, %v17868_v53 }
 0xbba   :  { %v3065_v58 = vand.u32 4294901760, %v3064_v41  ;;  %13801 = vmatprep.subr.mxu1 %v17868_v53 }
 0xbbb   :  { %13802 = vmatpush3.msra.mxu1 %v15595_v11 }
 0xbbc   :  { %v3066_v44 = vsub.f32 %v3064_v41, %v3065_v58  ;;  %13803 = vmatprep.subr.mxu1 %v17868_v53 }
 0xbbd   :  { %13804 = vmatpush3.msra.mxu1 %v15616_v17 }
 0xbbe   :  { %13805 = vmatprep.subr.mxu1 %v17868_v53  ;;  %v3067_v47 = vand.u32 4294901760, %v3066_v44 }
 0xbbf   :  { %13806 = vmatpush3.msra.mxu1 %v15635_v24 }
 0xbc0   :  { %13808 = vmatmul.mubr.f32.vlgmr.msra.gmra.mxu1 %v3065_v58  ;;  %13821 = vmatprep.subr.mxu1 %v17868_v53 }
 0xbc1   :  { %13775 = vmatmul.mubr.f32.vlgmr.msra.gmra.mxu0 %v3067_v47  ;;  %13822 = vmatpush3.msra.mxu1 %v15578_v7 }
 0xbc2   :  { %13789 = vmatpush3.msra.mxu0 %v15593_v10  ;;  %13823 = vmatprep.subr.mxu1 %v17868_v53 }
 0xbc3   :  { %13790 = vmatprep.subr.mxu0 %v17868_v53  ;;  %13824 = vmatpush3.msra.mxu1 %v15595_v11 }
 0xbc4   :  { %13791 = vmatpush3.msra.mxu0 %v15614_v15  ;;  %13825 = vmatprep.subr.mxu1 %v17868_v53 }
 0xbc5   :  { %13792 = vmatprep.subr.mxu0 %v17868_v53  ;;  %13826 = vmatpush3.msra.mxu1 %v15616_v17 }
 0xbc6   :  { %13793 = vmatpush3.msra.mxu0 %v15633_v23  ;;  %13827 = vmatprep.subr.mxu1 %v17868_v53 }
 0xbc7   :  { %13794 = vmatprep.subr.mxu0 %v17868_v53  ;;  %13796 = vmatprep.mubr.msk.f32.mxu0 %vm15315_vm2, %v17868_v53 }
 0xbc8   :  { %13795 = vmatpush3.msra.mxu0 %v15650_v31  ;;  %13828 = vmatpush3.msra.mxu1 %v15635_v24 }
 0xbc9   :  { %13829 = vmatprep.mubr.msk.f32.mxu1 %vm15315_vm2, %v17868_v53  ;;  %13797 = vmatmul.mubr.f32.vlgmr.msra.gmra.mxu0 %v3064_v41 }
 0xbca   :  { %13810 = vmatprep.subr.mxu0 %v17868_v53  ;;  %13830 = vmatmul.mubr.f32.vlgmr.msra.gmra.mxu1 %v3063_v40 }
 0xbcb   :  { %13811 = vmatpush3.msra.mxu0 %v15611_v14  ;;  %13818 = vmatprep.mubr.msk.f32.mxu0 %vm15315_vm2, %v17868_v53 }
 0xbcc   :  { %13812 = vmatprep.subr.mxu0 %v17868_v53  ;;  %13843 = vmatprep.subr.mxu1 %v17868_v53 }
 0xbcd   :  { %13813 = vmatpush3.msra.mxu0 %v15630_v22  ;;  %13844 = vmatpush3.msra.mxu1 %v15642_v26 }
 0xbce   :  { %13814 = vmatprep.subr.mxu0 %v17868_v53  ;;  %13845 = vmatprep.subr.mxu1 %v17868_v53 }
 0xbcf   :  { %13815 = vmatpush3.msra.mxu0 %v15647_v28  ;;  %13846 = vmatpush3.msra.mxu1 %v15662_v9 }
 0xbd0   :  { %13816 = vmatprep.subr.mxu0 %v17868_v53  ;;  %13847 = vmatprep.subr.mxu1 %v17868_v53 }
 0xbd1   :  { %13817 = vmatpush3.msra.mxu0 %v15667_v34  ;;  %13848 = vmatpush3.msra.mxu1 %v15678_v18 }
 0xbd2   :  { %13819 = vmatmul.mubr.f32.vlgmr.msra.gmra.mxu0 %v3063_v40  ;;  %13849 = vmatprep.subr.mxu1 %v17868_v53 }
 0xbd3   :  { %13850 = vmatpush3.msra.mxu1 %v15691_v20  ;;  %13832 = vmatprep.subr.mxu0 %v17868_v53 }
 0xbd4   :  { %13851 = vmatprep.mubr.msk.f32.mxu1 %vm15315_vm2, %v17868_v53  ;;  %13865 = vmatprep.subr.mxu1 %v17868_v53 }
 0xbd5   :  { %13833 = vmatpush3.msra.mxu0 %v15578_v7  ;;  %13840 = vmatprep.mubr.msk.f32.mxu0 %vm15315_vm2, %v17868_v53 }
 0xbd6   :  { %13834 = vmatprep.subr.mxu0 %v17868_v53 }
 0xbd7   :  { %13835 = vmatpush3.msra.mxu0 %v15595_v11 }
 0xbd8   :  { %13836 = vmatprep.subr.mxu0 %v17868_v53 }
 0xbd9   :  { %13837 = vmatpush3.msra.mxu0 %v15616_v17 }
 0xbda   :  { %13838 = vmatprep.subr.mxu0 %v17868_v53 }
 0xbdb   :  { %13839 = vmatpush3.msra.mxu0 %v15635_v24 }
 0xbdc   :  { %13854 = vmatprep.subr.mxu0 %v17868_v53 }
 0xc78   :  { %v3160_v37 = vpop.f32.mrf.mxu1 }
 0xc7a   :  { %v13787_v50 = vpop.f32.mrf.mxu1 }
 0xc80   :  { %v3317_v56 = vpop.f32.mrf.mxu1 }
 0xc81   :  { %v3069_v59 = vpop.f32.mrf.mxu0 }
 0xc82   :  { %v13809_v62 = vpop.f32.mrf.mxu1  ;;  %v3161_v49 = vadd.f32 %v3160_v37, %v3069_v59 }
 0xc83   :  { %v13776_v1 = vpop.f32.mrf.mxu0 }
 0xc89   :  { %v3240_v32 = vpop.f32.mrf.mxu0 }
 0xc8a   :  { %v3475_v30 = vpop.f32.mrf.mxu1  ;;  %v3241_v43 = vadd.f32 %v3240_v32, %v3161_v49 }
 0xc8b   :  { %v13798_v39 = vpop.f32.mrf.mxu0 }
 0xc8c   :  { %v13831_v8 = vpop.f32.mrf.mxu1  ;;  %v3318_v29 = vadd.f32 %v3317_v56, %v3241_v43 }
 0xc92   :  { %v3400_v52 = vpop.f32.mrf.mxu0 }
 0xc93   :  { %v3401_v5 = vadd.f32 %v3400_v52, %v3318_v29 }
 0xc94   :  { %v13820_v42 = vpop.f32.mrf.mxu0 }
 0xc95   :  { %v3476_v27 = vadd.f32 %v3475_v30, %v3401_v5 }
 0xc97   :  { %v3479_v55 = vadd.f32 %v3476_v27, %v895_v51 }
 0xc99   :  { %15060 = vtanh.f32 %v3479_v55  ;;  %v12574_v25 = vmul.f32 -1.442695, %v3479_v55 }
 0xc9b   :  { %15062 = vpow2.f32 %v12574_v25 }
 0xca6   :  { %v15061_v35 = vpop.eup %15060 }
 0xca7   :  { %3489 = vrot.lane.b32.xlu1 %v15061_v35, %s15316_s2 }
 0xca8   :  { %v15063_v48 = vpop.eup %15062 }
 0xca9   :  { %v3483_v54 = vadd.f32 1.0, %v15063_v48 }
 0xcab   :  { %15064 = vrcp.f32 %v3483_v54 }
 0xcb8   :  { %v15065_v16 = vpop.eup %15064 }
 0xcb9   :  { %v3487_v21 = vmul.f32 %v15065_v16, %v16050_v3 }
 0xd19   :  { %v3490_v19 = vpop.permute.xlu1 %3489 }
 0xd1a   :  { %v3492_v61 = vmul.f32 %v15065_v16, %v3490_v19 }
 0xd1c   :  { %3494 = vrot.lane.b32.xlu0 %v3492_v61, %s15317_s25 }
 0xd8e   :  { %v3495_v12 = vpop.permute.xlu0 %3494 }
 0xd8f   :  { %v16132_v2 = vadd.f32 %v3495_v12, %v3487_v21 }
 0xd91   :  { %15066 = vtanh.f32 %v16132_v2 }
 0xd9e   :  { %v15067_v6 = vpop.eup %15066 }
 0xd9f   :  { %3500 = vrot.lane.b32.xlu1 %v15067_v6, %s15316_s2 }
 0xe11   :  { %v3501_v40 = vpop.permute.xlu1 %3500 }
 0xe12   :  { %v3503_v41 = vmul.f32 %v15065_v16, %v3501_v40 }
 0xe14   :  { %3505 = vrot.lane.b32.xlu0 %v3503_v41, %s15317_s25 }
 0xe86   :  { %v3506_v58 = vpop.permute.xlu0 %3505 }
 0xe87   :  { %3508 = vst.msk [vmem:[#allocation2 + $0x20] sm:$0xff] %vm918_vm1, %v3506_v58  ;;  %v3509_v44 = vsel %vm918_vm1, %v3506_v58, 0 }
 0xe88   :  { %v3580_v47 = vand.u32 4294901760, %v3509_v44 }
 0xe8a   :  { %v3581_v37 = vsub.f32 %v3509_v44, %v3580_v47  ;;  %13852 = vmatmul.mubr.f32.vlgmr.msra.gmra.mxu1 %v3580_v47 }
 0xe8b   :  { %13866 = vmatpush3.msra.mxu1 %v15578_v7  ;;  %13873 = vmatprep.mubr.msk.f32.mxu1 %vm15315_vm2, %v17868_v53 }
 0xe8c   :  { %v3582_v3 = vand.u32 4294901760, %v3581_v37  ;;  %13867 = vmatprep.subr.mxu1 %v17868_v53 }
 0xe8d   :  { %13868 = vmatpush3.msra.mxu1 %v15595_v11 }
 0xe8e   :  { %v3583_v50 = vsub.f32 %v3581_v37, %v3582_v3  ;;  %13869 = vmatprep.subr.mxu1 %v17868_v53 }
 0xe8f   :  { %13870 = vmatpush3.msra.mxu1 %v15616_v17 }
 0xe90   :  { %13871 = vmatprep.subr.mxu1 %v17868_v53  ;;  %v3584_v56 = vand.u32 4294901760, %v3583_v50  ;;  %v290_v50 = vadd.f32 %v16120_v46, %v15789_v57 }
 0xe91   :  { %13872 = vmatpush3.msra.mxu1 %v15635_v24 }
 0xe92   :  { %13874 = vmatmul.mubr.f32.vlgmr.msra.gmra.mxu1 %v3582_v3  ;;  %13887 = vmatprep.subr.mxu1 %v17868_v53 }
 0xe93   :  { %13841 = vmatmul.mubr.f32.vlgmr.msra.gmra.mxu0 %v3584_v56  ;;  %13888 = vmatpush3.msra.mxu1 %v15578_v7  ;;  %v417_v56 = vadd.f32 %v15791_v60, %v290_v50 }
 0xe94   :  { %13855 = vmatpush3.msra.mxu0 %v15593_v10  ;;  %13889 = vmatprep.subr.mxu1 %v17868_v53 }
 0xe95   :  { %13856 = vmatprep.subr.mxu0 %v17868_v53  ;;  %13890 = vmatpush3.msra.mxu1 %v15595_v11 }
 0xe96   :  { %13857 = vmatpush3.msra.mxu0 %v15614_v15  ;;  %13891 = vmatprep.subr.mxu1 %v17868_v53 }
 0xe97   :  { %13858 = vmatprep.subr.mxu0 %v17868_v53  ;;  %13892 = vmatpush3.msra.mxu1 %v15616_v17 }
 0xe98   :  { %13859 = vmatpush3.msra.mxu0 %v15633_v23  ;;  %13893 = vmatprep.subr.mxu1 %v17868_v53 }
 0xe99   :  { %13860 = vmatprep.subr.mxu0 %v17868_v53  ;;  %13862 = vmatprep.mubr.msk.f32.mxu0 %vm15315_vm2, %v17868_v53 }
 0xe9a   :  { %13861 = vmatpush3.msra.mxu0 %v15650_v31  ;;  %13894 = vmatpush3.msra.mxu1 %v15635_v24 }
 0xe9b   :  { %13895 = vmatprep.mubr.msk.f32.mxu1 %vm15315_vm2, %v17868_v53  ;;  %13863 = vmatmul.mubr.f32.vlgmr.msra.gmra.mxu0 %v3581_v37 }
 0xe9c   :  { %13876 = vmatprep.subr.mxu0 %v17868_v53  ;;  %13896 = vmatmul.mubr.f32.vlgmr.msra.gmra.mxu1 %v3580_v47 }
 0xe9d   :  { %13877 = vmatpush3.msra.mxu0 %v15611_v14  ;;  %13884 = vmatprep.mubr.msk.f32.mxu0 %vm15315_vm2, %v17868_v53 }
 0xe9e   :  { %13878 = vmatprep.subr.mxu0 %v17868_v53  ;;  %13909 = vmatprep.subr.mxu1 %v17868_v53 }
 0xe9f   :  { %13879 = vmatpush3.msra.mxu0 %v15630_v22  ;;  %13910 = vmatpush3.msra.mxu1 %v15642_v26 }
 0xea0   :  { %13880 = vmatprep.subr.mxu0 %v17868_v53  ;;  %13911 = vmatprep.subr.mxu1 %v17868_v53 }
 0xea1   :  { %13881 = vmatpush3.msra.mxu0 %v15647_v28  ;;  %13912 = vmatpush3.msra.mxu1 %v15662_v9 }
 0xea2   :  { %13882 = vmatprep.subr.mxu0 %v17868_v53  ;;  %13913 = vmatprep.subr.mxu1 %v17868_v53 }
 0xea3   :  { %13883 = vmatpush3.msra.mxu0 %v15667_v34  ;;  %13914 = vmatpush3.msra.mxu1 %v15678_v18 }
 0xea4   :  { %13885 = vmatmul.mubr.f32.vlgmr.msra.gmra.mxu0 %v3580_v47  ;;  %13915 = vmatprep.subr.mxu1 %v17868_v53 }
 0xea5   :  { %13916 = vmatpush3.msra.mxu1 %v15691_v20  ;;  %13898 = vmatprep.subr.mxu0 %v17868_v53 }
 0xea6   :  { %13917 = vmatprep.mubr.msk.f32.mxu1 %vm15315_vm2, %v17868_v53  ;;  %13931 = vmatprep.subr.mxu1 %v17868_v53 }
 0xea7   :  { %13899 = vmatpush3.msra.mxu0 %v15578_v7  ;;  %13906 = vmatprep.mubr.msk.f32.mxu0 %vm15315_vm2, %v17868_v53 }
 0xea8   :  { %13900 = vmatprep.subr.mxu0 %v17868_v53 }
 0xea9   :  { %13901 = vmatpush3.msra.mxu0 %v15595_v11 }
 0xeaa   :  { %13902 = vmatprep.subr.mxu0 %v17868_v53 }
 0xeab   :  { %13903 = vmatpush3.msra.mxu0 %v15616_v17 }
 0xeac   :  { %13904 = vmatprep.subr.mxu0 %v17868_v53 }
 0xead   :  { %13905 = vmatpush3.msra.mxu0 %v15635_v24 }
 0xeae   :  { %13920 = vmatprep.subr.mxu0 %v17868_v53 }
 0xf4a   :  { %v3677_v59 = vpop.f32.mrf.mxu1 }
 0xf4c   :  { %v13853_v62 = vpop.f32.mrf.mxu1 }
 0xf52   :  { %v3834_v1 = vpop.f32.mrf.mxu1 }
 0xf53   :  { %v3586_v13 = vpop.f32.mrf.mxu0 }
 0xf54   :  { %v13875_v33 = vpop.f32.mrf.mxu1  ;;  %v3678_v49 = vadd.f32 %v3677_v59, %v3586_v13 }
 0xf55   :  { %v13842_v32 = vpop.f32.mrf.mxu0 }
 0xf5b   :  { %v3757_v30 = vpop.f32.mrf.mxu0 }
 0xf5c   :  { %v3992_v45 = vpop.f32.mrf.mxu1  ;;  %v3758_v43 = vadd.f32 %v3757_v30, %v3678_v49  ;;  %v17869_v49 = vld [vmem:[#allocation20_spill] sm:$0xff] }
 0xf5d   :  { %v13864_v39 = vpop.f32.mrf.mxu0 }
 0xf5e   :  { %v13897_v8 = vpop.f32.mrf.mxu1  ;;  %v3835_v63 = vadd.f32 %v3834_v1, %v3758_v43  ;;  %v541_v1 = vadd.f32 %v15801_v36, %v417_v56 }
 0xf64   :  { %v3917_v4 = vpop.f32.mrf.mxu0 }
 0xf65   :  { %v3918_v29 = vadd.f32 %v3917_v4, %v3835_v63 }
 0xf66   :  { %v13886_v52 = vpop.f32.mrf.mxu0 }
 0xf67   :  { %v3993_v5 = vadd.f32 %v3992_v45, %v3918_v29  ;;  %v671_v45 = vadd.f32 %v15803_v38, %v541_v1  ;;  %v17870_v29 = vld [vmem:[#allocation22_spill] sm:$0xff] }
 0xf69   :  { %v3996_v42 = vadd.f32 %v3993_v5, %v15815_v0  ;;  %v792_v39 = vadd.f32 %v17869_v49, %v671_v45 }
 0xf6b   :  { %15068 = vtanh.f32 %v3996_v42  ;;  %v12575_v27 = vmul.f32 -1.442695, %v3996_v42  ;;  %v907_v57 = vadd.f32 %v17870_v29, %v792_v39  ;;  %v5069_v39 = vld [vmem:[#allocation2 + $0x18] sm:$0xff] }
 0xf6d   :  { %15070 = vpow2.f32 %v12575_v27 }
 0xf78   :  { %v15069_v51 = vpop.eup %15068 }
 0xf79   :  { %4006 = vrot.lane.b32.xlu1 %v15069_v51, %s15316_s2 }
 0xf7a   :  { %v15071_v55 = vpop.eup %15070 }
 0xf7b   :  { %v4000_v35 = vadd.f32 1.0, %v15071_v55 }
 0xf7d   :  { %15072 = vrcp.f32 %v4000_v35 }
 0xf8a   :  { %v15073_v25 = vpop.eup %15072 }
 0xf8b   :  { %v4004_v16 = vmul.f32 %v15073_v25, %v16132_v2 }
 0xfeb   :  { %v4007_v48 = vpop.permute.xlu1 %4006 }
 0xfec   :  { %v4009_v54 = vmul.f32 %v15073_v25, %v4007_v48 }
 0xfee   :  { %4011 = vrot.lane.b32.xlu0 %v4009_v54, %s15317_s25 }
0x1060   :  { %v4012_v19 = vpop.permute.xlu0 %4011 }
0x1061   :  { %v16203_v61 = vadd.f32 %v4012_v19, %v4004_v16 }
0x1063   :  { %15074 = vtanh.f32 %v16203_v61 }
0x1070   :  { %v15075_v0 = vpop.eup %15074 }
0x1071   :  { %4017 = vrot.lane.b32.xlu1 %v15075_v0, %s15316_s2  ;;  %v5081_v0 = vld [vmem:[%s17845_s6 + $0x18] sm:$0xff] }
0x10e3   :  { %v4018_v21 = vpop.permute.xlu1 %4017 }
0x10e4   :  { %v4020_v12 = vmul.f32 %v15073_v25, %v4018_v21 }
0x10e6   :  { %4022 = vrot.lane.b32.xlu0 %v4020_v12, %s15317_s25  ;;  %v5080_v12 = vld [vmem:[%s17845_s6 + $0x10] sm:$0xff] }
0x1158   :  { %v4023_v6 = vpop.permute.xlu0 %4022 }
0x1159   :  { %4025 = vst.msk [vmem:[#allocation2 + $0x28] sm:$0xff] %vm918_vm1, %v4023_v6  ;;  %v4026_v40 = vsel %vm918_vm1, %v4023_v6, 0  ;;  %v16295_v6 = vand.u32 4294901760, %v5081_v0 }
0x115a   :  { %v4097_v41 = vand.u32 4294901760, %v4026_v40 }
0x115c   :  { %v4098_v58 = vsub.f32 %v4026_v40, %v4097_v41  ;;  %13918 = vmatmul.mubr.f32.vlgmr.msra.gmra.mxu1 %v4097_v41 }
0x115d   :  { %13932 = vmatpush3.msra.mxu1 %v15578_v7  ;;  %13939 = vmatprep.mubr.msk.f32.mxu1 %vm15315_vm2, %v17868_v53 }
0x115e   :  { %v4099_v2 = vand.u32 4294901760, %v4098_v58  ;;  %13933 = vmatprep.subr.mxu1 %v17868_v53 }
0x115f   :  { %13934 = vmatpush3.msra.mxu1 %v15595_v11 }
0x1160   :  { %v4100_v44 = vsub.f32 %v4098_v58, %v4099_v2  ;;  %13935 = vmatprep.subr.mxu1 %v17868_v53 }
0x1161   :  { %13936 = vmatpush3.msra.mxu1 %v15616_v17 }
0x1162   :  { %13937 = vmatprep.subr.mxu1 %v17868_v53  ;;  %v4101_v47 = vand.u32 4294901760, %v4100_v44  ;;  %v5078_v44 = vld [vmem:[%s17845_s6] sm:$0xff] }
0x1163   :  { %13938 = vmatpush3.msra.mxu1 %v15635_v24 }
0x1164   :  { %13940 = vmatmul.mubr.f32.vlgmr.msra.gmra.mxu1 %v4099_v2  ;;  %13953 = vmatprep.subr.mxu1 %v17868_v53 }
0x1165   :  { %13907 = vmatmul.mubr.f32.vlgmr.msra.gmra.mxu0 %v4101_v47  ;;  %13954 = vmatpush3.msra.mxu1 %v15578_v7  ;;  %v16313_v47 = vsub.f32 %v5081_v0, %v16295_v6 }
0x1166   :  { %13921 = vmatpush3.msra.mxu0 %v15593_v10  ;;  %13955 = vmatprep.subr.mxu1 %v17868_v53 }
0x1167   :  { %13922 = vmatprep.subr.mxu0 %v17868_v53  ;;  %13956 = vmatpush3.msra.mxu1 %v15595_v11  ;;  %v16327_v50 = vand.u32 4294901760, %v16313_v47 }
0x1168   :  { %13923 = vmatpush3.msra.mxu0 %v15614_v15  ;;  %13957 = vmatprep.subr.mxu1 %v17868_v53 }
0x1169   :  { %13924 = vmatprep.subr.mxu0 %v17868_v53  ;;  %13958 = vmatpush3.msra.mxu1 %v15616_v17 }
0x116a   :  { %13925 = vmatpush3.msra.mxu0 %v15633_v23  ;;  %13959 = vmatprep.subr.mxu1 %v17868_v53 }
0x116b   :  { %13926 = vmatprep.subr.mxu0 %v17868_v53  ;;  %13928 = vmatprep.mubr.msk.f32.mxu0 %vm15315_vm2, %v17868_v53 }
0x116c   :  { %13927 = vmatpush3.msra.mxu0 %v15650_v31  ;;  %13960 = vmatpush3.msra.mxu1 %v15635_v24 }
0x116d   :  { %13961 = vmatprep.mubr.msk.f32.mxu1 %vm15315_vm2, %v17868_v53  ;;  %13929 = vmatmul.mubr.f32.vlgmr.msra.gmra.mxu0 %v4098_v58  ;;  %v16305_v58 = vand.u32 4294901760, %v5080_v12 }
0x116e   :  { %13942 = vmatprep.subr.mxu0 %v17868_v53  ;;  %13962 = vmatmul.mubr.f32.vlgmr.msra.gmra.mxu1 %v4097_v41 }
0x116f   :  { %13943 = vmatpush3.msra.mxu0 %v15611_v14  ;;  %13950 = vmatprep.mubr.msk.f32.mxu0 %vm15315_vm2, %v17868_v53 }
0x1170   :  { %13944 = vmatprep.subr.mxu0 %v17868_v53  ;;  %13975 = vmatprep.subr.mxu1 %v17868_v53 }
0x1171   :  { %13945 = vmatpush3.msra.mxu0 %v15630_v22  ;;  %13976 = vmatpush3.msra.mxu1 %v15642_v26 }
0x1172   :  { %13946 = vmatprep.subr.mxu0 %v17868_v53  ;;  %13977 = vmatprep.subr.mxu1 %v17868_v53 }
0x1173   :  { %13947 = vmatpush3.msra.mxu0 %v15647_v28  ;;  %13978 = vmatpush3.msra.mxu1 %v15662_v9 }
0x1174   :  { %13948 = vmatprep.subr.mxu0 %v17868_v53  ;;  %13979 = vmatprep.subr.mxu1 %v17868_v53 }
0x1175   :  { %13949 = vmatpush3.msra.mxu0 %v15667_v34  ;;  %13980 = vmatpush3.msra.mxu1 %v15678_v18 }
0x1176   :  { %13951 = vmatmul.mubr.f32.vlgmr.msra.gmra.mxu0 %v4097_v41  ;;  %13981 = vmatprep.subr.mxu1 %v17868_v53  ;;  %v5079_v41 = vld [vmem:[%s17845_s6 + $0x8] sm:$0xff] }
0x1177   :  { %13982 = vmatpush3.msra.mxu1 %v15691_v20  ;;  %13964 = vmatprep.subr.mxu0 %v17868_v53 }
0x1178   :  { %13983 = vmatprep.mubr.msk.f32.mxu1 %vm15315_vm2, %v17868_v53  ;;  %13997 = vmatprep.subr.mxu1 %v17868_v53 }
0x1179   :  { %13965 = vmatpush3.msra.mxu0 %v15578_v7  ;;  %13972 = vmatprep.mubr.msk.f32.mxu0 %vm15315_vm2, %v17868_v53 }
0x117a   :  { %13966 = vmatprep.subr.mxu0 %v17868_v53 }
0x117b   :  { %13967 = vmatpush3.msra.mxu0 %v15595_v11 }
0x117c   :  { %13968 = vmatprep.subr.mxu0 %v17868_v53 }
0x117d   :  { %13969 = vmatpush3.msra.mxu0 %v15616_v17 }
0x117e   :  { %13970 = vmatprep.subr.mxu0 %v17868_v53 }
0x117f   :  { %13971 = vmatpush3.msra.mxu0 %v15635_v24 }
0x1180   :  { %13986 = vmatprep.subr.mxu0 %v17868_v53 }
0x121c   :  { %v4194_v26 = vpop.f32.mrf.mxu1 }
0x121e   :  { %v13919_v9 = vpop.f32.mrf.mxu1 }
0x1224   :  { %v4351_v18 = vpop.f32.mrf.mxu1 }
0x1225   :  { %v4103_v20 = vpop.f32.mrf.mxu0 }
0x1226   :  { %v13941_v37 = vpop.f32.mrf.mxu1  ;;  %v4195_v13 = vadd.f32 %v4194_v26, %v4103_v20  ;;  %v16315_v26 = vand.u32 4294901760, %v5079_v41  ;;  %v16320_v20 = vsub.f32 %v5080_v12, %v16305_v58 }
0x1227   :  { %v13908_v3 = vpop.f32.mrf.mxu0  ;;  %v16322_v37 = vand.u32 4294901760, %v5078_v44 }
0x1228   :  { %v16330_v56 = vsub.f32 %v5079_v41, %v16315_v26 }
0x1229   :  { %v16339_v1 = vsub.f32 %v5078_v44, %v16322_v37 }
0x122d   :  { %v4274_v59 = vpop.f32.mrf.mxu0 }
0x122e   :  { %v4509_v62 = vpop.f32.mrf.mxu1  ;;  %v4275_v30 = vadd.f32 %v4274_v59, %v4195_v13  ;;  %v5290_v13 = vsub.f32 %v16313_v47, %v16327_v50 }
0x122f   :  { %v13930_v33 = vpop.f32.mrf.mxu0 }
0x1230   :  { %v13963_v32 = vpop.f32.mrf.mxu1  ;;  %v4352_v8 = vadd.f32 %v4351_v18, %v4275_v30  ;;  %v5066_v18 = vld [vmem:[#allocation2] sm:$0xff]  ;;  %v5068_v30 = vld [vmem:[#allocation2 + $0x10] sm:$0xff] }
0x1231   :  { %v5090_v59 = vsel %vm918_vm1, %v5066_v18, 0  ;;  %v5067_v32 = vld [vmem:[#allocation2 + $0x8] sm:$0xff] }
0x1232   :  { %v16347_v33 = vand.u32 4294901760, %v5090_v59  ;;  %v5093_v45 = vsel %vm918_vm1, %v5067_v32, 0 }
0x1234   :  { %v16370_v49 = vsub.f32 %v5090_v59, %v16347_v33 }
0x1236   :  { %v4434_v43 = vpop.f32.mrf.mxu0 }
0x1237   :  { %v4435_v63 = vadd.f32 %v4434_v43, %v4352_v8 }
0x1238   :  { %v13952_v4 = vpop.f32.mrf.mxu0 }
0x1239   :  { %v4510_v46 = vadd.f32 %v4509_v62, %v4435_v63  ;;  %v16336_v62 = vand.u32 4294901760, %v16320_v20  ;;  %v5070_v63 = vld [vmem:[#allocation2 + $0x20] sm:$0xff]  ;;  %v16381_v4 = vand.u32 4294901760, %v5093_v45 }
0x123b   :  { %v4513_v60 = vadd.f32 %v4510_v46, %v907_v57  ;;  %v5099_v57 = vsel %vm918_vm1, %v5069_v39, 0  ;;  %v5102_v46 = vsel %vm918_vm1, %v5070_v63, 0 }
0x123d   :  { %15076 = vtanh.f32 %v4513_v60  ;;  %v12576_v36 = vmul.f32 -1.442695, %v4513_v60  ;;  %v5071_v60 = vld [vmem:[#allocation2 + $0x28] sm:$0xff] }
0x123f   :  { %15078 = vpow2.f32 %v12576_v36 }
0x124a   :  { %v15077_v52 = vpop.eup %15076 }
0x124b   :  { %4523 = vrot.lane.b32.xlu1 %v15077_v52, %s15316_s2 }
0x124c   :  { %v15079_v5 = vpop.eup %15078 }
0x124d   :  { %v4517_v42 = vadd.f32 1.0, %v15079_v5  ;;  %v16395_v5 = vand.u32 4294901760, %v5099_v57 }
0x124f   :  { %15080 = vrcp.f32 %v4517_v42 }
0x125c   :  { %v15081_v38 = vpop.eup %15080 }
0x125d   :  { %v4521_v55 = vmul.f32 %v15081_v38, %v16203_v61 }
0x12bd   :  { %v4524_v51 = vpop.permute.xlu1 %4523 }
0x12be   :  { %v4526_v27 = vmul.f32 %v15081_v38, %v4524_v51  ;;  %v5105_v51 = vsel %vm918_vm1, %v5071_v60, 0 }
0x12c0   :  { %4528 = vrot.lane.b32.xlu0 %v4526_v27, %s15317_s25 }
0x1332   :  { %v4529_v35 = vpop.permute.xlu0 %4528 }
0x1333   :  { %v16280_v25 = vadd.f32 %v4529_v35, %v4521_v55  ;;  %v16414_v35 = vand.u32 4294901760, %v5105_v51 }
0x1335   :  { %15082 = vtanh.f32 %v16280_v25 }
0x1342   :  { %v15083_v48 = vpop.eup %15082 }
0x1343   :  { %4534 = vrot.lane.b32.xlu1 %v15083_v48, %s15316_s2  ;;  %v16417_v48 = vsub.f32 %v5099_v57, %v16395_v5 }
0x1345   :  { %v5214_v0 = vand.u32 4294901760, %v16417_v48 }
0x13b5   :  { %v4535_v54 = vpop.permute.xlu1 %4534 }
0x13b6   :  { %v4537_v16 = vmul.f32 %v15081_v38, %v4535_v54  ;;  %v16401_v38 = vand.u32 4294901760, %v5102_v46 }
0x13b8   :  { %4539 = vrot.lane.b32.xlu0 %v4537_v16, %s15317_s25 }
0x142a   :  { %v4540_v19 = vpop.permute.xlu0 %4539 }
0x142b   :  { %4542 = vst.msk [vmem:[#allocation2 + $0x30] sm:$0xff] %vm918_vm1, %v4540_v19  ;;  %v4543_v61 = vsel %vm918_vm1, %v4540_v19, 0 }
0x142c   :  { %v16290_v21 = vand.u32 4294901760, %v4543_v61 }
0x142e   :  { %v4615_v40 = vsub.f32 %v4543_v61, %v16290_v21  ;;  %13984 = vmatmul.mubr.f32.vlgmr.msra.gmra.mxu1 %v16290_v21  ;;  %v16436_v61 = vsub.f32 %v5105_v51, %v16414_v35  ;;  %v17871_v51 = vld [vmem:[#allocation21_spill] sm:$0xff] }
0x142f   :  { %13998 = vmatpush3.msra.mxu1 %v15578_v7  ;;  %14005 = vmatprep.mubr.msk.f32.mxu1 %vm15315_vm2, %v17868_v53 }
0x1430   :  { %v4616_v2 = vand.u32 4294901760, %v4615_v40  ;;  %13999 = vmatprep.subr.mxu1 %v17868_v53  ;;  %v5234_v44 = vand.u32 4294901760, %v16436_v61 }
0x1431   :  { %14000 = vmatpush3.msra.mxu1 %v15595_v11 }
0x1432   :  { %v4617_v9 = vsub.f32 %v4615_v40, %v4616_v2  ;;  %14001 = vmatprep.subr.mxu1 %v17868_v53  ;;  %v5072_v36 = vld [vmem:[#allocation2 + $0x30] sm:$0xff] }
0x1433   :  { %14002 = vmatpush3.msra.mxu1 %v15616_v17 }
0x1434   :  { %14003 = vmatprep.subr.mxu1 %v17868_v53  ;;  %v4618_v3 = vand.u32 4294901760, %v4617_v9 }
0x1435   :  { %14004 = vmatpush3.msra.mxu1 %v15635_v24 }
0x1436   :  { %14006 = vmatmul.mubr.f32.vlgmr.msra.gmra.mxu1 %v4616_v2  ;;  %14019 = vmatprep.subr.mxu1 %v17868_v53  ;;  %v5215_v2 = vsub.f32 %v16417_v48, %v5214_v0 }
0x1437   :  { %13973 = vmatmul.mubr.f32.vlgmr.msra.gmra.mxu0 %v4618_v3  ;;  %14020 = vmatpush3.msra.mxu1 %v15578_v7  ;;  %v16350_v7 = vand.u32 4294901760, %v16330_v56 }
0x1438   :  { %13987 = vmatpush3.msra.mxu0 %v15593_v10  ;;  %14021 = vmatprep.subr.mxu1 %v17868_v53  ;;  %v5297_v10 = vsub.f32 %v16320_v20, %v16336_v62  ;;  %v5216_v59 = vand.u32 4294901760, %v5215_v2 }
0x1439   :  { %13988 = vmatprep.subr.mxu0 %v17868_v53  ;;  %14022 = vmatpush3.msra.mxu1 %v15595_v11  ;;  %v16359_v11 = vand.u32 4294901760, %v16339_v1 }
0x143a   :  { %13989 = vmatpush3.msra.mxu0 %v15614_v15  ;;  %14023 = vmatprep.subr.mxu1 %v17868_v53  ;;  %v5291_v15 = vand.u32 4294901760, %v5290_v13  ;;  %v5298_v8 = vand.u32 4294901760, %v5297_v10  ;;  %v5235_v13 = vsub.f32 %v16436_v61, %v5234_v44 }
0x143b   :  { %13990 = vmatprep.subr.mxu0 %v17868_v53  ;;  %14024 = vmatpush3.msra.mxu1 %v15616_v17  ;;  %v5304_v17 = vsub.f32 %v16330_v56, %v16350_v7  ;;  %v5311_v43 = vsub.f32 %v16339_v1, %v16359_v11 }
0x143c   :  { %13991 = vmatpush3.msra.mxu0 %v15633_v23  ;;  %14025 = vmatprep.subr.mxu1 %v17868_v53  ;;  %v5096_v23 = vsel %vm918_vm1, %v5068_v30, 0  ;;  %v5236_v30 = vand.u32 4294901760, %v5235_v13 }
0x143d   :  { %13992 = vmatprep.subr.mxu0 %v17868_v53  ;;  %13994 = vmatprep.mubr.msk.f32.mxu0 %vm15315_vm2, %v17868_v53  ;;  %v16385_v29 = vand.u32 4294901760, %v5096_v23  ;;  %v5312_v52 = vand.u32 4294901760, %v5311_v43 }
0x143e   :  { %13993 = vmatpush3.msra.mxu0 %v15650_v31  ;;  %14026 = vmatpush3.msra.mxu1 %v15635_v24  ;;  %v5305_v24 = vand.u32 4294901760, %v5304_v17  ;;  %v5184_v31 = vand.u32 4294901760, %v16370_v49 }
0x143f   :  { %14027 = vmatprep.mubr.msk.f32.mxu1 %vm15315_vm2, %v17868_v53  ;;  %13995 = vmatmul.mubr.f32.vlgmr.msra.gmra.mxu0 %v4615_v40  ;;  %v16405_v27 = vsub.f32 %v5096_v23, %v16385_v29 }
0x1440   :  { %14008 = vmatprep.subr.mxu0 %v17868_v53  ;;  %14028 = vmatmul.mubr.f32.vlgmr.msra.gmra.mxu1 %v16290_v21  ;;  %v5185_v42 = vsub.f32 %v16370_v49, %v5184_v31 }
0x1441   :  { %14050 = vmatprep.subr.mxu1 %v5291_v15  ;;  %14009 = vmatpush3.msra.mxu0 %v15611_v14  ;;  %v16393_v14 = vsub.f32 %v5093_v45, %v16381_v4  ;;  %v5204_v54 = vand.u32 4294901760, %v16405_v27 }
0x1442   :  { %14051 = vmatpush3.msra.mxu1 %v5291_v15  ;;  %14058 = vmatprep.mubr.f32.mxu1 %v16347_v33 }
0x1443   :  { %14010 = vmatprep.subr.mxu0 %v17868_v53  ;;  %14052 = vmatprep.subr.mxu1 %v5298_v8  ;;  %v5194_v55 = vand.u32 4294901760, %v16393_v14 }
0x1444   :  { %14011 = vmatpush3.msra.mxu0 %v15630_v22  ;;  %14053 = vmatpush3.msra.mxu1 %v5298_v8  ;;  %v5108_v22 = vsel %vm918_vm1, %v5072_v36, 0 }
0x1445   :  { %14012 = vmatprep.subr.mxu0 %v17868_v53  ;;  %14054 = vmatprep.subr.mxu1 %v5305_v24  ;;  %v16421_v16 = vand.u32 4294901760, %v5108_v22  ;;  %v5195_v19 = vsub.f32 %v16393_v14, %v5194_v55 }
0x1446   :  { %14013 = vmatpush3.msra.mxu0 %v15647_v28  ;;  %14055 = vmatpush3.msra.mxu1 %v5305_v24  ;;  %v5186_v28 = vand.u32 4294901760, %v5185_v42 }
0x1447   :  { %14014 = vmatprep.subr.mxu0 %v17868_v53  ;;  %14056 = vmatprep.subr.mxu1 %v5312_v52  ;;  %v16444_v40 = vsub.f32 %v5108_v22, %v16421_v16  ;;  %v5196_v41 = vand.u32 4294901760, %v5195_v19  ;;  %v16492_v19 = vld [vmem:[%s17847_s8] ss:$0 sm:$0xff] }
0x1448   :  { %14015 = vmatpush3.msra.mxu0 %v15667_v34  ;;  %14016 = vmatprep.mubr.msk.f32.mxu0 %vm15315_vm2, %v17868_v53  ;;  %v16424_v34 = vsub.f32 %v5102_v46, %v16401_v38 }
0x1449   :  { %14057 = vmatpush3.msra.mxu1 %v5312_v52  ;;  %14017 = vmatmul.mubr.f32.vlgmr.msra.gmra.mxu0 %v16290_v21  ;;  %v5205_v21 = vsub.f32 %v16405_v27, %v5204_v54  ;;  %v5244_v3 = vand.u32 4294901760, %v16444_v40 }
0x144a   :  { %14030 = vmatprep.subr.mxu0 %v16295_v6  ;;  %14059 = vmatmul.mubr.f32.vlgmr.msra.gmra.mxu1 %v16381_v4  ;;  %v5224_v12 = vand.u32 4294901760, %v16424_v34 }
0x144b   :  { %14031 = vmatpush3.msra.mxu0 %v16295_v6  ;;  %14038 = vmatprep.mubr.f32.mxu0 %v5186_v28  ;;  %v5206_v9 = vand.u32 4294901760, %v5205_v21  ;;  %v5245_v10 = vsub.f32 %v16444_v40, %v5244_v3 }
0x144c   :  { %14061 = vmatprep.mubr.f32.mxu1 %v16385_v29  ;;  %14032 = vmatprep.subr.mxu0 %v16305_v58  ;;  %v5225_v18 = vsub.f32 %v16424_v34, %v5224_v12 }
0x144d   :  { %14033 = vmatpush3.msra.mxu0 %v16305_v58  ;;  %14090 = vmatprep.subr.mxu1 %v16295_v6  ;;  %v5246_v15 = vand.u32 4294901760, %v5245_v10 }
0x144e   :  { %14034 = vmatprep.subr.mxu0 %v16315_v26  ;;  %14062 = vmatmul.mubr.f32.gmra.mxu1 %v16395_v5  ;;  %v5226_v32 = vand.u32 4294901760, %v5225_v18 }
0x144f   :  { %14035 = vmatpush3.msra.mxu0 %v16315_v26  ;;  %14064 = vmatprep.mubr.f32.mxu1 %v16401_v38 }
0x1450   :  { %14036 = vmatprep.subr.mxu0 %v16322_v37  ;;  %14091 = vmatpush3.msra.mxu1 %v16295_v6 }
0x1451   :  { %14037 = vmatpush3.msra.mxu0 %v16322_v37  ;;  %14092 = vmatprep.subr.mxu1 %v16305_v58 }
0x1452   :  { %14039 = vmatmul.mubr.f32.vlgmr.msra.gmra.mxu0 %v5196_v41  ;;  %14065 = vmatmul.mubr.f32.gmra.mxu1 %v16414_v35 }
0x1453   :  { %14041 = vmatprep.mubr.f32.mxu0 %v5206_v9  ;;  %14067 = vmatprep.mubr.f32.mxu1 %v16421_v16 }
0x1454   :  { %14070 = vmatprep.subr.mxu0 %v16313_v47  ;;  %14093 = vmatpush3.msra.mxu1 %v16305_v58 }
0x1455   :  { %14071 = vmatpush3.msra.mxu0 %v16313_v47  ;;  %14094 = vmatprep.subr.mxu1 %v16315_v26 }
0x1456   :  { %14042 = vmatmul.mubr.f32.gmra.mxu0 %v5216_v59  ;;  %14072 = vmatprep.subr.mxu0 %v16320_v20 }
0x1457   :  { %14044 = vmatprep.mubr.f32.mxu0 %v5226_v32  ;;  %14073 = vmatpush3.msra.mxu0 %v16320_v20 }
0x1458   :  { %14095 = vmatpush3.msra.mxu1 %v16315_v26  ;;  %14074 = vmatprep.subr.mxu0 %v16330_v56 }
0x1459   :  { %14096 = vmatprep.subr.mxu1 %v16322_v37  ;;  %14075 = vmatpush3.msra.mxu0 %v16330_v56 }
0x145a   :  { %14045 = vmatmul.mubr.f32.gmra.mxu0 %v5236_v30  ;;  %14097 = vmatpush3.msra.mxu1 %v16322_v37 }
0x145b   :  { %14047 = vmatprep.mubr.f32.mxu0 %v5246_v15  ;;  %14076 = vmatprep.subr.mxu0 %v16339_v1 }
0x145c   :  { %14077 = vmatpush3.msra.mxu0 %v16339_v1  ;;  %14130 = vmatprep.subr.mxu1 %v16295_v6 }
0x145d   :  { %14110 = vmatprep.subr.mxu0 %v16327_v50 }
0x14ee   :  { %v4711_v47 = vpop.f32.mrf.mxu1 }
0x14f0   :  { %v13985_v20 = vpop.f32.mrf.mxu1 }
0x14f6   :  { %v4868_v17 = vpop.f32.mrf.mxu1 }
0x14f7   :  { %v4620_v45 = vpop.f32.mrf.mxu0 }
0x14f8   :  { %v14007_v23 = vpop.f32.mrf.mxu1  ;;  %v4712_v63 = vadd.f32 %v4711_v47, %v4620_v45 }
0x14f9   :  { %v13974_v39 = vpop.f32.mrf.mxu0 }
0x14ff   :  { %v4791_v8 = vpop.f32.mrf.mxu0 }
0x1500   :  { %v5026_v56 = vpop.f32.mrf.mxu1  ;;  %v4792_v57 = vadd.f32 %v4791_v8, %v4712_v63 }
0x1501   :  { %v13996_v43 = vpop.f32.mrf.mxu0 }
0x1502   :  { %v14029_v24 = vpop.f32.mrf.mxu1  ;;  %v4869_v46 = vadd.f32 %v4868_v17, %v4792_v57 }
0x1509   :  { %v4951_v60 = vpop.f32.mrf.mxu0 }
0x150a   :  { %v4952_v52 = vadd.f32 %v4951_v60, %v4869_v46  ;;  %v14060_v42 = vpop.f32.mrf.mxu1 }
0x150b   :  { %v14018_v1 = vpop.f32.mrf.mxu0 }
0x150c   :  { %v5027_v36 = vadd.f32 %v5026_v56, %v4952_v52  ;;  %v16487_v28 = vpop.f32.mrf.mxu1 }
0x150e   :  { %v5030_v22 = vadd.f32 %v5027_v36, %v17871_v51  ;;  %v14063_v2 = vpop.f32.mrf.mxu1  ;;  %v5902_v36 = vld [vmem:[#allocation6 + $0x8] sm:$0xff] }
0x1510   :  { %15084 = vtanh.f32 %v5030_v22  ;;  %v16500_v32 = vpop.f32.mrf.mxu1  ;;  %v12577_v23 = vmul.f32 -1.442695, %v5030_v22 }
0x1512   :  { %v14040_v21 = vpop.f32.mrf.mxu0  ;;  %v14066_v20 = vpop.f32.mrf.mxu1  ;;  %15086 = vpow2.f32 %v12577_v23 }
0x1513   :  { %v5199_v41 = vadd.f32 %v14040_v21, %v16492_v19  ;;  %v5077_v21 = vld [vmem:[%s17846_s7 + $0x18] sm:$0xff] }
0x1514   :  { %v16495_v9 = vpop.f32.mrf.mxu0 }
0x1515   :  { %v16497_v18 = vadd.f32 %v14060_v42, %v5199_v41 }
0x1516   :  { %v14043_v59 = vpop.f32.mrf.mxu0 }
0x1517   :  { %v5219_v13 = vadd.f32 %v14043_v59, %v16492_v19  ;;  %v16530_v59 = vand.u32 4294901760, %v5077_v21 }
0x1518   :  { %v16502_v10 = vpop.f32.mrf.mxu0 }
0x1519   :  { %v16504_v30 = vadd.f32 %v14063_v2, %v5219_v13  ;;  %v5076_v13 = vld [vmem:[%s17846_s7 + $0x10] sm:$0xff] }
0x151a   :  { %v14046_v15 = vpop.f32.mrf.mxu0 }
0x151b   :  { %v5239_v47 = vadd.f32 %v14046_v15, %v16492_v19 }
0x151d   :  { %v15085_v17 = vpop.eup %15084  ;;  %v16507_v45 = vadd.f32 %v14066_v20, %v5239_v47  ;;  %v16544_v20 = vand.u32 4294901760, %v5076_v13 }
0x151e   :  { %5040 = vrot.lane.b32.xlu1 %v15085_v17, %s15316_s2 }
0x151f   :  { %v15087_v39 = vpop.eup %15086 }
0x1520   :  { %v5034_v8 = vadd.f32 1.0, %v15087_v39  ;;  %v16729_v39 = vpop.f32.mrf.mxu0 }
0x1522   :  { %15088 = vrcp.f32 %v5034_v8 }
0x152f   :  { %v15089_v56 = vpop.eup %15088 }
0x1530   :  { %v5038_v24 = vmul.f32 %v15089_v56, %v16280_v25 }
0x1590   :  { %v5041_v43 = vpop.permute.xlu1 %5040 }
0x1591   :  { %v5043_v63 = vmul.f32 %v15089_v56, %v5041_v43 }
0x1593   :  { %5045 = vrot.lane.b32.xlu0 %v5043_v63, %s15317_s25 }
0x1605   :  { %v5046_v57 = vpop.permute.xlu0 %5045 }
0x1606   :  { %v16512_v46 = vadd.f32 %v5046_v57, %v5038_v24 }
0x1608   :  { %17872 = vst [vmem:[#allocation20_spill] sm:$0xff] %v16512_v46  ;;  %15090 = vtanh.f32 %v16512_v46 }
0x1615   :  { %v15091_v60 = vpop.eup %15090 }
0x1616   :  { %5051 = vrot.lane.b32.xlu1 %v15091_v60, %s15316_s2 }
0x1688   :  { %v5052_v52 = vpop.permute.xlu1 %5051 }
0x1689   :  { %v5054_v1 = vmul.f32 %v15089_v56, %v5052_v52 }
0x168b   :  { %5056 = vrot.lane.b32.xlu0 %v5054_v1, %s15317_s25 }
0x168f   :  { %6400 = vrot.lane.b32.xlu0 %v5902_v36, %s15317_s25 }
0x16fd   :  { %v5057_v42 = vpop.permute.xlu0 %5056 }
0x16fe   :  { %5059 = vst.msk [vmem:[#allocation2 + $0x38] sm:$0xff] %vm918_vm1, %v5057_v42  ;;  %5060 = vst.msk [vmem:[#allocation12] sm:$0xff] %vm918_vm1, %v5057_v42 }
0x1705   :  { %v5073_v25 = vld [vmem:[#allocation2 + $0x38] sm:$0xff] }
0x1706   :  { %v5111_v51 = vsel %vm918_vm1, %v5073_v25, 0 }
0x1707   :  { %v16521_v22 = vand.u32 4294901760, %v5111_v51 }
0x1709   :  { %14068 = vmatmul.mubr.f32.gmra.mxu1 %v16521_v22  ;;  %v5253_v41 = vsub.f32 %v5111_v51, %v16521_v22 }
0x170a   :  { %14098 = vmatprep.mubr.f32.mxu1 %v5184_v31  ;;  %v16542_v31 = vsub.f32 %v5077_v21, %v16530_v59 }
0x170b   :  { %v5254_v2 = vand.u32 4294901760, %v5253_v41 }
0x170d   :  { %14099 = vmatmul.mubr.f32.vlgmr.msra.gmra.mxu1 %v5194_v55  ;;  %v5255_v15 = vsub.f32 %v5253_v41, %v5254_v2  ;;  %v5075_v55 = vld [vmem:[%s17846_s7 + $0x8] sm:$0xff] }
0x170e   :  { %14101 = vmatprep.mubr.f32.mxu1 %v5204_v54  ;;  %14131 = vmatpush3.msra.mxu1 %v16295_v6  ;;  %v16557_v6 = vand.u32 4294901760, %v16542_v31  ;;  %v16562_v54 = vand.u32 4294901760, %v5075_v55 }
0x170f   :  { %v5256_v47 = vand.u32 4294901760, %v5255_v15  ;;  %14132 = vmatprep.subr.mxu1 %v16305_v58 }
0x1710   :  { %14133 = vmatpush3.msra.mxu1 %v16305_v58  ;;  %v16560_v58 = vsub.f32 %v5076_v13, %v16544_v20 }
0x1711   :  { %14048 = vmatmul.mubr.f32.gmra.mxu0 %v5256_v47  ;;  %14102 = vmatmul.mubr.f32.gmra.mxu1 %v5214_v0  ;;  %v5074_v0 = vld [vmem:[%s17846_s7] sm:$0xff] }
0x1712   :  { %14078 = vmatprep.mubr.f32.mxu0 %v16370_v49  ;;  %14104 = vmatprep.mubr.f32.mxu1 %v5224_v12  ;;  %v16579_v49 = vand.u32 4294901760, %v16560_v58  ;;  %v16584_v12 = vand.u32 4294901760, %v5074_v0 }
0x1713   :  { %14134 = vmatprep.subr.mxu1 %v16315_v26 }
0x1714   :  { %14135 = vmatpush3.msra.mxu1 %v16315_v26  ;;  %v6013_v26 = vsub.f32 %v16542_v31, %v16557_v6 }
0x1715   :  { %14079 = vmatmul.mubr.f32.vlgmr.msra.gmra.mxu0 %v16393_v14  ;;  %14105 = vmatmul.mubr.f32.gmra.mxu1 %v5234_v44  ;;  %v16582_v14 = vsub.f32 %v5075_v55, %v16562_v54 }
0x1716   :  { %14081 = vmatprep.mubr.f32.mxu0 %v16405_v27  ;;  %14107 = vmatprep.mubr.f32.mxu1 %v5244_v3  ;;  %v6020_v27 = vsub.f32 %v16560_v58, %v16579_v49 }
0x1717   :  { %14111 = vmatpush3.msra.mxu0 %v16327_v50  ;;  %14136 = vmatprep.subr.mxu1 %v16322_v37  ;;  %v16593_v50 = vand.u32 4294901760, %v6013_v26  ;;  %v16598_v44 = vand.u32 4294901760, %v16582_v14 }
0x1718   :  { %14112 = vmatprep.subr.mxu0 %v16336_v62  ;;  %14137 = vmatpush3.msra.mxu1 %v16322_v37  ;;  %v16601_v37 = vsub.f32 %v5074_v0, %v16584_v12 }
0x1719   :  { %14082 = vmatmul.mubr.f32.gmra.mxu0 %v16417_v48  ;;  %14108 = vmatmul.mubr.f32.gmra.mxu1 %v5254_v2  ;;  %v5900_v48 = vld [vmem:[#allocation3 + $0x8] sm:$0xff] }
0x171a   :  { %14084 = vmatprep.mubr.f32.mxu0 %v16424_v34  ;;  %14113 = vmatpush3.msra.mxu0 %v16336_v62  ;;  %v5904_v62 = vsel %vm918_vm1, %v5900_v48, 0  ;;  %v16612_v34 = vand.u32 4294901760, %v6020_v27  ;;  %v16617_v3 = vand.u32 4294901760, %v16601_v37 }
0x171b   :  { %14138 = vmatprep.mubr.f32.mxu1 %v16347_v33  ;;  %14114 = vmatprep.subr.mxu0 %v16350_v7 }
0x171c   :  { %14115 = vmatpush3.msra.mxu0 %v16350_v7  ;;  %14161 = vmatprep.subr.mxu1 %v17868_v53  ;;  %v6027_v7 = vsub.f32 %v16582_v14, %v16598_v44 }
0x171d   :  { %14085 = vmatmul.mubr.f32.gmra.mxu0 %v16436_v61  ;;  %14139 = vmatmul.mubr.f32.vlgmr.msra.gmra.mxu1 %v16381_v4  ;;  %v16622_v61 = vand.u32 4294901760, %v5904_v62 }
0x171e   :  { %14087 = vmatprep.mubr.f32.mxu0 %v16444_v40  ;;  %14141 = vmatprep.mubr.f32.mxu1 %v16385_v29  ;;  %v16628_v40 = vand.u32 4294901760, %v6027_v7 }
0x171f   :  { %14116 = vmatprep.subr.mxu0 %v16359_v11  ;;  %14162 = vmatpush3.msra.mxu1 %v16593_v50  ;;  %v5976_v17 = vsub.f32 %v5904_v62, %v16622_v61 }
0x1720   :  { %14117 = vmatpush3.msra.mxu0 %v16359_v11  ;;  %14163 = vmatprep.subr.mxu1 %v17868_v53  ;;  %v6034_v11 = vsub.f32 %v16601_v37, %v16617_v3 }
0x1721   :  { %14088 = vmatmul.mubr.f32.gmra.mxu0 %v5253_v41  ;;  %14142 = vmatmul.mubr.f32.gmra.mxu1 %v16395_v5 }
0x1722   :  { %14118 = vmatprep.mubr.f32.mxu0 %v16347_v33  ;;  %14144 = vmatprep.mubr.f32.mxu1 %v16401_v38  ;;  %v16640_v33 = vand.u32 4294901760, %v6034_v11 }
0x1723   :  { %14150 = vmatprep.subr.mxu0 %v17868_v53  ;;  %14164 = vmatpush3.msra.mxu1 %v16612_v34 }
0x1724   :  { %14165 = vmatprep.subr.mxu1 %v17868_v53 }
0x1725   :  { %14119 = vmatmul.mubr.f32.vlgmr.msra.gmra.mxu0 %v16381_v4  ;;  %14145 = vmatmul.mubr.f32.gmra.mxu1 %v16414_v35  ;;  %v5977_v4 = vand.u32 4294901760, %v5976_v17 }
0x1726   :  { %14121 = vmatprep.mubr.f32.mxu0 %v16385_v29  ;;  %14147 = vmatprep.mubr.f32.mxu1 %v16421_v16 }
0x1727   :  { %14151 = vmatpush3.msra.mxu0 %v16530_v59  ;;  %14166 = vmatpush3.msra.mxu1 %v16628_v40  ;;  %v5978_v29 = vsub.f32 %v5976_v17, %v5977_v4 }
0x1728   :  { %14152 = vmatprep.subr.mxu0 %v17868_v53  ;;  %14167 = vmatprep.subr.mxu1 %v17868_v53 }
0x1729   :  { %14122 = vmatmul.mubr.f32.gmra.mxu0 %v16395_v5  ;;  %14148 = vmatmul.mubr.f32.gmra.mxu1 %v16521_v22  ;;  %v5979_v5 = vand.u32 4294901760, %v5978_v29 }
0x172a   :  { %14124 = vmatprep.mubr.f32.mxu0 %v16401_v38  ;;  %14153 = vmatpush3.msra.mxu0 %v16544_v20  ;;  %v16725_v38 = vpop.f32.mrf.mxu1 }
0x172b   :  { %14154 = vmatprep.subr.mxu0 %v17868_v53  ;;  %14168 = vmatpush3.msra.mxu1 %v16640_v33 }
0x172c   :  { %14155 = vmatpush3.msra.mxu0 %v16562_v54  ;;  %14169 = vmatprep.mubr.msk.f32.mxu1 %vm15315_vm2, %v17868_v53 }
0x172d   :  { %14125 = vmatmul.mubr.f32.gmra.mxu0 %v16414_v35  ;;  %14156 = vmatprep.subr.mxu0 %v17868_v53 }
0x172e   :  { %14127 = vmatprep.mubr.f32.mxu0 %v16421_v16  ;;  %14157 = vmatpush3.msra.mxu0 %v16584_v12 }
0x172f   :  { %14172 = vmatprep.subr.mxu0 %v17868_v53  ;;  %14183 = vmatprep.subr.mxu1 %v17868_v53 }
0x1730   :  { %14170 = vmatmul.mubr.f32.vlgmr.msra.gmra.mxu1 %v16622_v61 }
0x1731   :  { %14128 = vmatmul.mubr.f32.gmra.mxu0 %v16521_v22  ;;  %14184 = vmatpush3.msra.mxu1 %v16530_v59 }
0x1732   :  { %14158 = vmatprep.mubr.msk.f32.mxu0 %vm15315_vm2, %v17868_v53  ;;  %14185 = vmatprep.subr.mxu1 %v17868_v53 }
0x1733   :  { %14186 = vmatpush3.msra.mxu1 %v16544_v20  ;;  %14191 = vmatprep.mubr.msk.f32.mxu1 %vm15315_vm2, %v17868_v53 }
0x1734   :  { %14187 = vmatprep.subr.mxu1 %v17868_v53 }
0x1735   :  { %14159 = vmatmul.mubr.f32.vlgmr.msra.gmra.mxu0 %v5979_v5  ;;  %14188 = vmatpush3.msra.mxu1 %v16562_v54 }
0x1736   :  { %14173 = vmatpush3.msra.mxu0 %v16542_v31  ;;  %14180 = vmatprep.mubr.msk.f32.mxu0 %vm15315_vm2, %v17868_v53 }
0x1737   :  { %14174 = vmatprep.subr.mxu0 %v17868_v53  ;;  %14189 = vmatprep.subr.mxu1 %v17868_v53 }
0x1738   :  { %14175 = vmatpush3.msra.mxu0 %v16560_v58  ;;  %14190 = vmatpush3.msra.mxu1 %v16584_v12 }
0x1739   :  { %14176 = vmatprep.subr.mxu0 %v17868_v53  ;;  %14205 = vmatprep.subr.mxu1 %v17868_v53 }
0x173a   :  { %14177 = vmatpush3.msra.mxu0 %v16582_v14  ;;  %14192 = vmatmul.mubr.f32.vlgmr.msra.gmra.mxu1 %v5977_v4 }
0x173b   :  { %14178 = vmatprep.subr.mxu0 %v17868_v53  ;;  %14206 = vmatpush3.msra.mxu1 %v16530_v59 }
0x173c   :  { %14179 = vmatpush3.msra.mxu0 %v16601_v37  ;;  %14207 = vmatprep.subr.mxu1 %v17868_v53 }
0x173d   :  { %14181 = vmatmul.mubr.f32.vlgmr.msra.gmra.mxu0 %v5976_v17  ;;  %14194 = vmatprep.subr.mxu0 %v17868_v53 }
0x173e   :  { %14195 = vmatpush3.msra.mxu0 %v16557_v6  ;;  %14208 = vmatpush3.msra.mxu1 %v16544_v20 }
0x173f   :  { %14196 = vmatprep.subr.mxu0 %v17868_v53  ;;  %14209 = vmatprep.subr.mxu1 %v17868_v53 }
0x1740   :  { %14197 = vmatpush3.msra.mxu0 %v16579_v49  ;;  %14210 = vmatpush3.msra.mxu1 %v16562_v54 }
0x1741   :  { %14198 = vmatprep.subr.mxu0 %v17868_v53  ;;  %14202 = vmatprep.mubr.msk.f32.mxu0 %vm15315_vm2, %v17868_v53 }
0x1742   :  { %14199 = vmatpush3.msra.mxu0 %v16598_v44  ;;  %14211 = vmatprep.subr.mxu1 %v17868_v53 }
0x1743   :  { %14200 = vmatprep.subr.mxu0 %v17868_v53  ;;  %14212 = vmatpush3.msra.mxu1 %v16584_v12 }
0x1744   :  { %14201 = vmatpush3.msra.mxu0 %v16617_v3  ;;  %14213 = vmatprep.mubr.msk.f32.mxu1 %vm15315_vm2, %v17868_v53 }
0x1745   :  { %14203 = vmatmul.mubr.f32.vlgmr.msra.gmra.mxu0 %v16622_v61  ;;  %14214 = vmatmul.mubr.f32.vlgmr.msra.gmra.mxu1 %v16622_v61 }
0x1746   :  { %14227 = vmatprep.subr.mxu1 %v17868_v53  ;;  %14216 = vmatprep.subr.mxu0 %v17868_v53 }
0x1747   :  { %14228 = vmatpush3.msra.mxu1 %v16593_v50  ;;  %14235 = vmatprep.mubr.msk.f32.mxu1 %vm15315_vm2, %v17868_v53 }
0x1748   :  { %14229 = vmatprep.subr.mxu1 %v17868_v53  ;;  %14217 = vmatpush3.msra.mxu0 %v16530_v59 }
0x1749   :  { %14230 = vmatpush3.msra.mxu1 %v16612_v34  ;;  %14218 = vmatprep.subr.mxu0 %v17868_v53 }
0x174a   :  { %14231 = vmatprep.subr.mxu1 %v17868_v53  ;;  %14219 = vmatpush3.msra.mxu0 %v16544_v20 }
0x174b   :  { %14232 = vmatpush3.msra.mxu1 %v16628_v40  ;;  %14220 = vmatprep.subr.mxu0 %v17868_v53 }
0x174c   :  { %14233 = vmatprep.subr.mxu1 %v17868_v53  ;;  %14221 = vmatpush3.msra.mxu0 %v16562_v54 }
0x174d   :  { %14234 = vmatpush3.msra.mxu1 %v16640_v33  ;;  %14222 = vmatprep.subr.mxu0 %v17868_v53 }
0x174e   :  { %14249 = vmatprep.subr.mxu1 %v17868_v53  ;;  %14223 = vmatpush3.msra.mxu0 %v16584_v12 }
0x174f   :  { %14224 = vmatprep.mubr.msk.f32.mxu0 %vm15315_vm2, %v17868_v53  ;;  %14238 = vmatprep.subr.mxu0 %v17868_v53 }
0x17c9   :  { %v14069_v35 = vpop.f32.mrf.mxu1 }
0x17cb   :  { %v16727_v16 = vpop.f32.mrf.mxu1 }
0x17cd   :  { %v14100_v23 = vpop.f32.mrf.mxu1 }
0x17cf   :  { %v16731_v8 = vpop.f32.mrf.mxu1 }
0x17d1   :  { %v14049_v56 = vpop.f32.mrf.mxu0  ;;  %v14103_v43 = vpop.f32.mrf.mxu1 }
0x17d2   :  { %v5259_v63 = vadd.f32 %v14049_v56, %v16492_v19 }
0x17d3   :  { %v16734_v24 = vpop.f32.mrf.mxu0  ;;  %v16736_v57 = vpop.f32.mrf.mxu1 }
0x17d4   :  { %v5392_v60 = vadd.f32 %v14069_v35, %v5259_v63 }
0x17d5   :  { %v14080_v52 = vpop.f32.mrf.mxu0  ;;  %v14106_v1 = vpop.f32.mrf.mxu1 }
0x17d6   :  { %v5479_v36 = vadd.f32 %v14080_v52, %v16497_v18 }
0x17d7   :  { %v5471_v42 = vpop.f32.mrf.mxu0  ;;  %v16739_v25 = vpop.f32.mrf.mxu1 }
0x17d8   :  { %v5606_v51 = vadd.f32 %v14100_v23, %v5479_v36 }
0x17d9   :  { %v14083_v22 = vpop.f32.mrf.mxu0  ;;  %v14109_v21 = vpop.f32.mrf.mxu1 }
0x17da   :  { %v5493_v41 = vadd.f32 %v14083_v22, %v16504_v30 }
0x17db   :  { %v16742_v2 = vpop.f32.mrf.mxu0  ;;  %v16744_v13 = vpop.f32.mrf.mxu1 }
0x17dc   :  { %v5622_v15 = vadd.f32 %v14103_v43, %v5493_v41 }
0x17dd   :  { %v14086_v47 = vpop.f32.mrf.mxu0  ;;  %v14140_v55 = vpop.f32.mrf.mxu1 }
0x17de   :  { %v5507_v0 = vadd.f32 %v14086_v47, %v16507_v45 }
0x17df   :  { %v16747_v26 = vpop.f32.mrf.mxu0  ;;  %v5853_v18 = vpop.f32.mrf.mxu1 }
0x17e0   :  { %v5638_v27 = vadd.f32 %v14106_v1, %v5507_v0 }
0x17e1   :  { %v14089_v48 = vpop.f32.mrf.mxu0  ;;  %v14143_v62 = vpop.f32.mrf.mxu1 }
0x17e2   :  { %v5521_v7 = vadd.f32 %v14089_v48, %v5392_v60 }
0x17e3   :  { %v16749_v61 = vpop.f32.mrf.mxu0  ;;  %v16751_v11 = vpop.f32.mrf.mxu1 }
0x17e4   :  { %v5654_v30 = vadd.f32 %v14109_v21, %v5521_v7 }
0x17e5   :  { %v14120_v17 = vpop.f32.mrf.mxu0  ;;  %v14146_v4 = vpop.f32.mrf.mxu1 }
0x17e6   :  { %v5743_v29 = vadd.f32 %v14120_v17, %v5606_v51 }
0x17e7   :  { %v5736_v5 = vpop.f32.mrf.mxu0  ;;  %v16753_v35 = vpop.f32.mrf.mxu1 }
0x17e8   :  { %v16755_v23 = vadd.f32 %v14140_v55, %v5743_v29 }
0x17e9   :  { %v14123_v45 = vpop.f32.mrf.mxu0  ;;  %v14149_v43 = vpop.f32.mrf.mxu1 }
0x17ea   :  { %v5755_v56 = vadd.f32 %v14123_v45, %v5622_v15 }
0x17eb   :  { %v16757_v63 = vpop.f32.mrf.mxu0  ;;  %v16761_v1 = vpop.f32.mrf.mxu1 }
0x17ec   :  { %v16759_v52 = vadd.f32 %v14143_v62, %v5755_v56  ;;  %17873 = vst [vmem:[#allocation22_spill] sm:$0xff] %v16761_v1  ;;  %v5189_v62 = vadd.f32 %v16492_v19, %v16495_v9 }
0x17ed   :  { %v14126_v60 = vpop.f32.mrf.mxu0 }
0x17ee   :  { %v5767_v36 = vadd.f32 %v14126_v60, %v5638_v27  ;;  %v5350_v27 = vadd.f32 %v16487_v28, %v5189_v62 }
0x17ef   :  { %v16763_v22 = vpop.f32.mrf.mxu0 }
0x17f0   :  { %v16765_v21 = vadd.f32 %v14146_v4, %v5767_v36  ;;  %v6072_v51 = vpop.f32.mrf.mxu1  ;;  %v5472_v4 = vadd.f32 %v5471_v42, %v5350_v27 }
0x17f1   :  { %v14129_v41 = vpop.f32.mrf.mxu0 }
0x17f2   :  { %v5779_v47 = vadd.f32 %v14129_v41, %v5654_v30  ;;  %v14171_v55 = vpop.f32.mrf.mxu1  ;;  %v5598_v30 = vadd.f32 %v16731_v8, %v5472_v4 }
0x17f3   :  { %v16767_v0 = vpop.f32.mrf.mxu0 }
0x17f4   :  { %17874 = vst [vmem:[#allocation21_spill] sm:$0xff] %v16767_v0  ;;  %v16769_v15 = vadd.f32 %v14149_v43, %v5779_v47  ;;  %v5737_v41 = vadd.f32 %v5736_v5, %v5598_v30 }
0x17f5   :  { %v5981_v48 = vpop.f32.mrf.mxu0 }
0x17f6   :  { %17875 = vst [vmem:[#allocation23_spill] sm:$0xff] %v16769_v15  ;;  %v6073_v56 = vadd.f32 %v6072_v51, %v5981_v48  ;;  %v5854_v1 = vadd.f32 %v5853_v18, %v5737_v41 }
0x17f7   :  { %v14160_v7 = vpop.f32.mrf.mxu0 }
0x17fa   :  { %v6229_v17 = vpop.f32.mrf.mxu1 }
0x17fc   :  { %v14193_v29 = vpop.f32.mrf.mxu1 }
0x17fd   :  { %v6152_v45 = vpop.f32.mrf.mxu0 }
0x17fe   :  { %v6153_v36 = vadd.f32 %v6152_v45, %v6073_v56 }
0x17ff   :  { %v14182_v60 = vpop.f32.mrf.mxu0 }
0x1800   :  { %v6230_v55 = vadd.f32 %v6229_v17, %v6153_v36  ;;  %v6401_v17 = vpop.permute.xlu0 %6400 }
0x1805   :  { %v6312_v43 = vpop.f32.mrf.mxu0  ;;  %v6387_v47 = vpop.f32.mrf.mxu1 }
0x1806   :  { %v6313_v46 = vadd.f32 %v6312_v43, %v6230_v55 }
0x1807   :  { %v14204_v7 = vpop.f32.mrf.mxu0  ;;  %v14215_v15 = vpop.f32.mrf.mxu1 }
0x1808   :  { %v6388_v9 = vadd.f32 %v6387_v47, %v6313_v46 }
0x180a   :  { %v6391_v0 = vadd.f32 %v6388_v9, %v5854_v1 }
0x180c   :  { %15092 = vtanh.f32 %v6391_v0  ;;  %v12579_v42 = vmul.f32 -1.442695, %v6391_v0 }
0x180e   :  { %15094 = vpow2.f32 %v12579_v42 }
0x1819   :  { %v15093_v28 = vpop.eup %15092 }
0x181a   :  { %6405 = vrot.lane.b32.xlu1 %v15093_v28, %s15316_s2 }
0x181b   :  { %v15095_v51 = vpop.eup %15094 }
0x181c   :  { %v6395_v48 = vadd.f32 1.0, %v15095_v51 }
0x181e   :  { %15096 = vrcp.f32 %v6395_v48 }
0x182b   :  { %v15097_v8 = vpop.eup %15096 }
0x182c   :  { %v6403_v27 = vmul.f32 %v15097_v8, %v6401_v17 }
0x188c   :  { %v6406_v5 = vpop.permute.xlu1 %6405 }
0x188d   :  { %v6408_v62 = vmul.f32 %v15097_v8, %v6406_v5 }
0x188f   :  { %6410 = vrot.lane.b32.xlu1 %v6408_v62, %s15317_s25 }
0x1901   :  { %v6411_v15 = vpop.permute.xlu1 %6410 }
0x1902   :  { %v16777_v18 = vadd.f32 %v6411_v15, %v6403_v27 }
0x1904   :  { %15098 = vtanh.f32 %v16777_v18 }
0x1911   :  { %v15099_v46 = vpop.eup %15098 }
0x1912   :  { %6416 = vrot.lane.b32.xlu0 %v15099_v46, %s15316_s2 }
0x1984   :  { %v6417_v1 = vpop.permute.xlu0 %6416 }
0x1985   :  { %v6419_v0 = vmul.f32 %v15097_v8, %v6417_v1 }
0x1987   :  { %6421 = vrot.lane.b32.xlu1 %v6419_v0, %s15317_s25 }
0x19f9   :  { %v6422_v29 = vpop.permute.xlu1 %6421 }
0x19fa   :  { %6424 = vst.msk [vmem:[#allocation2] sm:$0xff] %vm918_vm1, %v6422_v29  ;;  %v6425_v45 = vsel %vm918_vm1, %v6422_v29, 0 }
0x19fb   :  { %v6496_v4 = vand.u32 4294901760, %v6425_v45 }
0x19fd   :  { %v6497_v56 = vsub.f32 %v6425_v45, %v6496_v4  ;;  %14236 = vmatmul.mubr.f32.vlgmr.msra.gmra.mxu1 %v6496_v4 }
0x19fe   :  { %14250 = vmatpush3.msra.mxu1 %v16530_v59  ;;  %14257 = vmatprep.mubr.msk.f32.mxu1 %vm15315_vm2, %v17868_v53 }
0x19ff   :  { %v6498_v60 = vand.u32 4294901760, %v6497_v56  ;;  %14251 = vmatprep.subr.mxu1 %v17868_v53 }
0x1a00   :  { %14252 = vmatpush3.msra.mxu1 %v16544_v20 }
0x1a01   :  { %v6499_v36 = vsub.f32 %v6497_v56, %v6498_v60  ;;  %14253 = vmatprep.subr.mxu1 %v17868_v53 }
0x1a02   :  { %14254 = vmatpush3.msra.mxu1 %v16562_v54 }
0x1a03   :  { %14255 = vmatprep.subr.mxu1 %v17868_v53  ;;  %v6500_v30 = vand.u32 4294901760, %v6499_v36 }
0x1a04   :  { %14256 = vmatpush3.msra.mxu1 %v16584_v12 }
0x1a05   :  { %14258 = vmatmul.mubr.f32.vlgmr.msra.gmra.mxu1 %v6498_v60  ;;  %14271 = vmatprep.subr.mxu1 %v17868_v53 }
0x1a06   :  { %14225 = vmatmul.mubr.f32.vlgmr.msra.gmra.mxu0 %v6500_v30  ;;  %14272 = vmatpush3.msra.mxu1 %v16530_v59 }
0x1a07   :  { %14239 = vmatpush3.msra.mxu0 %v16542_v31  ;;  %14273 = vmatprep.subr.mxu1 %v17868_v53 }
0x1a08   :  { %14240 = vmatprep.subr.mxu0 %v17868_v53  ;;  %14274 = vmatpush3.msra.mxu1 %v16544_v20 }
0x1a09   :  { %14241 = vmatpush3.msra.mxu0 %v16560_v58  ;;  %14275 = vmatprep.subr.mxu1 %v17868_v53 }
0x1a0a   :  { %14242 = vmatprep.subr.mxu0 %v17868_v53  ;;  %14276 = vmatpush3.msra.mxu1 %v16562_v54 }
0x1a0b   :  { %14243 = vmatpush3.msra.mxu0 %v16582_v14  ;;  %14277 = vmatprep.subr.mxu1 %v17868_v53 }
0x1a0c   :  { %14244 = vmatprep.subr.mxu0 %v17868_v53  ;;  %14246 = vmatprep.mubr.msk.f32.mxu0 %vm15315_vm2, %v17868_v53 }
0x1a0d   :  { %14245 = vmatpush3.msra.mxu0 %v16601_v37  ;;  %14278 = vmatpush3.msra.mxu1 %v16584_v12 }
0x1a0e   :  { %14279 = vmatprep.mubr.msk.f32.mxu1 %vm15315_vm2, %v17868_v53  ;;  %14247 = vmatmul.mubr.f32.vlgmr.msra.gmra.mxu0 %v6497_v56 }
0x1a0f   :  { %14260 = vmatprep.subr.mxu0 %v17868_v53  ;;  %14280 = vmatmul.mubr.f32.vlgmr.msra.gmra.mxu1 %v6496_v4 }
0x1a10   :  { %14261 = vmatpush3.msra.mxu0 %v16557_v6  ;;  %14268 = vmatprep.mubr.msk.f32.mxu0 %vm15315_vm2, %v17868_v53 }
0x1a11   :  { %14262 = vmatprep.subr.mxu0 %v17868_v53  ;;  %14293 = vmatprep.subr.mxu1 %v17868_v53 }
0x1a12   :  { %14263 = vmatpush3.msra.mxu0 %v16579_v49  ;;  %14294 = vmatpush3.msra.mxu1 %v16593_v50 }
0x1a13   :  { %14264 = vmatprep.subr.mxu0 %v17868_v53  ;;  %14295 = vmatprep.subr.mxu1 %v17868_v53 }
0x1a14   :  { %14265 = vmatpush3.msra.mxu0 %v16598_v44  ;;  %14296 = vmatpush3.msra.mxu1 %v16612_v34 }
0x1a15   :  { %14266 = vmatprep.subr.mxu0 %v17868_v53  ;;  %14297 = vmatprep.subr.mxu1 %v17868_v53 }
0x1a16   :  { %14267 = vmatpush3.msra.mxu0 %v16617_v3  ;;  %14298 = vmatpush3.msra.mxu1 %v16628_v40 }
0x1a17   :  { %14269 = vmatmul.mubr.f32.vlgmr.msra.gmra.mxu0 %v6496_v4  ;;  %14299 = vmatprep.subr.mxu1 %v17868_v53 }
0x1a18   :  { %14300 = vmatpush3.msra.mxu1 %v16640_v33  ;;  %14282 = vmatprep.subr.mxu0 %v17868_v53 }
0x1a19   :  { %14301 = vmatprep.mubr.msk.f32.mxu1 %vm15315_vm2, %v17868_v53  ;;  %14315 = vmatprep.subr.mxu1 %v17868_v53 }
0x1a1a   :  { %14283 = vmatpush3.msra.mxu0 %v16530_v59  ;;  %14290 = vmatprep.mubr.msk.f32.mxu0 %vm15315_vm2, %v17868_v53 }
0x1a1b   :  { %14284 = vmatprep.subr.mxu0 %v17868_v53 }
0x1a1c   :  { %14285 = vmatpush3.msra.mxu0 %v16544_v20 }
0x1a1d   :  { %14286 = vmatprep.subr.mxu0 %v17868_v53 }
0x1a1e   :  { %14287 = vmatpush3.msra.mxu0 %v16562_v54 }
0x1a1f   :  { %14288 = vmatprep.subr.mxu0 %v17868_v53 }
0x1a20   :  { %14289 = vmatpush3.msra.mxu0 %v16584_v12 }
0x1a21   :  { %14304 = vmatprep.subr.mxu0 %v17868_v53 }
0x1abd   :  { %v6593_v41 = vpop.f32.mrf.mxu1 }
0x1abf   :  { %v14237_v55 = vpop.f32.mrf.mxu1 }
0x1ac5   :  { %v6750_v43 = vpop.f32.mrf.mxu1 }
0x1ac6   :  { %v6502_v47 = vpop.f32.mrf.mxu0 }
0x1ac7   :  { %v14259_v7 = vpop.f32.mrf.mxu1  ;;  %v6594_v51 = vadd.f32 %v6593_v41, %v6502_v47 }
0x1ac8   :  { %v14226_v9 = vpop.f32.mrf.mxu0 }
0x1ace   :  { %v6673_v28 = vpop.f32.mrf.mxu0 }
0x1acf   :  { %v6908_v42 = vpop.f32.mrf.mxu1  ;;  %v6674_v5 = vadd.f32 %v6673_v28, %v6594_v51 }
0x1ad0   :  { %v14248_v48 = vpop.f32.mrf.mxu0 }
0x1ad1   :  { %v14281_v8 = vpop.f32.mrf.mxu1  ;;  %v6751_v62 = vadd.f32 %v6750_v43, %v6674_v5 }
0x1ad7   :  { %v6833_v17 = vpop.f32.mrf.mxu0 }
0x1ad8   :  { %v6834_v27 = vadd.f32 %v6833_v17, %v6751_v62 }
0x1ad9   :  { %v14270_v15 = vpop.f32.mrf.mxu0 }
0x1ada   :  { %v6909_v46 = vadd.f32 %v6908_v42, %v6834_v27 }
0x1adc   :  { %v6912_v1 = vadd.f32 %v6909_v46, %v16755_v23  ;;  %v5209_v46 = vadd.f32 %v16492_v19, %v16502_v10 }
0x1ade   :  { %15100 = vtanh.f32 %v6912_v1  ;;  %v12580_v29 = vmul.f32 -1.442695, %v6912_v1  ;;  %v5362_v1 = vadd.f32 %v16500_v32, %v5209_v46 }
0x1ae0   :  { %15102 = vpow2.f32 %v12580_v29 }
0x1aeb   :  { %v15101_v0 = vpop.eup %15100 }
0x1aec   :  { %6922 = vrot.lane.b32.xlu0 %v15101_v0, %s15316_s2 }
0x1aed   :  { %v15103_v45 = vpop.eup %15102 }
0x1aee   :  { %v6916_v4 = vadd.f32 1.0, %v15103_v45  ;;  %v5486_v45 = vadd.f32 %v16742_v2, %v5362_v1 }
0x1af0   :  { %15104 = vrcp.f32 %v6916_v4 }
0x1afd   :  { %v15105_v56 = vpop.eup %15104 }
0x1afe   :  { %v6920_v30 = vmul.f32 %v15105_v56, %v16777_v18 }
0x1b5e   :  { %v6923_v60 = vpop.permute.xlu0 %6922 }
0x1b5f   :  { %v6925_v36 = vmul.f32 %v15105_v56, %v6923_v60 }
0x1b61   :  { %6927 = vrot.lane.b32.xlu1 %v6925_v36, %s15317_s25 }
0x1bd3   :  { %v6928_v41 = vpop.permute.xlu1 %6927 }
0x1bd4   :  { %v16848_v55 = vadd.f32 %v6928_v41, %v6920_v30  ;;  %v5614_v30 = vadd.f32 %v16736_v57, %v5486_v45 }
0x1bd6   :  { %15106 = vtanh.f32 %v16848_v55  ;;  %v5749_v41 = vadd.f32 %v16757_v63, %v5614_v30 }
0x1bd8   :  { %v5866_v19 = vadd.f32 %v16751_v11, %v5749_v41 }
0x1be3   :  { %v15107_v23 = vpop.eup %15106 }
0x1be4   :  { %6933 = vrot.lane.b32.xlu0 %v15107_v23, %s15316_s2 }
0x1c56   :  { %v6934_v43 = vpop.permute.xlu0 %6933 }
0x1c57   :  { %v6936_v47 = vmul.f32 %v15105_v56, %v6934_v43 }
0x1c59   :  { %6938 = vrot.lane.b32.xlu1 %v6936_v47, %s15317_s25 }
0x1ccb   :  { %v6939_v7 = vpop.permute.xlu1 %6938 }
0x1ccc   :  { %6941 = vst.msk [vmem:[#allocation2 + $0x8] sm:$0xff] %vm918_vm1, %v6939_v7  ;;  %v6942_v9 = vsel %vm918_vm1, %v6939_v7, 0 }
0x1ccd   :  { %v7013_v28 = vand.u32 4294901760, %v6942_v9 }
0x1ccf   :  { %v7014_v42 = vsub.f32 %v6942_v9, %v7013_v28  ;;  %14302 = vmatmul.mubr.f32.vlgmr.msra.gmra.mxu1 %v7013_v28 }
0x1cd0   :  { %14316 = vmatpush3.msra.mxu1 %v16530_v59  ;;  %14323 = vmatprep.mubr.msk.f32.mxu1 %vm15315_vm2, %v17868_v53 }
0x1cd1   :  { %v7015_v18 = vand.u32 4294901760, %v7014_v42  ;;  %14317 = vmatprep.subr.mxu1 %v17868_v53 }
0x1cd2   :  { %14318 = vmatpush3.msra.mxu1 %v16544_v20 }
0x1cd3   :  { %v7016_v51 = vsub.f32 %v7014_v42, %v7015_v18  ;;  %14319 = vmatprep.subr.mxu1 %v17868_v53 }
0x1cd4   :  { %14320 = vmatpush3.msra.mxu1 %v16562_v54 }
0x1cd5   :  { %14321 = vmatprep.subr.mxu1 %v17868_v53  ;;  %v7017_v48 = vand.u32 4294901760, %v7016_v51 }
0x1cd6   :  { %14322 = vmatpush3.msra.mxu1 %v16584_v12 }
0x1cd7   :  { %14324 = vmatmul.mubr.f32.vlgmr.msra.gmra.mxu1 %v7015_v18  ;;  %14337 = vmatprep.subr.mxu1 %v17868_v53 }
0x1cd8   :  { %14291 = vmatmul.mubr.f32.vlgmr.msra.gmra.mxu0 %v7017_v48  ;;  %14338 = vmatpush3.msra.mxu1 %v16530_v59 }
0x1cd9   :  { %14305 = vmatpush3.msra.mxu0 %v16542_v31  ;;  %14339 = vmatprep.subr.mxu1 %v17868_v53 }
0x1cda   :  { %14306 = vmatprep.subr.mxu0 %v17868_v53  ;;  %14340 = vmatpush3.msra.mxu1 %v16544_v20 }
0x1cdb   :  { %14307 = vmatpush3.msra.mxu0 %v16560_v58  ;;  %14341 = vmatprep.subr.mxu1 %v17868_v53 }
0x1cdc   :  { %14308 = vmatprep.subr.mxu0 %v17868_v53  ;;  %14342 = vmatpush3.msra.mxu1 %v16562_v54 }
0x1cdd   :  { %14309 = vmatpush3.msra.mxu0 %v16582_v14  ;;  %14343 = vmatprep.subr.mxu1 %v17868_v53 }
0x1cde   :  { %14310 = vmatprep.subr.mxu0 %v17868_v53  ;;  %14312 = vmatprep.mubr.msk.f32.mxu0 %vm15315_vm2, %v17868_v53 }
0x1cdf   :  { %14311 = vmatpush3.msra.mxu0 %v16601_v37  ;;  %14344 = vmatpush3.msra.mxu1 %v16584_v12 }
0x1ce0   :  { %14345 = vmatprep.mubr.msk.f32.mxu1 %vm15315_vm2, %v17868_v53  ;;  %14313 = vmatmul.mubr.f32.vlgmr.msra.gmra.mxu0 %v7014_v42 }
0x1ce1   :  { %14326 = vmatprep.subr.mxu0 %v17868_v53  ;;  %14346 = vmatmul.mubr.f32.vlgmr.msra.gmra.mxu1 %v7013_v28 }
0x1ce2   :  { %14327 = vmatpush3.msra.mxu0 %v16557_v6  ;;  %14334 = vmatprep.mubr.msk.f32.mxu0 %vm15315_vm2, %v17868_v53 }
0x1ce3   :  { %14328 = vmatprep.subr.mxu0 %v17868_v53  ;;  %14359 = vmatprep.subr.mxu1 %v17868_v53 }
0x1ce4   :  { %14329 = vmatpush3.msra.mxu0 %v16579_v49  ;;  %14360 = vmatpush3.msra.mxu1 %v16593_v50 }
0x1ce5   :  { %14330 = vmatprep.subr.mxu0 %v17868_v53  ;;  %14361 = vmatprep.subr.mxu1 %v17868_v53 }
0x1ce6   :  { %14331 = vmatpush3.msra.mxu0 %v16598_v44  ;;  %14362 = vmatpush3.msra.mxu1 %v16612_v34 }
0x1ce7   :  { %14332 = vmatprep.subr.mxu0 %v17868_v53  ;;  %14363 = vmatprep.subr.mxu1 %v17868_v53 }
0x1ce8   :  { %14333 = vmatpush3.msra.mxu0 %v16617_v3  ;;  %14364 = vmatpush3.msra.mxu1 %v16628_v40 }
0x1ce9   :  { %14335 = vmatmul.mubr.f32.vlgmr.msra.gmra.mxu0 %v7013_v28  ;;  %14365 = vmatprep.subr.mxu1 %v17868_v53 }
0x1cea   :  { %14366 = vmatpush3.msra.mxu1 %v16640_v33  ;;  %14348 = vmatprep.subr.mxu0 %v17868_v53 }
0x1ceb   :  { %14367 = vmatprep.mubr.msk.f32.mxu1 %vm15315_vm2, %v17868_v53  ;;  %14381 = vmatprep.subr.mxu1 %v17868_v53 }
0x1cec   :  { %14349 = vmatpush3.msra.mxu0 %v16530_v59  ;;  %14356 = vmatprep.mubr.msk.f32.mxu0 %vm15315_vm2, %v17868_v53 }
0x1ced   :  { %14350 = vmatprep.subr.mxu0 %v17868_v53 }
0x1cee   :  { %14351 = vmatpush3.msra.mxu0 %v16544_v20 }
0x1cef   :  { %14352 = vmatprep.subr.mxu0 %v17868_v53 }
0x1cf0   :  { %14353 = vmatpush3.msra.mxu0 %v16562_v54 }
0x1cf1   :  { %14354 = vmatprep.subr.mxu0 %v17868_v53 }
0x1cf2   :  { %14355 = vmatpush3.msra.mxu0 %v16584_v12 }
0x1cf3   :  { %14370 = vmatprep.subr.mxu0 %v17868_v53 }
0x1d8f   :  { %v7110_v8 = vpop.f32.mrf.mxu1 }
0x1d91   :  { %v14303_v5 = vpop.f32.mrf.mxu1 }
0x1d97   :  { %v7267_v62 = vpop.f32.mrf.mxu1 }
0x1d98   :  { %v7019_v17 = vpop.f32.mrf.mxu0 }
0x1d99   :  { %v14325_v27 = vpop.f32.mrf.mxu1  ;;  %v7111_v4 = vadd.f32 %v7110_v8, %v7019_v17 }
0x1d9a   :  { %v14292_v15 = vpop.f32.mrf.mxu0 }
0x1da0   :  { %v7190_v0 = vpop.f32.mrf.mxu0 }
0x1da1   :  { %v7425_v29 = vpop.f32.mrf.mxu1  ;;  %v7191_v36 = vadd.f32 %v7190_v0, %v7111_v4 }
0x1da2   :  { %v14314_v56 = vpop.f32.mrf.mxu0 }
0x1da3   :  { %v14347_v60 = vpop.f32.mrf.mxu1  ;;  %v7268_v23 = vadd.f32 %v7267_v62, %v7191_v36 }
0x1da9   :  { %v7350_v43 = vpop.f32.mrf.mxu0 }
0x1daa   :  { %v7351_v47 = vadd.f32 %v7350_v43, %v7268_v23 }
0x1dab   :  { %v14336_v7 = vpop.f32.mrf.mxu0 }
0x1dac   :  { %v7426_v10 = vadd.f32 %v7425_v29, %v7351_v47 }
0x1dae   :  { %v7429_v32 = vadd.f32 %v7426_v10, %v5866_v19 }
0x1db0   :  { %15108 = vtanh.f32 %v7429_v32  ;;  %v12581_v2 = vmul.f32 -1.442695, %v7429_v32 }
0x1db2   :  { %15110 = vpow2.f32 %v12581_v2 }
0x1dbd   :  { %v15109_v9 = vpop.eup %15108 }
0x1dbe   :  { %7439 = vrot.lane.b32.xlu0 %v15109_v9, %s15316_s2 }
0x1dbf   :  { %v15111_v28 = vpop.eup %15110 }
0x1dc0   :  { %v7433_v42 = vadd.f32 1.0, %v15111_v28 }
0x1dc2   :  { %15112 = vrcp.f32 %v7433_v42 }
0x1dcf   :  { %v15113_v57 = vpop.eup %15112 }
0x1dd0   :  { %v7437_v51 = vmul.f32 %v15113_v57, %v16848_v55 }
0x1e30   :  { %v7440_v18 = vpop.permute.xlu0 %7439 }
0x1e31   :  { %v7442_v63 = vmul.f32 %v15113_v57, %v7440_v18 }
0x1e33   :  { %7444 = vrot.lane.b32.xlu1 %v7442_v63, %s15317_s25 }
0x1ea5   :  { %v7445_v48 = vpop.permute.xlu1 %7444 }
0x1ea6   :  { %v16925_v11 = vadd.f32 %v7445_v48, %v7437_v51 }
0x1ea8   :  { %15114 = vtanh.f32 %v16925_v11 }
0x1eb5   :  { %v15115_v8 = vpop.eup %15114 }
0x1eb6   :  { %7450 = vrot.lane.b32.xlu0 %v15115_v8, %s15316_s2 }
0x1f28   :  { %v7451_v5 = vpop.permute.xlu0 %7450 }
0x1f29   :  { %v7453_v62 = vmul.f32 %v15113_v57, %v7451_v5 }
0x1f2b   :  { %7455 = vrot.lane.b32.xlu1 %v7453_v62, %s15317_s25 }
0x1f9d   :  { %v7456_v17 = vpop.permute.xlu1 %7455 }
0x1f9e   :  { %7458 = vst.msk [vmem:[#allocation2 + $0x10] sm:$0xff] %vm918_vm1, %v7456_v17  ;;  %v7459_v27 = vsel %vm918_vm1, %v7456_v17, 0 }
0x1f9f   :  { %v7530_v15 = vand.u32 4294901760, %v7459_v27 }
0x1fa1   :  { %v7531_v46 = vsub.f32 %v7459_v27, %v7530_v15  ;;  %14368 = vmatmul.mubr.f32.vlgmr.msra.gmra.mxu1 %v7530_v15 }
0x1fa2   :  { %14382 = vmatpush3.msra.mxu1 %v16530_v59  ;;  %14389 = vmatprep.mubr.msk.f32.mxu1 %vm15315_vm2, %v17868_v53 }
0x1fa3   :  { %v7532_v55 = vand.u32 4294901760, %v7531_v46  ;;  %14383 = vmatprep.subr.mxu1 %v17868_v53 }
0x1fa4   :  { %14384 = vmatpush3.msra.mxu1 %v16544_v20 }
0x1fa5   :  { %v7533_v1 = vsub.f32 %v7531_v46, %v7532_v55  ;;  %14385 = vmatprep.subr.mxu1 %v17868_v53 }
0x1fa6   :  { %14386 = vmatpush3.msra.mxu1 %v16562_v54 }
0x1fa7   :  { %v7534_v0 = vand.u32 4294901760, %v7533_v1  ;;  %14387 = vmatprep.subr.mxu1 %v17868_v53 }
0x1fa8   :  { %14388 = vmatpush3.msra.mxu1 %v16584_v12 }
0x1fa9   :  { %14390 = vmatmul.mubr.f32.vlgmr.msra.gmra.mxu1 %v7532_v55  ;;  %14403 = vmatprep.subr.mxu1 %v17868_v53 }
0x1faa   :  { %14357 = vmatmul.mubr.f32.vlgmr.msra.gmra.mxu0 %v7534_v0  ;;  %14404 = vmatpush3.msra.mxu1 %v16530_v59 }
0x1fab   :  { %14371 = vmatpush3.msra.mxu0 %v16542_v31  ;;  %14405 = vmatprep.subr.mxu1 %v17868_v53 }
0x1fac   :  { %14372 = vmatprep.subr.mxu0 %v17868_v53  ;;  %14406 = vmatpush3.msra.mxu1 %v16544_v20 }
0x1fad   :  { %14373 = vmatpush3.msra.mxu0 %v16560_v58  ;;  %14407 = vmatprep.subr.mxu1 %v17868_v53 }
0x1fae   :  { %14374 = vmatprep.subr.mxu0 %v17868_v53  ;;  %14408 = vmatpush3.msra.mxu1 %v16562_v54 }
0x1faf   :  { %14375 = vmatpush3.msra.mxu0 %v16582_v14  ;;  %14409 = vmatprep.subr.mxu1 %v17868_v53 }
0x1fb0   :  { %14376 = vmatprep.subr.mxu0 %v17868_v53  ;;  %14378 = vmatprep.mubr.msk.f32.mxu0 %vm15315_vm2, %v17868_v53 }
0x1fb1   :  { %14377 = vmatpush3.msra.mxu0 %v16601_v37  ;;  %14410 = vmatpush3.msra.mxu1 %v16584_v12 }
0x1fb2   :  { %14411 = vmatprep.mubr.msk.f32.mxu1 %vm15315_vm2, %v17868_v53  ;;  %14379 = vmatmul.mubr.f32.vlgmr.msra.gmra.mxu0 %v7531_v46 }
0x1fb3   :  { %14392 = vmatprep.subr.mxu0 %v17868_v53  ;;  %14412 = vmatmul.mubr.f32.vlgmr.msra.gmra.mxu1 %v7530_v15 }
0x1fb4   :  { %14393 = vmatpush3.msra.mxu0 %v16557_v6  ;;  %14400 = vmatprep.mubr.msk.f32.mxu0 %vm15315_vm2, %v17868_v53 }
0x1fb5   :  { %14394 = vmatprep.subr.mxu0 %v17868_v53  ;;  %14425 = vmatprep.subr.mxu1 %v17868_v53 }
0x1fb6   :  { %14395 = vmatpush3.msra.mxu0 %v16579_v49  ;;  %14426 = vmatpush3.msra.mxu1 %v16593_v50 }
0x1fb7   :  { %14396 = vmatprep.subr.mxu0 %v17868_v53  ;;  %14427 = vmatprep.subr.mxu1 %v17868_v53 }
0x1fb8   :  { %14397 = vmatpush3.msra.mxu0 %v16598_v44  ;;  %14428 = vmatpush3.msra.mxu1 %v16612_v34 }
0x1fb9   :  { %14398 = vmatprep.subr.mxu0 %v17868_v53  ;;  %14429 = vmatprep.subr.mxu1 %v17868_v53 }
0x1fba   :  { %14399 = vmatpush3.msra.mxu0 %v16617_v3  ;;  %14430 = vmatpush3.msra.mxu1 %v16628_v40 }
0x1fbb   :  { %14401 = vmatmul.mubr.f32.vlgmr.msra.gmra.mxu0 %v7530_v15  ;;  %14431 = vmatprep.subr.mxu1 %v17868_v53 }
0x1fbc   :  { %14432 = vmatpush3.msra.mxu1 %v16640_v33  ;;  %14414 = vmatprep.subr.mxu0 %v17868_v53 }
0x1fbd   :  { %14433 = vmatprep.mubr.msk.f32.mxu1 %vm15315_vm2, %v17868_v53  ;;  %14447 = vmatprep.subr.mxu1 %v17868_v53 }
0x1fbe   :  { %14415 = vmatpush3.msra.mxu0 %v16530_v59  ;;  %14422 = vmatprep.mubr.msk.f32.mxu0 %vm15315_vm2, %v17868_v53 }
0x1fbf   :  { %14416 = vmatprep.subr.mxu0 %v17868_v53 }
0x1fc0   :  { %14417 = vmatpush3.msra.mxu0 %v16544_v20 }
0x1fc1   :  { %14418 = vmatprep.subr.mxu0 %v17868_v53 }
0x1fc2   :  { %14419 = vmatpush3.msra.mxu0 %v16562_v54 }
0x1fc3   :  { %14420 = vmatprep.subr.mxu0 %v17868_v53 }
0x1fc4   :  { %14421 = vmatpush3.msra.mxu0 %v16584_v12 }
0x1fc5   :  { %14436 = vmatprep.subr.mxu0 %v17868_v53 }
0x2061   :  { %v7627_v29 = vpop.f32.mrf.mxu1 }
0x2063   :  { %v14369_v45 = vpop.f32.mrf.mxu1 }
0x2069   :  { %v7784_v4 = vpop.f32.mrf.mxu1 }
0x206a   :  { %v7536_v56 = vpop.f32.mrf.mxu0 }
0x206b   :  { %v14391_v60 = vpop.f32.mrf.mxu1  ;;  %v7628_v23 = vadd.f32 %v7627_v29, %v7536_v56 }
0x206c   :  { %v14358_v36 = vpop.f32.mrf.mxu0 }
0x2072   :  { %v7707_v30 = vpop.f32.mrf.mxu0 }
0x2073   :  { %v7942_v41 = vpop.f32.mrf.mxu1  ;;  %v7708_v7 = vadd.f32 %v7707_v30, %v7628_v23  ;;  %v17066_v23 = vld [vmem:[%s17847_s8] ss:$0 sm:$0xff] }
0x2074   :  { %v14380_v43 = vpop.f32.mrf.mxu0 }
0x2075   :  { %v14413_v47 = vpop.f32.mrf.mxu1  ;;  %v7785_v19 = vadd.f32 %v7784_v4, %v7708_v7  ;;  %v5229_v43 = vadd.f32 %v17066_v23, %v16729_v39 }
0x2077   :  { %v5374_v47 = vadd.f32 %v16725_v38, %v5229_v43 }
0x207b   :  { %v7867_v10 = vpop.f32.mrf.mxu0 }
0x207c   :  { %v7868_v32 = vadd.f32 %v7867_v10, %v7785_v19  ;;  %v5500_v10 = vadd.f32 %v16747_v26, %v5374_v47 }
0x207d   :  { %v14402_v9 = vpop.f32.mrf.mxu0 }
0x207e   :  { %v7943_v2 = vadd.f32 %v7942_v41, %v7868_v32 }
0x2080   :  { %v7946_v28 = vadd.f32 %v7943_v2, %v16759_v52 }
0x2082   :  { %15116 = vtanh.f32 %v7946_v28  ;;  %v12582_v57 = vmul.f32 -1.442695, %v7946_v28 }
0x2084   :  { %15118 = vpow2.f32 %v12582_v57 }
0x208f   :  { %v15117_v42 = vpop.eup %15116 }
0x2090   :  { %7956 = vrot.lane.b32.xlu0 %v15117_v42, %s15316_s2  ;;  %v5630_v42 = vadd.f32 %v16739_v25, %v5500_v10 }
0x2091   :  { %v15119_v18 = vpop.eup %15118 }
0x2092   :  { %v7950_v63 = vadd.f32 1.0, %v15119_v18  ;;  %v5761_v57 = vadd.f32 %v16763_v22, %v5630_v42 }
0x2094   :  { %15120 = vrcp.f32 %v7950_v63  ;;  %v5878_v39 = vadd.f32 %v16753_v35, %v5761_v57 }
0x20a1   :  { %v15121_v51 = vpop.eup %15120 }
0x20a2   :  { %v7954_v5 = vmul.f32 %v15121_v51, %v16925_v11 }
0x2102   :  { %v7957_v48 = vpop.permute.xlu0 %7956 }
0x2103   :  { %v7959_v8 = vmul.f32 %v15121_v51, %v7957_v48 }
0x2105   :  { %7961 = vrot.lane.b32.xlu1 %v7959_v8, %s15317_s25 }
0x2177   :  { %v7962_v62 = vpop.permute.xlu1 %7961 }
0x2178   :  { %v16996_v17 = vadd.f32 %v7962_v62, %v7954_v5 }
0x217a   :  { %15122 = vtanh.f32 %v16996_v17 }
0x2187   :  { %v15123_v52 = vpop.eup %15122 }
0x2188   :  { %7967 = vrot.lane.b32.xlu0 %v15123_v52, %s15316_s2 }
0x21fa   :  { %v7968_v27 = vpop.permute.xlu0 %7967 }
0x21fb   :  { %v7970_v15 = vmul.f32 %v15121_v51, %v7968_v27 }
0x21fd   :  { %7972 = vrot.lane.b32.xlu1 %v7970_v15, %s15317_s25 }
0x226f   :  { %v7973_v46 = vpop.permute.xlu1 %7972 }
0x2270   :  { %7975 = vst.msk [vmem:[#allocation2 + $0x18] sm:$0xff] %vm918_vm1, %v7973_v46  ;;  %v7976_v55 = vsel %vm918_vm1, %v7973_v46, 0 }
0x2271   :  { %v8047_v1 = vand.u32 4294901760, %v7976_v55 }
0x2273   :  { %v8048_v0 = vsub.f32 %v7976_v55, %v8047_v1  ;;  %14434 = vmatmul.mubr.f32.vlgmr.msra.gmra.mxu1 %v8047_v1 }
0x2274   :  { %14448 = vmatpush3.msra.mxu1 %v16530_v59  ;;  %14455 = vmatprep.mubr.msk.f32.mxu1 %vm15315_vm2, %v17868_v53 }
0x2275   :  { %v8049_v11 = vand.u32 4294901760, %v8048_v0  ;;  %14449 = vmatprep.subr.mxu1 %v17868_v53 }
0x2276   :  { %14450 = vmatpush3.msra.mxu1 %v16544_v20 }
0x2277   :  { %v8050_v29 = vsub.f32 %v8048_v0, %v8049_v11  ;;  %14451 = vmatprep.subr.mxu1 %v17868_v53 }
0x2278   :  { %14452 = vmatpush3.msra.mxu1 %v16562_v54 }
0x2279   :  { %v8051_v45 = vand.u32 4294901760, %v8050_v29  ;;  %14453 = vmatprep.subr.mxu1 %v17868_v53 }
0x227a   :  { %14454 = vmatpush3.msra.mxu1 %v16584_v12 }
0x227b   :  { %14456 = vmatmul.mubr.f32.vlgmr.msra.gmra.mxu1 %v8049_v11  ;;  %14469 = vmatprep.subr.mxu1 %v17868_v53 }
0x227c   :  { %14423 = vmatmul.mubr.f32.vlgmr.msra.gmra.mxu0 %v8051_v45  ;;  %14470 = vmatpush3.msra.mxu1 %v16530_v59 }
0x227d   :  { %14437 = vmatpush3.msra.mxu0 %v16542_v31  ;;  %14471 = vmatprep.subr.mxu1 %v17868_v53 }
0x227e   :  { %14438 = vmatprep.subr.mxu0 %v17868_v53  ;;  %14472 = vmatpush3.msra.mxu1 %v16544_v20 }
0x227f   :  { %14439 = vmatpush3.msra.mxu0 %v16560_v58  ;;  %14473 = vmatprep.subr.mxu1 %v17868_v53 }
0x2280   :  { %14440 = vmatprep.subr.mxu0 %v17868_v53  ;;  %14474 = vmatpush3.msra.mxu1 %v16562_v54 }
0x2281   :  { %14441 = vmatpush3.msra.mxu0 %v16582_v14  ;;  %14475 = vmatprep.subr.mxu1 %v17868_v53 }
0x2282   :  { %14442 = vmatprep.subr.mxu0 %v17868_v53  ;;  %14444 = vmatprep.mubr.msk.f32.mxu0 %vm15315_vm2, %v17868_v53 }
0x2283   :  { %14443 = vmatpush3.msra.mxu0 %v16601_v37  ;;  %14476 = vmatpush3.msra.mxu1 %v16584_v12 }
0x2284   :  { %14477 = vmatprep.mubr.msk.f32.mxu1 %vm15315_vm2, %v17868_v53  ;;  %14445 = vmatmul.mubr.f32.vlgmr.msra.gmra.mxu0 %v8048_v0 }
0x2285   :  { %14458 = vmatprep.subr.mxu0 %v17868_v53  ;;  %14478 = vmatmul.mubr.f32.vlgmr.msra.gmra.mxu1 %v8047_v1 }
0x2286   :  { %14459 = vmatpush3.msra.mxu0 %v16557_v6  ;;  %14466 = vmatprep.mubr.msk.f32.mxu0 %vm15315_vm2, %v17868_v53 }
0x2287   :  { %14460 = vmatprep.subr.mxu0 %v17868_v53  ;;  %14491 = vmatprep.subr.mxu1 %v17868_v53 }
0x2288   :  { %14461 = vmatpush3.msra.mxu0 %v16579_v49  ;;  %14492 = vmatpush3.msra.mxu1 %v16593_v50 }
0x2289   :  { %14462 = vmatprep.subr.mxu0 %v17868_v53  ;;  %14493 = vmatprep.subr.mxu1 %v17868_v53 }
0x228a   :  { %14463 = vmatpush3.msra.mxu0 %v16598_v44  ;;  %14494 = vmatpush3.msra.mxu1 %v16612_v34 }
0x228b   :  { %14464 = vmatprep.subr.mxu0 %v17868_v53  ;;  %14495 = vmatprep.subr.mxu1 %v17868_v53 }
0x228c   :  { %14465 = vmatpush3.msra.mxu0 %v16617_v3  ;;  %14496 = vmatpush3.msra.mxu1 %v16628_v40 }
0x228d   :  { %14467 = vmatmul.mubr.f32.vlgmr.msra.gmra.mxu0 %v8047_v1  ;;  %14497 = vmatprep.subr.mxu1 %v17868_v53 }
0x228e   :  { %14498 = vmatpush3.msra.mxu1 %v16640_v33  ;;  %14480 = vmatprep.subr.mxu0 %v17868_v53 }
0x228f   :  { %14499 = vmatprep.mubr.msk.f32.mxu1 %vm15315_vm2, %v17868_v53  ;;  %14513 = vmatprep.subr.mxu1 %v17868_v53 }
0x2290   :  { %14481 = vmatpush3.msra.mxu0 %v16530_v59  ;;  %14488 = vmatprep.mubr.msk.f32.mxu0 %vm15315_vm2, %v17868_v53 }
0x2291   :  { %14482 = vmatprep.subr.mxu0 %v17868_v53 }
0x2292   :  { %14483 = vmatpush3.msra.mxu0 %v16544_v20 }
0x2293   :  { %14484 = vmatprep.subr.mxu0 %v17868_v53 }
0x2294   :  { %14485 = vmatpush3.msra.mxu0 %v16562_v54 }
0x2295   :  { %14486 = vmatprep.subr.mxu0 %v17868_v53 }
0x2296   :  { %14487 = vmatpush3.msra.mxu0 %v16584_v12 }
0x2297   :  { %14502 = vmatprep.subr.mxu0 %v17868_v53 }
0x2333   :  { %v8144_v4 = vpop.f32.mrf.mxu1 }
0x2335   :  { %v14435_v56 = vpop.f32.mrf.mxu1 }
0x233b   :  { %v8301_v60 = vpop.f32.mrf.mxu1 }
0x233c   :  { %v8053_v36 = vpop.f32.mrf.mxu0 }
0x233d   :  { %v14457_v30 = vpop.f32.mrf.mxu1  ;;  %v8145_v32 = vadd.f32 %v8144_v4, %v8053_v36 }
0x233e   :  { %v14424_v41 = vpop.f32.mrf.mxu0 }
0x2344   :  { %v8224_v7 = vpop.f32.mrf.mxu0 }
0x2345   :  { %v8459_v19 = vpop.f32.mrf.mxu1  ;;  %v8225_v28 = vadd.f32 %v8224_v7, %v8145_v32 }
0x2346   :  { %v14446_v9 = vpop.f32.mrf.mxu0 }
0x2347   :  { %v14479_v2 = vpop.f32.mrf.mxu1  ;;  %v8302_v18 = vadd.f32 %v8301_v60, %v8225_v28 }
0x234d   :  { %v8384_v63 = vpop.f32.mrf.mxu0 }
0x234e   :  { %v8385_v51 = vadd.f32 %v8384_v63, %v8302_v18 }
0x234f   :  { %v14468_v48 = vpop.f32.mrf.mxu0 }
0x2350   :  { %v8460_v8 = vadd.f32 %v8459_v19, %v8385_v51 }
0x2352   :  { %v8463_v38 = vadd.f32 %v8460_v8, %v5878_v39 }
0x2354   :  { %15124 = vtanh.f32 %v8463_v38  ;;  %v12583_v26 = vmul.f32 -1.442695, %v8463_v38 }
0x2356   :  { %15126 = vpow2.f32 %v12583_v26 }
0x2361   :  { %v15125_v5 = vpop.eup %15124 }
0x2362   :  { %8473 = vrot.lane.b32.xlu0 %v15125_v5, %s15316_s2 }
0x2363   :  { %v15127_v62 = vpop.eup %15126 }
0x2364   :  { %v8467_v52 = vadd.f32 1.0, %v15127_v62 }
0x2366   :  { %15128 = vrcp.f32 %v8467_v52 }
0x2373   :  { %v15129_v25 = vpop.eup %15128 }
0x2374   :  { %v8471_v15 = vmul.f32 %v15129_v25, %v16996_v17 }
0x23d4   :  { %v8474_v27 = vpop.permute.xlu0 %8473 }
0x23d5   :  { %v8476_v22 = vmul.f32 %v15129_v25, %v8474_v27 }
0x23d7   :  { %8478 = vrot.lane.b32.xlu1 %v8476_v22, %s15317_s25 }
0x2449   :  { %v8479_v46 = vpop.permute.xlu1 %8478 }
0x244a   :  { %v17078_v35 = vadd.f32 %v8479_v46, %v8471_v15 }
0x244c   :  { %15130 = vtanh.f32 %v17078_v35 }
0x2459   :  { %v15131_v55 = vpop.eup %15130 }
0x245a   :  { %8484 = vrot.lane.b32.xlu0 %v15131_v55, %s15316_s2 }
0x24cc   :  { %v8485_v1 = vpop.permute.xlu0 %8484 }
0x24cd   :  { %v8487_v0 = vmul.f32 %v15129_v25, %v8485_v1 }
0x24cf   :  { %8489 = vrot.lane.b32.xlu1 %v8487_v0, %s15317_s25 }
0x2541   :  { %v8490_v11 = vpop.permute.xlu1 %8489 }
0x2542   :  { %8492 = vst.msk [vmem:[#allocation2 + $0x20] sm:$0xff] %vm918_vm1, %v8490_v11  ;;  %v8493_v29 = vsel %vm918_vm1, %v8490_v11, 0 }
0x2543   :  { %v8564_v45 = vand.u32 4294901760, %v8493_v29 }
0x2545   :  { %v8565_v4 = vsub.f32 %v8493_v29, %v8564_v45  ;;  %14500 = vmatmul.mubr.f32.vlgmr.msra.gmra.mxu1 %v8564_v45 }
0x2546   :  { %14514 = vmatpush3.msra.mxu1 %v16530_v59  ;;  %14521 = vmatprep.mubr.msk.f32.mxu1 %vm15315_vm2, %v17868_v53 }
0x2547   :  { %v8566_v17 = vand.u32 4294901760, %v8565_v4  ;;  %14515 = vmatprep.subr.mxu1 %v17868_v53 }
0x2548   :  { %14516 = vmatpush3.msra.mxu1 %v16544_v20 }
0x2549   :  { %v8567_v56 = vsub.f32 %v8565_v4, %v8566_v17  ;;  %14517 = vmatprep.subr.mxu1 %v17868_v53 }
0x254a   :  { %14518 = vmatpush3.msra.mxu1 %v16562_v54 }
0x254b   :  { %v8568_v60 = vand.u32 4294901760, %v8567_v56  ;;  %14519 = vmatprep.subr.mxu1 %v17868_v53  ;;  %v5249_v56 = vadd.f32 %v17066_v23, %v16734_v24 }
0x254c   :  { %14520 = vmatpush3.msra.mxu1 %v16584_v12 }
0x254d   :  { %14522 = vmatmul.mubr.f32.vlgmr.msra.gmra.mxu1 %v8566_v17  ;;  %14535 = vmatprep.subr.mxu1 %v17868_v53 }
0x254e   :  { %14489 = vmatmul.mubr.f32.vlgmr.msra.gmra.mxu0 %v8568_v60  ;;  %14536 = vmatpush3.msra.mxu1 %v16530_v59  ;;  %v5386_v60 = vadd.f32 %v16727_v16, %v5249_v56 }
0x254f   :  { %14503 = vmatpush3.msra.mxu0 %v16542_v31  ;;  %14537 = vmatprep.subr.mxu1 %v17868_v53 }
0x2550   :  { %14504 = vmatprep.subr.mxu0 %v17868_v53  ;;  %14538 = vmatpush3.msra.mxu1 %v16544_v20 }
0x2551   :  { %14505 = vmatpush3.msra.mxu0 %v16560_v58  ;;  %14539 = vmatprep.subr.mxu1 %v17868_v53 }
0x2552   :  { %14506 = vmatprep.subr.mxu0 %v17868_v53  ;;  %14540 = vmatpush3.msra.mxu1 %v16562_v54 }
0x2553   :  { %14507 = vmatpush3.msra.mxu0 %v16582_v14  ;;  %14541 = vmatprep.subr.mxu1 %v17868_v53 }
0x2554   :  { %14508 = vmatprep.subr.mxu0 %v17868_v53  ;;  %14510 = vmatprep.mubr.msk.f32.mxu0 %vm15315_vm2, %v17868_v53 }
0x2555   :  { %14509 = vmatpush3.msra.mxu0 %v16601_v37  ;;  %14542 = vmatpush3.msra.mxu1 %v16584_v12 }
0x2556   :  { %14543 = vmatprep.mubr.msk.f32.mxu1 %vm15315_vm2, %v17868_v53  ;;  %14511 = vmatmul.mubr.f32.vlgmr.msra.gmra.mxu0 %v8565_v4 }
0x2557   :  { %14524 = vmatprep.subr.mxu0 %v17868_v53  ;;  %14544 = vmatmul.mubr.f32.vlgmr.msra.gmra.mxu1 %v8564_v45 }
0x2558   :  { %14525 = vmatpush3.msra.mxu0 %v16557_v6  ;;  %14532 = vmatprep.mubr.msk.f32.mxu0 %vm15315_vm2, %v17868_v53 }
0x2559   :  { %14526 = vmatprep.subr.mxu0 %v17868_v53  ;;  %14557 = vmatprep.subr.mxu1 %v17868_v53 }
0x255a   :  { %14527 = vmatpush3.msra.mxu0 %v16579_v49  ;;  %14558 = vmatpush3.msra.mxu1 %v16593_v50 }
0x255b   :  { %14528 = vmatprep.subr.mxu0 %v17868_v53  ;;  %14559 = vmatprep.subr.mxu1 %v17868_v53 }
0x255c   :  { %14529 = vmatpush3.msra.mxu0 %v16598_v44  ;;  %14560 = vmatpush3.msra.mxu1 %v16612_v34 }
0x255d   :  { %14530 = vmatprep.subr.mxu0 %v17868_v53  ;;  %14561 = vmatprep.subr.mxu1 %v17868_v53 }
0x255e   :  { %14531 = vmatpush3.msra.mxu0 %v16617_v3  ;;  %14562 = vmatpush3.msra.mxu1 %v16628_v40 }
0x255f   :  { %14533 = vmatmul.mubr.f32.vlgmr.msra.gmra.mxu0 %v8564_v45  ;;  %14563 = vmatprep.subr.mxu1 %v17868_v53 }
0x2560   :  { %14564 = vmatpush3.msra.mxu1 %v16640_v33  ;;  %14546 = vmatprep.subr.mxu0 %v17868_v53 }
0x2561   :  { %14565 = vmatprep.mubr.msk.f32.mxu1 %vm15315_vm2, %v17868_v53  ;;  %14579 = vmatprep.subr.mxu1 %v17868_v53 }
0x2562   :  { %14547 = vmatpush3.msra.mxu0 %v16530_v59  ;;  %14554 = vmatprep.mubr.msk.f32.mxu0 %vm15315_vm2, %v17868_v53 }
0x2563   :  { %14548 = vmatprep.subr.mxu0 %v17868_v53 }
0x2564   :  { %14549 = vmatpush3.msra.mxu0 %v16544_v20 }
0x2565   :  { %14550 = vmatprep.subr.mxu0 %v17868_v53 }
0x2566   :  { %14551 = vmatpush3.msra.mxu0 %v16562_v54 }
0x2567   :  { %14552 = vmatprep.subr.mxu0 %v17868_v53 }
0x2568   :  { %14553 = vmatpush3.msra.mxu0 %v16584_v12 }
0x2569   :  { %14568 = vmatprep.subr.mxu0 %v17868_v53 }
0x2605   :  { %v8661_v36 = vpop.f32.mrf.mxu1 }
0x2607   :  { %v14501_v30 = vpop.f32.mrf.mxu1 }
0x260d   :  { %v8818_v41 = vpop.f32.mrf.mxu1 }
0x260e   :  { %v8570_v43 = vpop.f32.mrf.mxu0 }
0x260f   :  { %v14523_v47 = vpop.f32.mrf.mxu1  ;;  %v8662_v32 = vadd.f32 %v8661_v36, %v8570_v43 }
0x2610   :  { %v14490_v7 = vpop.f32.mrf.mxu0 }
0x2616   :  { %v8741_v19 = vpop.f32.mrf.mxu0 }
0x2617   :  { %v8976_v10 = vpop.f32.mrf.mxu1  ;;  %v8742_v28 = vadd.f32 %v8741_v19, %v8662_v32  ;;  %v17876_v32 = vld [vmem:[#allocation21_spill] sm:$0xff] }
0x2618   :  { %v14512_v9 = vpop.f32.mrf.mxu0 }
0x2619   :  { %v14545_v2 = vpop.f32.mrf.mxu1  ;;  %v8819_v42 = vadd.f32 %v8818_v41, %v8742_v28  ;;  %v5514_v41 = vadd.f32 %v16749_v61, %v5386_v60 }
0x261f   :  { %v8901_v57 = vpop.f32.mrf.mxu0 }
0x2620   :  { %v8902_v18 = vadd.f32 %v8901_v57, %v8819_v42 }
0x2621   :  { %v14534_v63 = vpop.f32.mrf.mxu0 }
0x2622   :  { %v8977_v51 = vadd.f32 %v8976_v10, %v8902_v18  ;;  %v5646_v10 = vadd.f32 %v16744_v13, %v5514_v41  ;;  %v17877_v18 = vld [vmem:[#allocation22_spill] sm:$0xff] }
0x2624   :  { %v8980_v48 = vadd.f32 %v8977_v51, %v16765_v21  ;;  %v5773_v9 = vadd.f32 %v17876_v32, %v5646_v10 }
0x2626   :  { %15132 = vtanh.f32 %v8980_v48  ;;  %v12584_v8 = vmul.f32 -1.442695, %v8980_v48  ;;  %v5890_v24 = vadd.f32 %v17877_v18, %v5773_v9  ;;  %v10055_v9 = vld [vmem:[#allocation2 + $0x18] sm:$0xff] }
0x2628   :  { %15134 = vpow2.f32 %v12584_v8 }
0x2633   :  { %v15133_v39 = vpop.eup %15132 }
0x2634   :  { %8990 = vrot.lane.b32.xlu0 %v15133_v39, %s15316_s2 }
0x2635   :  { %v15135_v38 = vpop.eup %15134 }
0x2636   :  { %v8984_v5 = vadd.f32 1.0, %v15135_v38 }
0x2638   :  { %15136 = vrcp.f32 %v8984_v5 }
0x2645   :  { %v15137_v26 = vpop.eup %15136 }
0x2646   :  { %v8988_v25 = vmul.f32 %v15137_v26, %v17078_v35 }
0x26a6   :  { %v8991_v62 = vpop.permute.xlu0 %8990 }
0x26a7   :  { %v8993_v52 = vmul.f32 %v15137_v26, %v8991_v62 }
0x26a9   :  { %8995 = vrot.lane.b32.xlu1 %v8993_v52, %s15317_s25 }
0x271b   :  { %v8996_v27 = vpop.permute.xlu1 %8995 }
0x271c   :  { %v17149_v22 = vadd.f32 %v8996_v27, %v8988_v25 }
0x271e   :  { %15138 = vtanh.f32 %v17149_v22 }
0x272b   :  { %v15139_v21 = vpop.eup %15138 }
0x272c   :  { %9001 = vrot.lane.b32.xlu0 %v15139_v21, %s15316_s2  ;;  %v10063_v21 = vld [vmem:[%s17848_s9 + $0x18] sm:$0xff] }
0x279e   :  { %v9002_v15 = vpop.permute.xlu0 %9001 }
0x279f   :  { %v9004_v46 = vmul.f32 %v15137_v26, %v9002_v15 }
0x27a1   :  { %9006 = vrot.lane.b32.xlu1 %v9004_v46, %s15317_s25  ;;  %v10062_v46 = vld [vmem:[%s17848_s9 + $0x10] sm:$0xff] }
0x2813   :  { %v9007_v55 = vpop.permute.xlu1 %9006 }
0x2814   :  { %9009 = vst.msk [vmem:[#allocation2 + $0x28] sm:$0xff] %vm918_vm1, %v9007_v55  ;;  %v9010_v1 = vsel %vm918_vm1, %v9007_v55, 0  ;;  %v17241_v55 = vand.u32 4294901760, %v10063_v21 }
0x2815   :  { %v9081_v0 = vand.u32 4294901760, %v9010_v1 }
0x2817   :  { %v9082_v11 = vsub.f32 %v9010_v1, %v9081_v0  ;;  %14566 = vmatmul.mubr.f32.vlgmr.msra.gmra.mxu1 %v9081_v0 }
0x2818   :  { %14580 = vmatpush3.msra.mxu1 %v16530_v59  ;;  %14587 = vmatprep.mubr.msk.f32.mxu1 %vm15315_vm2, %v17868_v53 }
0x2819   :  { %v9083_v35 = vand.u32 4294901760, %v9082_v11  ;;  %14581 = vmatprep.subr.mxu1 %v17868_v53 }
0x281a   :  { %14582 = vmatpush3.msra.mxu1 %v16544_v20 }
0x281b   :  { %v9084_v29 = vsub.f32 %v9082_v11, %v9083_v35  ;;  %14583 = vmatprep.subr.mxu1 %v17868_v53 }
0x281c   :  { %14584 = vmatpush3.msra.mxu1 %v16562_v54 }
0x281d   :  { %v9085_v45 = vand.u32 4294901760, %v9084_v29  ;;  %14585 = vmatprep.subr.mxu1 %v17868_v53  ;;  %v10060_v29 = vld [vmem:[%s17848_s9] sm:$0xff] }
0x281e   :  { %14586 = vmatpush3.msra.mxu1 %v16584_v12 }
0x281f   :  { %14588 = vmatmul.mubr.f32.vlgmr.msra.gmra.mxu1 %v9083_v35  ;;  %14601 = vmatprep.subr.mxu1 %v17868_v53 }
0x2820   :  { %14555 = vmatmul.mubr.f32.vlgmr.msra.gmra.mxu0 %v9085_v45  ;;  %14602 = vmatpush3.msra.mxu1 %v16530_v59  ;;  %v17259_v45 = vsub.f32 %v10063_v21, %v17241_v55 }
0x2821   :  { %14569 = vmatpush3.msra.mxu0 %v16542_v31  ;;  %14603 = vmatprep.subr.mxu1 %v17868_v53 }
0x2822   :  { %14570 = vmatprep.subr.mxu0 %v17868_v53  ;;  %14604 = vmatpush3.msra.mxu1 %v16544_v20  ;;  %v17273_v56 = vand.u32 4294901760, %v17259_v45 }
0x2823   :  { %14571 = vmatpush3.msra.mxu0 %v16560_v58  ;;  %14605 = vmatprep.subr.mxu1 %v17868_v53 }
0x2824   :  { %14572 = vmatprep.subr.mxu0 %v17868_v53  ;;  %14606 = vmatpush3.msra.mxu1 %v16562_v54 }
0x2825   :  { %14573 = vmatpush3.msra.mxu0 %v16582_v14  ;;  %14607 = vmatprep.subr.mxu1 %v17868_v53 }
0x2826   :  { %14574 = vmatprep.subr.mxu0 %v17868_v53  ;;  %14576 = vmatprep.mubr.msk.f32.mxu0 %vm15315_vm2, %v17868_v53 }
0x2827   :  { %14575 = vmatpush3.msra.mxu0 %v16601_v37  ;;  %14608 = vmatpush3.msra.mxu1 %v16584_v12 }
0x2828   :  { %14609 = vmatprep.mubr.msk.f32.mxu1 %vm15315_vm2, %v17868_v53  ;;  %14577 = vmatmul.mubr.f32.vlgmr.msra.gmra.mxu0 %v9082_v11  ;;  %v17251_v11 = vand.u32 4294901760, %v10062_v46 }
0x2829   :  { %14590 = vmatprep.subr.mxu0 %v17868_v53  ;;  %14610 = vmatmul.mubr.f32.vlgmr.msra.gmra.mxu1 %v9081_v0 }
0x282a   :  { %14591 = vmatpush3.msra.mxu0 %v16557_v6  ;;  %14598 = vmatprep.mubr.msk.f32.mxu0 %vm15315_vm2, %v17868_v53 }
0x282b   :  { %14592 = vmatprep.subr.mxu0 %v17868_v53  ;;  %14623 = vmatprep.subr.mxu1 %v17868_v53 }
0x282c   :  { %14593 = vmatpush3.msra.mxu0 %v16579_v49  ;;  %14624 = vmatpush3.msra.mxu1 %v16593_v50 }
0x282d   :  { %14594 = vmatprep.subr.mxu0 %v17868_v53  ;;  %14625 = vmatprep.subr.mxu1 %v17868_v53 }
0x282e   :  { %14595 = vmatpush3.msra.mxu0 %v16598_v44  ;;  %14626 = vmatpush3.msra.mxu1 %v16612_v34 }
0x282f   :  { %14596 = vmatprep.subr.mxu0 %v17868_v53  ;;  %14627 = vmatprep.subr.mxu1 %v17868_v53 }
0x2830   :  { %14597 = vmatpush3.msra.mxu0 %v16617_v3  ;;  %14628 = vmatpush3.msra.mxu1 %v16628_v40 }
0x2831   :  { %14599 = vmatmul.mubr.f32.vlgmr.msra.gmra.mxu0 %v9081_v0  ;;  %14629 = vmatprep.subr.mxu1 %v17868_v53  ;;  %v10061_v0 = vld [vmem:[%s17848_s9 + $0x8] sm:$0xff]  ;;  %s15318_s9 = smov 96  }
0x2832   :  { %14630 = vmatpush3.msra.mxu1 %v16640_v33  ;;  %14612 = vmatprep.subr.mxu0 %v17868_v53 }
0x2833   :  { %14631 = vmatprep.mubr.msk.f32.mxu1 %vm15315_vm2, %v17868_v53  ;;  %14645 = vmatprep.subr.mxu1 %v17868_v53 }
0x2834   :  { %14613 = vmatpush3.msra.mxu0 %v16530_v59  ;;  %14620 = vmatprep.mubr.msk.f32.mxu0 %vm15315_vm2, %v17868_v53 }
0x2835   :  { %14614 = vmatprep.subr.mxu0 %v17868_v53 }
0x2836   :  { %14615 = vmatpush3.msra.mxu0 %v16544_v20 }
0x2837   :  { %14616 = vmatprep.subr.mxu0 %v17868_v53 }
0x2838   :  { %14617 = vmatpush3.msra.mxu0 %v16562_v54 }
0x2839   :  { %14618 = vmatprep.subr.mxu0 %v17868_v53 }
0x283a   :  { %14619 = vmatpush3.msra.mxu0 %v16584_v12 }
0x283b   :  { %14634 = vmatprep.subr.mxu0 %v17868_v53 }
0x28d7   :  { %v9178_v50 = vpop.f32.mrf.mxu1 }
0x28d9   :  { %v14567_v34 = vpop.f32.mrf.mxu1 }
0x28df   :  { %v9335_v40 = vpop.f32.mrf.mxu1 }
0x28e0   :  { %v9087_v33 = vpop.f32.mrf.mxu0 }
0x28e1   :  { %v14589_v4 = vpop.f32.mrf.mxu1  ;;  %v9179_v43 = vadd.f32 %v9178_v50, %v9087_v33  ;;  %v17261_v50 = vand.u32 4294901760, %v10061_v0  ;;  %v17266_v33 = vsub.f32 %v10062_v46, %v17251_v11 }
0x28e2   :  { %v14556_v17 = vpop.f32.mrf.mxu0  ;;  %v17268_v4 = vand.u32 4294901760, %v10060_v29 }
0x28e3   :  { %v17276_v60 = vsub.f32 %v10061_v0, %v17261_v50 }
0x28e4   :  { %v17285_v41 = vsub.f32 %v10060_v29, %v17268_v4 }
0x28e8   :  { %v9258_v36 = vpop.f32.mrf.mxu0 }
0x28e9   :  { %v9493_v30 = vpop.f32.mrf.mxu1  ;;  %v9259_v19 = vadd.f32 %v9258_v36, %v9179_v43  ;;  %v10272_v43 = vsub.f32 %v17259_v45, %v17273_v56 }
0x28ea   :  { %v14578_v47 = vpop.f32.mrf.mxu0 }
0x28eb   :  { %v14611_v7 = vpop.f32.mrf.mxu1  ;;  %v9336_v2 = vadd.f32 %v9335_v40, %v9259_v19  ;;  %v10052_v40 = vld [vmem:[#allocation2] sm:$0xff]  ;;  %v10054_v19 = vld [vmem:[#allocation2 + $0x10] sm:$0xff] }
0x28ec   :  { %v10072_v36 = vsel %vm918_vm1, %v10052_v40, 0  ;;  %v10053_v7 = vld [vmem:[#allocation2 + $0x8] sm:$0xff] }
0x28ed   :  { %v17293_v47 = vand.u32 4294901760, %v10072_v36  ;;  %v10075_v10 = vsel %vm918_vm1, %v10053_v7, 0 }
0x28ef   :  { %v17316_v32 = vsub.f32 %v10072_v36, %v17293_v47 }
0x28f1   :  { %v9418_v28 = vpop.f32.mrf.mxu0 }
0x28f2   :  { %v9419_v42 = vadd.f32 %v9418_v28, %v9336_v2 }
0x28f3   :  { %v14600_v57 = vpop.f32.mrf.mxu0 }
0x28f4   :  { %v9494_v23 = vadd.f32 %v9493_v30, %v9419_v42  ;;  %v17282_v30 = vand.u32 4294901760, %v17266_v33  ;;  %v10056_v42 = vld [vmem:[#allocation2 + $0x20] sm:$0xff]  ;;  %v17327_v57 = vand.u32 4294901760, %v10075_v10 }
0x28f6   :  { %v9497_v16 = vadd.f32 %v9494_v23, %v5890_v24  ;;  %v10081_v24 = vsel %vm918_vm1, %v10055_v9, 0  ;;  %v10084_v23 = vsel %vm918_vm1, %v10056_v42, 0 }
0x28f8   :  { %15140 = vtanh.f32 %v9497_v16  ;;  %v12585_v61 = vmul.f32 -1.442695, %v9497_v16  ;;  %v10057_v16 = vld [vmem:[#allocation2 + $0x28] sm:$0xff] }
0x28fa   :  { %15142 = vpow2.f32 %v12585_v61 }
0x2905   :  { %v15141_v63 = vpop.eup %15140 }
0x2906   :  { %9507 = vrot.lane.b32.xlu0 %v15141_v63, %s15316_s2 }
0x2907   :  { %v15143_v51 = vpop.eup %15142 }
0x2908   :  { %v9501_v48 = vadd.f32 1.0, %v15143_v51  ;;  %v17341_v51 = vand.u32 4294901760, %v10081_v24 }
0x290a   :  { %15144 = vrcp.f32 %v9501_v48 }
0x2917   :  { %v15145_v13 = vpop.eup %15144 }
0x2918   :  { %v9505_v38 = vmul.f32 %v15145_v13, %v17149_v22 }
0x2978   :  { %v9508_v39 = vpop.permute.xlu0 %9507 }
0x2979   :  { %v9510_v8 = vmul.f32 %v15145_v13, %v9508_v39  ;;  %v10087_v39 = vsel %vm918_vm1, %v10057_v16, 0 }
0x297b   :  { %9512 = vrot.lane.b32.xlu1 %v9510_v8, %s15317_s25 }
0x29ed   :  { %v9513_v5 = vpop.permute.xlu1 %9512 }
0x29ee   :  { %v17226_v26 = vadd.f32 %v9513_v5, %v9505_v38  ;;  %v17360_v38 = vsub.f32 %v10081_v24, %v17341_v51 }
0x29f0   :  { %15146 = vtanh.f32 %v17226_v26  ;;  %v10196_v21 = vand.u32 4294901760, %v17360_v38 }
0x29f2   :  { %v10197_v0 = vsub.f32 %v17360_v38, %v10196_v21 }
0x29fd   :  { %v15147_v62 = vpop.eup %15146 }
0x29fe   :  { %9518 = vrot.lane.b32.xlu0 %v15147_v62, %s15316_s2  ;;  %v17363_v62 = vand.u32 4294901760, %v10087_v39 }
0x2a70   :  { %v9519_v52 = vpop.permute.xlu0 %9518 }
0x2a71   :  { %v9521_v25 = vmul.f32 %v15145_v13, %v9519_v52  ;;  %v17347_v13 = vand.u32 4294901760, %v10084_v23 }
0x2a73   :  { %9523 = vrot.lane.b32.xlu1 %v9521_v25, %s15317_s25 }
0x2ae5   :  { %v9524_v27 = vpop.permute.xlu1 %9523 }
0x2ae6   :  { %9526 = vst.msk [vmem:[#allocation2 + $0x30] sm:$0xff] %vm918_vm1, %v9524_v27  ;;  %v9527_v22 = vsel %vm918_vm1, %v9524_v27, 0  ;;  %v17381_v27 = vsub.f32 %v10087_v39, %v17363_v62 }
0x2ae7   :  { %v17236_v15 = vand.u32 4294901760, %v9527_v22 }
0x2ae9   :  { %v9599_v1 = vsub.f32 %v9527_v22, %v17236_v15  ;;  %14632 = vmatmul.mubr.f32.vlgmr.msra.gmra.mxu1 %v17236_v15 }
0x2aea   :  { %14646 = vmatpush3.msra.mxu1 %v16530_v59  ;;  %14653 = vmatprep.mubr.msk.f32.mxu1 %vm15315_vm2, %v17868_v53 }
0x2aeb   :  { %v9600_v35 = vand.u32 4294901760, %v9599_v1  ;;  %14647 = vmatprep.subr.mxu1 %v17868_v53 }
0x2aec   :  { %14648 = vmatpush3.msra.mxu1 %v16544_v20 }
0x2aed   :  { %v9601_v34 = vsub.f32 %v9599_v1, %v9600_v35  ;;  %14649 = vmatprep.subr.mxu1 %v17868_v53  ;;  %v10058_v61 = vld [vmem:[#allocation2 + $0x30] sm:$0xff] }
0x2aee   :  { %14650 = vmatpush3.msra.mxu1 %v16562_v54 }
0x2aef   :  { %v9602_v17 = vand.u32 4294901760, %v9601_v34  ;;  %14651 = vmatprep.subr.mxu1 %v17868_v53 }
0x2af0   :  { %14652 = vmatpush3.msra.mxu1 %v16584_v12 }
0x2af1   :  { %14654 = vmatmul.mubr.f32.vlgmr.msra.gmra.mxu1 %v9600_v35  ;;  %14667 = vmatprep.subr.mxu1 %v17868_v53  ;;  %v10216_v35 = vand.u32 4294901760, %v17381_v27 }
0x2af2   :  { %14621 = vmatmul.mubr.f32.vlgmr.msra.gmra.mxu0 %v9602_v17  ;;  %14668 = vmatpush3.msra.mxu1 %v16530_v59  ;;  %v17296_v59 = vand.u32 4294901760, %v17276_v60  ;;  %v10198_v17 = vand.u32 4294901760, %v10197_v0 }
0x2af3   :  { %14635 = vmatpush3.msra.mxu0 %v16542_v31  ;;  %14669 = vmatprep.subr.mxu1 %v17868_v53  ;;  %v10279_v31 = vsub.f32 %v17266_v33, %v17282_v30  ;;  %v10217_v36 = vsub.f32 %v17381_v27, %v10216_v35 }
0x2af4   :  { %14636 = vmatprep.subr.mxu0 %v17868_v53  ;;  %14670 = vmatpush3.msra.mxu1 %v16544_v20  ;;  %v17305_v20 = vand.u32 4294901760, %v17285_v41 }
0x2af5   :  { %14637 = vmatpush3.msra.mxu0 %v16560_v58  ;;  %14671 = vmatprep.subr.mxu1 %v17868_v53  ;;  %v10273_v58 = vand.u32 4294901760, %v10272_v43  ;;  %v10280_v2 = vand.u32 4294901760, %v10279_v31  ;;  %v10218_v31 = vand.u32 4294901760, %v10217_v36 }
0x2af6   :  { %14638 = vmatprep.subr.mxu0 %v17868_v53  ;;  %14672 = vmatpush3.msra.mxu1 %v16562_v54  ;;  %v10286_v54 = vsub.f32 %v17276_v60, %v17296_v59  ;;  %v10293_v28 = vsub.f32 %v17285_v41, %v17305_v20 }
0x2af7   :  { %14639 = vmatpush3.msra.mxu0 %v16582_v14  ;;  %14673 = vmatprep.subr.mxu1 %v17868_v53  ;;  %v10078_v14 = vsel %vm918_vm1, %v10054_v19, 0 }
0x2af8   :  { %14640 = vmatprep.subr.mxu0 %v17868_v53  ;;  %14642 = vmatprep.mubr.msk.f32.mxu0 %vm15315_vm2, %v17868_v53  ;;  %v17331_v18 = vand.u32 4294901760, %v10078_v14  ;;  %v10294_v63 = vand.u32 4294901760, %v10293_v28 }
0x2af9   :  { %14641 = vmatpush3.msra.mxu0 %v16601_v37  ;;  %14674 = vmatpush3.msra.mxu1 %v16584_v12  ;;  %v10287_v12 = vand.u32 4294901760, %v10286_v54  ;;  %v10166_v37 = vand.u32 4294901760, %v17316_v32 }
0x2afa   :  { %14675 = vmatprep.mubr.msk.f32.mxu1 %vm15315_vm2, %v17868_v53  ;;  %14643 = vmatmul.mubr.f32.vlgmr.msra.gmra.mxu0 %v9599_v1  ;;  %v17351_v8 = vsub.f32 %v10078_v14, %v17331_v18 }
0x2afb   :  { %14656 = vmatprep.subr.mxu0 %v17868_v53  ;;  %14676 = vmatmul.mubr.f32.vlgmr.msra.gmra.mxu1 %v17236_v15  ;;  %v10167_v48 = vsub.f32 %v17316_v32, %v10166_v37 }
0x2afc   :  { %14698 = vmatprep.subr.mxu1 %v10273_v58  ;;  %14657 = vmatpush3.msra.mxu0 %v16557_v6  ;;  %v17339_v6 = vsub.f32 %v10075_v10, %v17327_v57  ;;  %v10186_v52 = vand.u32 4294901760, %v17351_v8 }
0x2afd   :  { %14699 = vmatpush3.msra.mxu1 %v10273_v58  ;;  %14706 = vmatprep.mubr.f32.mxu1 %v17293_v47 }
0x2afe   :  { %14658 = vmatprep.subr.mxu0 %v17868_v53  ;;  %14700 = vmatprep.subr.mxu1 %v10280_v2  ;;  %v10176_v5 = vand.u32 4294901760, %v17339_v6  ;;  %v10187_v22 = vsub.f32 %v17351_v8, %v10186_v52 }
0x2aff   :  { %14659 = vmatpush3.msra.mxu0 %v16579_v49  ;;  %14701 = vmatpush3.msra.mxu1 %v10280_v2  ;;  %v10090_v49 = vsel %vm918_vm1, %v10058_v61, 0  ;;  %v17878_v61 = vld [vmem:[#allocation23_spill] sm:$0xff] }
0x2b00   :  { %14660 = vmatprep.subr.mxu0 %v17868_v53  ;;  %14702 = vmatprep.subr.mxu1 %v10287_v12  ;;  %v17367_v25 = vand.u32 4294901760, %v10090_v49  ;;  %v10188_v29 = vand.u32 4294901760, %v10187_v22 }
0x2b01   :  { %14661 = vmatpush3.msra.mxu0 %v16598_v44  ;;  %14703 = vmatpush3.msra.mxu1 %v10287_v12  ;;  %v10168_v44 = vand.u32 4294901760, %v10167_v48 }
0x2b02   :  { %14662 = vmatprep.subr.mxu0 %v17868_v53  ;;  %14704 = vmatprep.subr.mxu1 %v10294_v63  ;;  %v17390_v46 = vsub.f32 %v10090_v49, %v17367_v25 }
0x2b03   :  { %14663 = vmatpush3.msra.mxu0 %v16617_v3  ;;  %14664 = vmatprep.mubr.msk.f32.mxu0 %vm15315_vm2, %v17868_v53  ;;  %v17370_v3 = vsub.f32 %v10084_v23, %v17347_v13  ;;  %v10177_v53 = vsub.f32 %v17339_v6, %v10176_v5 }
0x2b04   :  { %14705 = vmatpush3.msra.mxu1 %v10294_v63  ;;  %14665 = vmatmul.mubr.f32.vlgmr.msra.gmra.mxu0 %v17236_v15  ;;  %v10226_v40 = vand.u32 4294901760, %v17390_v46 }
0x2b05   :  { %14678 = vmatprep.subr.mxu0 %v17241_v55  ;;  %14707 = vmatmul.mubr.f32.vlgmr.msra.gmra.mxu1 %v17327_v57  ;;  %v10206_v15 = vand.u32 4294901760, %v17370_v3  ;;  %v10178_v1 = vand.u32 4294901760, %v10177_v53 }
0x2b06   :  { %14679 = vmatpush3.msra.mxu0 %v17241_v55  ;;  %14686 = vmatprep.mubr.f32.mxu0 %v10168_v44  ;;  %v10227_v7 = vsub.f32 %v17390_v46, %v10226_v40 }
0x2b07   :  { %14709 = vmatprep.mubr.f32.mxu1 %v17331_v18  ;;  %14680 = vmatprep.subr.mxu0 %v17251_v11  ;;  %v10207_v34 = vsub.f32 %v17370_v3, %v10206_v15 }
0x2b08   :  { %14681 = vmatpush3.msra.mxu0 %v17251_v11  ;;  %14738 = vmatprep.subr.mxu1 %v17241_v55  ;;  %v10228_v19 = vand.u32 4294901760, %v10227_v7 }
0x2b09   :  { %14682 = vmatprep.subr.mxu0 %v17261_v50  ;;  %14710 = vmatmul.mubr.f32.gmra.mxu1 %v17341_v51  ;;  %v10208_v43 = vand.u32 4294901760, %v10207_v34 }
0x2b0a   :  { %14683 = vmatpush3.msra.mxu0 %v17261_v50  ;;  %14712 = vmatprep.mubr.f32.mxu1 %v17347_v13 }
0x2b0b   :  { %14684 = vmatprep.subr.mxu0 %v17268_v4  ;;  %14739 = vmatpush3.msra.mxu1 %v17241_v55 }
0x2b0c   :  { %14685 = vmatpush3.msra.mxu0 %v17268_v4  ;;  %14740 = vmatprep.subr.mxu1 %v17251_v11 }
0x2b0d   :  { %14687 = vmatmul.mubr.f32.vlgmr.msra.gmra.mxu0 %v10178_v1  ;;  %14713 = vmatmul.mubr.f32.gmra.mxu1 %v17363_v62 }
0x2b0e   :  { %14689 = vmatprep.mubr.f32.mxu0 %v10188_v29  ;;  %14715 = vmatprep.mubr.f32.mxu1 %v17367_v25 }
0x2b0f   :  { %14718 = vmatprep.subr.mxu0 %v17259_v45  ;;  %14741 = vmatpush3.msra.mxu1 %v17251_v11 }
0x2b10   :  { %14719 = vmatpush3.msra.mxu0 %v17259_v45  ;;  %14742 = vmatprep.subr.mxu1 %v17261_v50 }
0x2b11   :  { %14690 = vmatmul.mubr.f32.gmra.mxu0 %v10198_v17  ;;  %14720 = vmatprep.subr.mxu0 %v17266_v33 }
0x2b12   :  { %14692 = vmatprep.mubr.f32.mxu0 %v10208_v43  ;;  %14721 = vmatpush3.msra.mxu0 %v17266_v33  ;;  %v17879_v43 = vld [vmem:[#allocation20_spill] sm:$0xff] }
0x2b13   :  { %14743 = vmatpush3.msra.mxu1 %v17261_v50  ;;  %14722 = vmatprep.subr.mxu0 %v17276_v60 }
0x2b14   :  { %14744 = vmatprep.subr.mxu1 %v17268_v4  ;;  %14723 = vmatpush3.msra.mxu0 %v17276_v60 }
0x2b15   :  { %14693 = vmatmul.mubr.f32.gmra.mxu0 %v10218_v31  ;;  %14745 = vmatpush3.msra.mxu1 %v17268_v4 }
0x2b16   :  { %14695 = vmatprep.mubr.f32.mxu0 %v10228_v19  ;;  %14724 = vmatprep.subr.mxu0 %v17285_v41 }
0x2b17   :  { %14725 = vmatpush3.msra.mxu0 %v17285_v41  ;;  %14778 = vmatprep.subr.mxu1 %v17241_v55 }
0x2b18   :  { %14758 = vmatprep.subr.mxu0 %v17273_v56 }
0x2ba9   :  { %v9695_v45 = vpop.f32.mrf.mxu1 }
0x2bab   :  { %v14633_v33 = vpop.f32.mrf.mxu1 }
0x2bb1   :  { %v9852_v58 = vpop.f32.mrf.mxu1 }
0x2bb2   :  { %v9604_v54 = vpop.f32.mrf.mxu0 }
0x2bb3   :  { %v14655_v10 = vpop.f32.mrf.mxu1  ;;  %v9696_v28 = vadd.f32 %v9695_v45, %v9604_v54 }
0x2bb4   :  { %v14622_v14 = vpop.f32.mrf.mxu0 }
0x2bba   :  { %v9775_v9 = vpop.f32.mrf.mxu0 }
0x2bbb   :  { %v10010_v60 = vpop.f32.mrf.mxu1  ;;  %v9776_v12 = vadd.f32 %v9775_v9, %v9696_v28 }
0x2bbc   :  { %v14644_v2 = vpop.f32.mrf.mxu0 }
0x2bbd   :  { %v14677_v42 = vpop.f32.mrf.mxu1  ;;  %v9853_v24 = vadd.f32 %v9852_v58, %v9776_v12 }
0x2bc4   :  { %v9935_v23 = vpop.f32.mrf.mxu0 }
0x2bc5   :  { %v9936_v16 = vadd.f32 %v9935_v23, %v9853_v24 }
0x2bc6   :  { %v14666_v41 = vpop.f32.mrf.mxu0 }
0x2bc7   :  { %v10011_v63 = vadd.f32 %v10010_v60, %v9936_v16 }
0x2bc9   :  { %v10014_v48 = vadd.f32 %v10011_v63, %v17878_v61 }
0x2bcb   :  { %15148 = vtanh.f32 %v10014_v48  ;;  %v12586_v49 = vmul.f32 -1.442695, %v10014_v48 }
0x2bcd   :  { %15150 = vpow2.f32 %v12586_v49 }
0x2bd8   :  { %v15149_v39 = vpop.eup %15148 }
0x2bd9   :  { %10024 = vrot.lane.b32.xlu0 %v15149_v39, %s15316_s2 }
0x2bda   :  { %v15151_v44 = vpop.eup %15150 }
0x2bdb   :  { %v10018_v53 = vadd.f32 1.0, %v15151_v44 }
0x2bdd   :  { %15152 = vrcp.f32 %v10018_v53 }
0x2bea   :  { %v15153_v22 = vpop.eup %15152 }
0x2beb   :  { %v10022_v29 = vmul.f32 %v15153_v22, %v17226_v26 }
0x2c4b   :  { %v10025_v1 = vpop.permute.xlu0 %10024 }
0x2c4c   :  { %v10027_v0 = vmul.f32 %v15153_v22, %v10025_v1 }
0x2c4e   :  { %10029 = vrot.lane.b32.xlu1 %v10027_v0, %s15317_s25  ;;  %v12587_v0 = vld [vmem:[%s17849_s10] ss:$0 sm:$0xff] }
0x2cc0   :  { %v10030_v34 = vpop.permute.xlu1 %10029 }
0x2cc1   :  { %v10032_v17 = vadd.f32 %v10030_v34, %v10022_v29 }
0x2cc3   :  { %15154 = vtanh.f32 %v10032_v17 }
0x2cd0   :  { %v15155_v36 = vpop.eup %15154 }
0x2cd1   :  { %10035 = vrot.lane.b32.xlu0 %v15155_v36, %s15316_s2 }
0x2cd5   :  { %5062 = vrot.lane.b32.xlu0 %v17879_v43, %s15318_s9 }
0x2d43   :  { %v10036_v7 = vpop.permute.xlu0 %10035 }
0x2d44   :  { %v10038_v31 = vmul.f32 %v15153_v22, %v10036_v7 }
0x2d46   :  { %10040 = vrot.lane.b32.xlu1 %v10038_v31, %s15317_s25 }
0x2d47   :  { %v5063_v19 = vpop.permute.xlu0 %5062 }
0x2d48   :  { %5065 = vst.msk [vmem:[#allocation14] sm:$0xff] %vm918_vm1, %v5063_v19 }
0x2d4a   :  { %10047 = vrot.lane.b32.xlu1 %v10032_v17, %s15318_s9 }
0x2db8   :  { %v10041_v45 = vpop.permute.xlu1 %10040 }
0x2db9   :  { %10043 = vst.msk [vmem:[#allocation2 + $0x38] sm:$0xff] %vm918_vm1, %v10041_v45  ;;  %10045 = vst.msk [vmem:[#allocation12 + $0x8] sm:$0xff] %vm918_vm1, %v10041_v45 }
0x2dbc   :  { %v10048_v26 = vpop.permute.xlu1 %10047 }
0x2dbd   :  { %10051 = vst.msk [vmem:[#allocation14 + $0x8] sm:$0xff] %vm918_vm1, %v10048_v26 }
0x2dc0   :  { %v10059_v33 = vld [vmem:[#allocation2 + $0x38] sm:$0xff] }
0x2dc1   :  { %v10093_v58 = vsel %vm918_vm1, %v10059_v33, 0 }
0x2dc2   :  { %v10234_v54 = vand.u32 4294901760, %v10093_v58 }
0x2dc4   :  { %v10235_v10 = vsub.f32 %v10093_v58, %v10234_v54  ;;  %14716 = vmatmul.mubr.f32.gmra.mxu1 %v10234_v54 }
0x2dc5   :  { %14746 = vmatprep.mubr.f32.mxu1 %v10166_v37 }
0x2dc6   :  { %v10236_v14 = vand.u32 4294901760, %v10235_v10 }
0x2dc8   :  { %14747 = vmatmul.mubr.f32.vlgmr.msra.gmra.mxu1 %v10176_v5  ;;  %v10237_v9 = vsub.f32 %v10235_v10, %v10236_v14 }
0x2dc9   :  { %14749 = vmatprep.mubr.f32.mxu1 %v10186_v52  ;;  %14779 = vmatpush3.msra.mxu1 %v17241_v55  ;;  %v10892_v55 = vld [vmem:[%s17850_s11 + $0x18] sm:$0xff] }
0x2dca   :  { %v10238_v60 = vand.u32 4294901760, %v10237_v9  ;;  %14780 = vmatprep.subr.mxu1 %v17251_v11 }
0x2dcb   :  { %14781 = vmatpush3.msra.mxu1 %v17251_v11  ;;  %v17496_v11 = vand.u32 4294901760, %v10892_v55 }
0x2dcc   :  { %14696 = vmatmul.mubr.f32.gmra.mxu0 %v10238_v60  ;;  %14750 = vmatmul.mubr.f32.gmra.mxu1 %v10196_v21  ;;  %v14708_v21 = vpop.f32.mrf.mxu1 }
0x2dcd   :  { %14726 = vmatprep.mubr.f32.mxu0 %v17316_v32  ;;  %14752 = vmatprep.mubr.f32.mxu1 %v10206_v15  ;;  %v10889_v32 = vld [vmem:[%s17850_s11] sm:$0xff] }
0x2dce   :  { %14782 = vmatprep.subr.mxu1 %v17261_v50  ;;  %v10331_v15 = vpop.f32.mrf.mxu1 }
0x2dcf   :  { %14783 = vmatpush3.msra.mxu1 %v17261_v50  ;;  %v10891_v50 = vld [vmem:[%s17850_s11 + $0x10] sm:$0xff] }
0x2dd0   :  { %14727 = vmatmul.mubr.f32.vlgmr.msra.gmra.mxu0 %v17339_v6  ;;  %14753 = vmatmul.mubr.f32.gmra.mxu1 %v10216_v35  ;;  %v17532_v6 = vand.u32 4294901760, %v10889_v32  ;;  %v14688_v35 = vpop.f32.mrf.mxu0 }
0x2dd1   :  { %14729 = vmatprep.mubr.f32.mxu0 %v17351_v8  ;;  %14755 = vmatprep.mubr.f32.mxu1 %v10226_v40  ;;  %v10181_v43 = vadd.f32 %v14688_v35, %v12587_v0 }
0x2dd2   :  { %14759 = vmatpush3.msra.mxu0 %v17273_v56  ;;  %14784 = vmatprep.subr.mxu1 %v17268_v4  ;;  %v17505_v56 = vand.u32 4294901760, %v10891_v50  ;;  %v10170_v2 = vpop.f32.mrf.mxu0 }
0x2dd3   :  { %14760 = vmatprep.subr.mxu0 %v17282_v30  ;;  %14785 = vmatpush3.msra.mxu1 %v17268_v4  ;;  %v17503_v4 = vsub.f32 %v10892_v55, %v17496_v11  ;;  %v10171_v19 = vadd.f32 %v12587_v0, %v10170_v2  ;;  %v10338_v58 = vadd.f32 %v14708_v21, %v10181_v43 }
0x2dd4   :  { %14730 = vmatmul.mubr.f32.gmra.mxu0 %v17360_v38  ;;  %14756 = vmatmul.mubr.f32.gmra.mxu1 %v10236_v14  ;;  %v17542_v38 = vsub.f32 %v10889_v32, %v17532_v6  ;;  %v14691_v42 = vpop.f32.mrf.mxu0 }
0x2dd5   :  { %14732 = vmatprep.mubr.f32.mxu0 %v17370_v3  ;;  %14761 = vmatpush3.msra.mxu0 %v17282_v30  ;;  %v10890_v30 = vld [vmem:[%s17850_s11 + $0x8] sm:$0xff]  ;;  %v10201_v33 = vadd.f32 %v14691_v42, %v12587_v0  ;;  %v10332_v60 = vadd.f32 %v10331_v15, %v10171_v19 }
0x2dd6   :  { %14786 = vmatprep.mubr.f32.mxu1 %v17293_v47  ;;  %14762 = vmatprep.subr.mxu0 %v17296_v59  ;;  %v17549_v52 = vand.u32 4294901760, %v17542_v38  ;;  %v10190_v24 = vpop.f32.mrf.mxu0 }
0x2dd7   :  { %14763 = vmatpush3.msra.mxu0 %v17296_v59  ;;  %v17515_v59 = vsub.f32 %v10891_v50, %v17505_v56  ;;  %v10191_v14 = vadd.f32 %v12587_v0, %v10190_v24 }
0x2dd8   :  { %14733 = vmatmul.mubr.f32.gmra.mxu0 %v17381_v27  ;;  %14787 = vmatmul.mubr.f32.vlgmr.msra.gmra.mxu1 %v17327_v57  ;;  %v11122_v3 = vsub.f32 %v17542_v38, %v17549_v52  ;;  %v14694_v16 = vpop.f32.mrf.mxu0 }
0x2dd9   :  { %14735 = vmatprep.mubr.f32.mxu0 %v17390_v46  ;;  %14789 = vmatprep.mubr.f32.mxu1 %v17331_v18  ;;  %v17527_v37 = vand.u32 4294901760, %v17515_v59  ;;  %v14711_v46 = vpop.f32.mrf.mxu1  ;;  %v10221_v55 = vadd.f32 %v14694_v16, %v12587_v0 }
0x2dda   :  { %14764 = vmatprep.subr.mxu0 %v17305_v20  ;;  %v11123_v27 = vand.u32 4294901760, %v11122_v3  ;;  %v10210_v61 = vpop.f32.mrf.mxu0 }
0x2ddb   :  { %14765 = vmatpush3.msra.mxu0 %v17305_v20  ;;  %v17518_v20 = vand.u32 4294901760, %v10890_v30  ;;  %v10343_v40 = vpop.f32.mrf.mxu1 }
0x2ddc   :  { %14736 = vmatmul.mubr.f32.gmra.mxu0 %v10235_v10  ;;  %14790 = vmatmul.mubr.f32.gmra.mxu1 %v17341_v51 }
0x2ddd   :  { %14766 = vmatprep.mubr.f32.mxu0 %v17293_v47  ;;  %14792 = vmatprep.mubr.f32.mxu1 %v17347_v13  ;;  %v17512_v47 = vand.u32 4294901760, %v17503_v4  ;;  %v14714_v28 = vpop.f32.mrf.mxu1 }
0x2dde   :  { %14798 = vmatprep.subr.mxu0 %v17496_v11 }
0x2ddf   :  { %v10355_v12 = vpop.f32.mrf.mxu1 }
0x2de0   :  { %14767 = vmatmul.mubr.f32.vlgmr.msra.gmra.mxu0 %v17327_v57  ;;  %14793 = vmatmul.mubr.f32.gmra.mxu1 %v17363_v62  ;;  %v11101_v57 = vsub.f32 %v17503_v4, %v17512_v47 }
0x2de1   :  { %14769 = vmatprep.mubr.f32.mxu0 %v17331_v18  ;;  %14795 = vmatprep.mubr.f32.mxu1 %v17367_v25  ;;  %v17530_v18 = vsub.f32 %v10890_v30, %v17518_v20 }
0x2de2   :  { %14799 = vmatpush3.msra.mxu0 %v17496_v11 }
0x2de3   :  { %14800 = vmatprep.subr.mxu0 %v17505_v56  ;;  %v17539_v8 = vand.u32 4294901760, %v17530_v18 }
0x2de4   :  { %14770 = vmatmul.mubr.f32.gmra.mxu0 %v17341_v51  ;;  %14796 = vmatmul.mubr.f32.gmra.mxu1 %v10234_v54  ;;  %v11102_v51 = vand.u32 4294901760, %v11101_v57  ;;  %v10350_v57 = vadd.f32 %v14711_v46, %v10201_v33 }
0x2de5   :  { %14772 = vmatprep.mubr.f32.mxu0 %v17347_v13  ;;  %14801 = vmatpush3.msra.mxu0 %v17505_v56  ;;  %v11108_v13 = vsub.f32 %v17515_v59, %v17527_v37 }
0x2de6   :  { %14802 = vmatprep.subr.mxu0 %v17518_v20  ;;  %14818 = vmatprep.subr.mxu1 %v11102_v51 }
0x2de7   :  { %14803 = vmatpush3.msra.mxu0 %v17518_v20  ;;  %v11109_v5 = vand.u32 4294901760, %v11108_v13  ;;  %14819 = vmatpush3.msra.mxu1 %v11102_v51  ;;  %v10211_v51 = vadd.f32 %v12587_v0, %v10210_v61 }
0x2de8   :  { %14773 = vmatmul.mubr.f32.gmra.mxu0 %v17363_v62  ;;  %14804 = vmatprep.subr.mxu0 %v17532_v6  ;;  %v11115_v62 = vsub.f32 %v17530_v18, %v17539_v8 }
0x2de9   :  { %14775 = vmatprep.mubr.f32.mxu0 %v17367_v25  ;;  %14805 = vmatpush3.msra.mxu0 %v17532_v6  ;;  %v10356_v15 = vadd.f32 %v10355_v12, %v10211_v51 }
0x2dea   :  { %14838 = vmatprep.subr.mxu0 %v17503_v4  ;;  %14820 = vmatprep.subr.mxu1 %v11109_v5  ;;  %v11116_v25 = vand.u32 4294901760, %v11115_v62  ;;  %v10344_v62 = vadd.f32 %v10343_v40, %v10191_v14 }
0x2deb   :  { %14821 = vmatpush3.msra.mxu1 %v11109_v5 }
0x2dec   :  { %14776 = vmatmul.mubr.f32.gmra.mxu0 %v10234_v54  ;;  %14822 = vmatprep.subr.mxu1 %v11116_v25 }
0x2ded   :  { %14823 = vmatpush3.msra.mxu1 %v11116_v25 }
0x2dee   :  { %14824 = vmatprep.subr.mxu1 %v11123_v27 }
0x2def   :  { %14825 = vmatpush3.msra.mxu1 %v11123_v27  ;;  %v10362_v27 = vadd.f32 %v14714_v28, %v10221_v55 }
0x2df0   :  { %14858 = vmatprep.subr.mxu1 %v17496_v11 }
0x2e84   :  { %v14717_v23 = vpop.f32.mrf.mxu1 }
0x2e86   :  { %v10367_v41 = vpop.f32.mrf.mxu1 }
0x2e88   :  { %v14748_v63 = vpop.f32.mrf.mxu1 }
0x2e8a   :  { %v10579_v48 = vpop.f32.mrf.mxu1 }
0x2e8c   :  { %v14697_v39 = vpop.f32.mrf.mxu0  ;;  %v14751_v49 = vpop.f32.mrf.mxu1 }
0x2e8d   :  { %v10241_v3 = vadd.f32 %v14697_v39, %v12587_v0 }
0x2e8e   :  { %v10230_v44 = vpop.f32.mrf.mxu0  ;;  %v10595_v53 = vpop.f32.mrf.mxu1 }
0x2e8f   :  { %v10231_v24 = vadd.f32 %v12587_v0, %v10230_v44  ;;  %v10374_v61 = vadd.f32 %v14717_v23, %v10241_v3 }
0x2e90   :  { %v14728_v22 = vpop.f32.mrf.mxu0  ;;  %v14754_v1 = vpop.f32.mrf.mxu1 }
0x2e91   :  { %v10461_v9 = vadd.f32 %v14728_v22, %v10338_v58 }
0x2e92   :  { %v10453_v29 = vpop.f32.mrf.mxu0  ;;  %v10611_v34 = vpop.f32.mrf.mxu1 }
0x2e93   :  { %v10454_v32 = vadd.f32 %v10453_v29, %v10332_v60  ;;  %v10588_v25 = vadd.f32 %v14748_v63, %v10461_v9  ;;  %v10368_v9 = vadd.f32 %v10367_v41, %v10231_v24 }
0x2e94   :  { %v14731_v17 = vpop.f32.mrf.mxu0  ;;  %v17558_v36 = vpop.f32.mrf.mxu1 }
0x2e95   :  { %v10475_v5 = vadd.f32 %v14731_v17, %v10350_v57  ;;  %v10580_v43 = vadd.f32 %v10579_v48, %v10454_v32 }
0x2e96   :  { %v10467_v7 = vpop.f32.mrf.mxu0  ;;  %v17560_v31 = vpop.f32.mrf.mxu1 }
0x2e97   :  { %v10468_v21 = vadd.f32 %v10467_v7, %v10344_v62  ;;  %v10604_v29 = vadd.f32 %v14751_v49, %v10475_v5 }
0x2e98   :  { %v14734_v45 = vpop.f32.mrf.mxu0  ;;  %v14788_v26 = vpop.f32.mrf.mxu1 }
0x2e99   :  { %v10489_v22 = vadd.f32 %v14734_v45, %v10362_v27  ;;  %v10596_v28 = vadd.f32 %v10595_v53, %v10468_v21 }
0x2e9a   :  { %v10481_v54 = vpop.f32.mrf.mxu0  ;;  %v10835_v10 = vpop.f32.mrf.mxu1 }
0x2e9b   :  { %v10482_v46 = vadd.f32 %v10481_v54, %v10356_v15  ;;  %v10620_v60 = vadd.f32 %v14754_v1, %v10489_v22 }
0x2e9c   :  { %v14737_v50 = vpop.f32.mrf.mxu0  ;;  %v14791_v30 = vpop.f32.mrf.mxu1 }
0x2e9d   :  { %v10503_v14 = vadd.f32 %v14737_v50, %v10374_v61  ;;  %v10612_v54 = vadd.f32 %v10611_v34, %v10482_v46 }
0x2e9e   :  { %v10495_v13 = vpop.f32.mrf.mxu0  ;;  %v10847_v35 = vpop.f32.mrf.mxu1 }
0x2e9f   :  { %v10496_v45 = vadd.f32 %v10495_v13, %v10368_v9 }
0x2ea0   :  { %v14768_v2 = vpop.f32.mrf.mxu0  ;;  %v14794_v33 = vpop.f32.mrf.mxu1 }
0x2ea1   :  { %v10725_v42 = vadd.f32 %v14768_v2, %v10588_v25 }
0x2ea2   :  { %v10718_v16 = vpop.f32.mrf.mxu0  ;;  %v10859_v49 = vpop.f32.mrf.mxu1 }
0x2ea3   :  { %v10842_v19 = vadd.f32 %v14788_v26, %v10725_v42  ;;  %v10719_v58 = vadd.f32 %v10718_v16, %v10580_v43 }
0x2ea4   :  { %v14771_v17 = vpop.f32.mrf.mxu0  ;;  %v14797_v3 = vpop.f32.mrf.mxu1 }
0x2ea5   :  { %v10882_v40 = vmax.f32 %v10842_v19, 0.0  ;;  %v10836_v63 = vadd.f32 %v10835_v10, %v10719_v58  ;;  %v10737_v39 = vadd.f32 %v14771_v17, %v10604_v29 }
0x2ea6   :  { %v10730_v7 = vpop.f32.mrf.mxu0  ;;  %v10871_v61 = vpop.f32.mrf.mxu1 }
0x2ea7   :  { %v10904_v48 = vsel %vm918_vm1, %v10882_v40, 0  ;;  %v10881_v44 = vmax.f32 %v10836_v63, 0.0  ;;  %v10854_v12 = vadd.f32 %v14791_v30, %v10737_v39  ;;  %v10731_v0 = vadd.f32 %v10730_v7, %v10596_v28 }
0x2ea8   :  { %v17563_v26 = vand.u32 4294901760, %v10904_v48  ;;  %v14774_v23 = vpop.f32.mrf.mxu0  ;;  %v10636_v30 = vadd.f32 %v17558_v36, %v10503_v14 }
0x2ea9   :  { %v10901_v55 = vsel %vm918_vm1, %v10881_v44, 0  ;;  %v10884_v10 = vmax.f32 %v10854_v12, 0.0  ;;  %v10848_v32 = vadd.f32 %v10847_v35, %v10731_v0  ;;  %v10749_v53 = vadd.f32 %v14774_v23, %v10620_v60 }
0x2eaa   :  { %v17567_v41 = vsub.f32 %v10904_v48, %v17563_v26  ;;  %v17569_v1 = vand.u32 4294901760, %v10901_v55  ;;  %v10742_v50 = vpop.f32.mrf.mxu0  ;;  %v10628_v35 = vadd.f32 %v17560_v31, %v10496_v45 }
0x2eab   :  { %v10910_v57 = vsel %vm918_vm1, %v10884_v10, 0  ;;  %v10883_v51 = vmax.f32 %v10848_v32, 0.0  ;;  %v10866_v13 = vadd.f32 %v14794_v33, %v10749_v53  ;;  %v10743_v5 = vadd.f32 %v10742_v50, %v10612_v54 }
0x2eac   :  { %v11005_v34 = vand.u32 4294901760, %v17567_v41  ;;  %v17575_v62 = vsub.f32 %v10901_v55, %v17569_v1  ;;  %v17577_v25 = vand.u32 4294901760, %v10910_v57  ;;  %v14777_v27 = vpop.f32.mrf.mxu0  ;;  %14826 = vmatprep.mubr.f32.mxu1 %v17569_v1 }
0x2ead   :  { %v10907_v36 = vsel %vm918_vm1, %v10883_v51, 0  ;;  %v10886_v2 = vmax.f32 %v10866_v13, 0.0  ;;  %v10860_v21 = vadd.f32 %v10859_v49, %v10743_v5  ;;  %v10761_v42 = vadd.f32 %v14777_v27, %v10636_v30  ;;  %14827 = vmatmul.mubr.f32.vlgmr.msra.gmra.mxu1 %v17563_v26 }
0x2eae   :  { %v11006_v43 = vsub.f32 %v17567_v41, %v11005_v34  ;;  %v17587_v24 = vsub.f32 %v10910_v57, %v17577_v25  ;;  %v17589_v22 = vand.u32 4294901760, %v10907_v36  ;;  %v10754_v15 = vpop.f32.mrf.mxu0  ;;  %v10995_v16 = vand.u32 4294901760, %v17575_v62  ;;  %14859 = vmatpush3.msra.mxu1 %v17496_v11 }
0x2eaf   :  { %v10916_v31 = vsel %vm918_vm1, %v10886_v2, 0  ;;  %v10885_v19 = vmax.f32 %v10860_v21, 0.0  ;;  %v10878_v58 = vadd.f32 %v14797_v3, %v10761_v42  ;;  %v10755_v29 = vadd.f32 %v10754_v15, %v10628_v35  ;;  %14860 = vmatprep.subr.mxu1 %v17505_v56 }
0x2eb0   :  { %v17596_v46 = vsub.f32 %v10907_v36, %v17589_v22  ;;  %v17598_v33 = vand.u32 4294901760, %v10916_v31  ;;  %14829 = vmatprep.mubr.f32.mxu1 %v17589_v22  ;;  %v10996_v17 = vsub.f32 %v17575_v62, %v10995_v16  ;;  %14861 = vmatpush3.msra.mxu1 %v17505_v56  ;;  %v11025_v28 = vand.u32 4294901760, %v17587_v24 }
0x2eb1   :  { %v10913_v40 = vsel %vm918_vm1, %v10885_v19, 0  ;;  %v10888_v63 = vmax.f32 %v10878_v58, 0.0  ;;  %v10872_v39 = vadd.f32 %v10871_v61, %v10755_v29  ;;  %14830 = vmatmul.mubr.f32.gmra.mxu1 %v17577_v25  ;;  %14862 = vmatprep.subr.mxu1 %v17518_v20  ;;  %v11007_v48 = vand.u32 4294901760, %v11006_v43 }
0x2eb2   :  { %v17608_v14 = vsub.f32 %v10916_v31, %v17598_v33  ;;  %v17610_v9 = vand.u32 4294901760, %v10913_v40  ;;  %v10997_v7 = vand.u32 4294901760, %v10996_v17  ;;  %v11015_v60 = vand.u32 4294901760, %v17596_v46  ;;  %14863 = vmatpush3.msra.mxu1 %v17518_v20 }
0x2eb3   :  { %v10922_v44 = vsel %vm918_vm1, %v10888_v63, 0  ;;  %v10887_v12 = vmax.f32 %v10872_v39, 0.0  ;;  %v11026_v0 = vsub.f32 %v17587_v24, %v11025_v28  ;;  %14864 = vmatprep.subr.mxu1 %v17532_v6 }
0x2eb4   :  { %v11034_v45 = vsub.f32 %v10913_v40, %v17610_v9  ;;  %v17618_v49 = vand.u32 4294901760, %v10922_v44  ;;  %14806 = vmatprep.mubr.f32.mxu0 %v10997_v7  ;;  %14832 = vmatprep.mubr.f32.mxu1 %v17610_v9  ;;  %v11016_v23 = vsub.f32 %v17596_v46, %v11015_v60  ;;  %v11045_v54 = vand.u32 4294901760, %v17608_v14 }
0x2eb5   :  { %v10919_v55 = vsel %vm918_vm1, %v10887_v12, 0  ;;  %14807 = vmatmul.mubr.f32.vlgmr.msra.gmra.mxu0 %v11007_v48  ;;  %14833 = vmatmul.mubr.f32.gmra.mxu1 %v17598_v33  ;;  %v11027_v30 = vand.u32 4294901760, %v11026_v0 }
0x2eb6   :  { %v17626_v10 = vsub.f32 %v10922_v44, %v17618_v49  ;;  %v17628_v32 = vand.u32 4294901760, %v10919_v55  ;;  %14839 = vmatpush3.msra.mxu0 %v17503_v4  ;;  %v11017_v53 = vand.u32 4294901760, %v11016_v23  ;;  %v11035_v50 = vand.u32 4294901760, %v11034_v45  ;;  %14865 = vmatpush3.msra.mxu1 %v17532_v6 }
0x2eb7   :  { %14840 = vmatprep.subr.mxu0 %v17515_v59  ;;  %v11046_v57 = vsub.f32 %v17608_v14, %v11045_v54  ;;  %14898 = vmatprep.subr.mxu1 %v17496_v11 }
0x2eb8   :  { %v11054_v51 = vsub.f32 %v10919_v55, %v17628_v32  ;;  %14809 = vmatprep.mubr.f32.mxu0 %v11017_v53  ;;  %14835 = vmatprep.mubr.f32.mxu1 %v17628_v32  ;;  %v11036_v13 = vsub.f32 %v11034_v45, %v11035_v50  ;;  %v11065_v5 = vand.u32 4294901760, %v17626_v10 }
0x2eb9   :  { %14810 = vmatmul.mubr.f32.gmra.mxu0 %v11027_v30  ;;  %14836 = vmatmul.mubr.f32.gmra.mxu1 %v17618_v49  ;;  %v11047_v27 = vand.u32 4294901760, %v11046_v57 }
0x2eba   :  { %14841 = vmatpush3.msra.mxu0 %v17515_v59  ;;  %14866 = vmatprep.mubr.f32.mxu1 %v10995_v16  ;;  %v11037_v4 = vand.u32 4294901760, %v11036_v13  ;;  %v11055_v3 = vand.u32 4294901760, %v11054_v51  ;;  %v11066_v35 = vsub.f32 %v17626_v10, %v11065_v5 }
0x2ebb   :  { %14842 = vmatprep.subr.mxu0 %v17530_v18 }
0x2ebc   :  { %14812 = vmatprep.mubr.f32.mxu0 %v11037_v4  ;;  %14843 = vmatpush3.msra.mxu0 %v17530_v18  ;;  %v11056_v36 = vsub.f32 %v11054_v51, %v11055_v3  ;;  %v11067_v59 = vand.u32 4294901760, %v11066_v35 }
0x2ebd   :  { %14813 = vmatmul.mubr.f32.gmra.mxu0 %v11047_v27  ;;  %14867 = vmatmul.mubr.f32.vlgmr.msra.gmra.mxu1 %v11005_v34 }
0x2ebe   :  { %14869 = vmatprep.mubr.f32.mxu1 %v11015_v60  ;;  %v11057_v2 = vand.u32 4294901760, %v11056_v36  ;;  %14844 = vmatprep.subr.mxu0 %v17542_v38 }
0x2ebf   :  { %14845 = vmatpush3.msra.mxu0 %v17542_v38  ;;  %14899 = vmatpush3.msra.mxu1 %v17496_v11  ;;  %v11719_v11 = vld [vmem:[#allocation9 + $0x8] sm:$0xff] }
0x2ec0   :  { %14815 = vmatprep.mubr.f32.mxu0 %v11057_v2  ;;  %14878 = vmatprep.subr.mxu0 %v17512_v47 }
0x2ec1   :  { %14816 = vmatmul.mubr.f32.gmra.mxu0 %v11067_v59  ;;  %14870 = vmatmul.mubr.f32.gmra.mxu1 %v11025_v28  ;;  %v12588_v28 = vld [vmem:[%s17851_s12] ss:$0 sm:$0xff]  ;;  %s15319_s12 = smov [#allocation12]  }
0x2ec2   :  { %14846 = vmatprep.mubr.f32.mxu0 %v17575_v62  ;;  %14872 = vmatprep.mubr.f32.mxu1 %v11035_v50  ;;  %s12536_s5 = sshll.u32 %s15319_s12, 4  ;;  %s12537_s5 = int_to_ptr.vmem [resolvable:$true] %s12536_s5 }
0x2ec3   :  { %14900 = vmatprep.subr.mxu1 %v17505_v56  ;;  %s15238_s7 = scalar_lea.vmem %s12537_s5, 256  ;;  %p15243_p7 = scmp.lt.s32.totalorder %s12537_s5, %s12537_s5 }
0x2ec4   :  { %14901 = vmatpush3.msra.mxu1 %v17505_v56  ;;  %v17684_v56 = vand.u32 4294901760, %v11719_v11  ;;  %p15239_p6 = scmp.ne.s32.totalorder %s12537_s5, %s15238_s7  ;;  %p15244_p8 = scmp.lt.s32.totalorder %s15238_s7, %s15238_s7 }
0x2ec5   :  { %14847 = vmatmul.mubr.f32.vlgmr.msra.gmra.mxu0 %v17567_v41  ;;  %14873 = vmatmul.mubr.f32.gmra.mxu1 %v11045_v54 }
0x2ec6   :  { %14849 = vmatprep.mubr.f32.mxu0 %v17596_v46  ;;  %14875 = vmatprep.mubr.f32.mxu1 %v11055_v3  ;;  %p15245_p9 = por %p15244_p8, %p15243_p7 }
0x2ec7   :  { %14879 = vmatpush3.msra.mxu0 %v17512_v47  ;;  %14902 = vmatprep.subr.mxu1 %v17518_v20  ;;  %v11718_v47 = vld [vmem:[#allocation9] sm:$0xff] }
0x2ec8   :  { %14880 = vmatprep.subr.mxu0 %v17527_v37  ;;  %14903 = vmatpush3.msra.mxu1 %v17518_v20  ;;  %v17688_v20 = vsub.f32 %v11719_v11, %v17684_v56  ;;  %p15246_p10 = pnand %p15245_p9, %p15239_p6 }
0x2ec9   :  { %14850 = vmatmul.mubr.f32.gmra.mxu0 %v17587_v24  ;;  %14876 = vmatmul.mubr.f32.gmra.mxu1 %v11065_v5 }
0x2eca   :  { %14852 = vmatprep.mubr.f32.mxu0 %v11034_v45  ;;  %14881 = vmatpush3.msra.mxu0 %v17527_v37  ;;  %v17690_v37 = vand.u32 4294901760, %v11718_v47  ;;  %v17694_v18 = vand.u32 4294901760, %v17688_v20 }
0x2ecb   :  { %14906 = vmatprep.mubr.f32.mxu1 %v17569_v1  ;;  %14904 = vmatprep.subr.mxu1 %v17532_v6 }
0x2ecc   :  { %14905 = vmatpush3.msra.mxu1 %v17532_v6  ;;  %14882 = vmatprep.subr.mxu0 %v17539_v8  ;;  %v17697_v6 = vsub.f32 %v11718_v47, %v17690_v37 }
0x2ecd   :  { %14853 = vmatmul.mubr.f32.gmra.mxu0 %v17608_v14  ;;  %14907 = vmatmul.mubr.f32.vlgmr.msra.gmra.mxu1 %v17563_v26 }
0x2ece   :  { %14855 = vmatprep.mubr.f32.mxu0 %v11054_v51  ;;  %14883 = vmatpush3.msra.mxu0 %v17539_v8  ;;  %v11930_v8 = vsub.f32 %v17688_v20, %v17694_v18  ;;  %v17704_v38 = vand.u32 4294901760, %v17697_v6 }
0x2ecf   :  { %14909 = vmatprep.mubr.f32.mxu1 %v17589_v22  ;;  %14884 = vmatprep.subr.mxu0 %v17549_v52 }
0x2ed0   :  { %14885 = vmatpush3.msra.mxu0 %v17549_v52  ;;  %v11931_v52 = vand.u32 4294901760, %v11930_v8 }
0x2ed1   :  { %14856 = vmatmul.mubr.f32.gmra.mxu0 %v17626_v10  ;;  %14910 = vmatmul.mubr.f32.gmra.mxu1 %v17577_v25 }
0x2ed2   :  { %14886 = vmatprep.mubr.f32.mxu0 %v17569_v1  ;;  %14912 = vmatprep.mubr.f32.mxu1 %v17610_v9 }
0x2ed3   :  { %14918 = vmatprep.subr.mxu0 %v17684_v56  ;;  %14934 = vmatprep.subr.mxu1 %v11931_v52 }
0x2ed4   :  { %14935 = vmatpush3.msra.mxu1 %v11931_v52 }
0x2ed5   :  { %14887 = vmatmul.mubr.f32.vlgmr.msra.gmra.mxu0 %v17563_v26  ;;  %14913 = vmatmul.mubr.f32.gmra.mxu1 %v17598_v33  ;;  %v11937_v26 = vsub.f32 %v17697_v6, %v17704_v38 }
0x2ed6   :  { %14889 = vmatprep.mubr.f32.mxu0 %v17589_v22  ;;  %14915 = vmatprep.mubr.f32.mxu1 %v17628_v32 }
0x2ed7   :  { %14919 = vmatpush3.msra.mxu0 %v17684_v56  ;;  %v11938_v41 = vand.u32 4294901760, %v11937_v26 }
0x2ed8   :  { %14920 = vmatprep.subr.mxu0 %v17690_v37 }
0x2ed9   :  { %14890 = vmatmul.mubr.f32.gmra.mxu0 %v17577_v25  ;;  %14916 = vmatmul.mubr.f32.gmra.mxu1 %v17618_v49 }
0x2eda   :  { %14892 = vmatprep.mubr.f32.mxu0 %v17610_v9  ;;  %14921 = vmatpush3.msra.mxu0 %v17690_v37 }
0x2edb   :  { %14950 = vmatprep.subr.mxu0 %v17688_v20  ;;  %14936 = vmatprep.subr.mxu1 %v11938_v41 }
0x2edc   :  { %14937 = vmatpush3.msra.mxu1 %v11938_v41 }
0x2edd   :  { %14893 = vmatmul.mubr.f32.gmra.mxu0 %v17598_v33  ;;  %14966 = vmatprep.subr.mxu1 %v17684_v56 }
0x2ede   :  { %14895 = vmatprep.mubr.f32.mxu0 %v17628_v32 }
0x2ee1   :  { %14896 = vmatmul.mubr.f32.gmra.mxu0 %v17618_v49 }
0x2f6d   :  { %v14828_v1 = vpop.f32.mrf.mxu1 }
0x2f6f   :  { %v11160_v34 = vpop.f32.mrf.mxu1 }
0x2f71   :  { %v14831_v62 = vpop.f32.mrf.mxu1 }
0x2f73   :  { %v11172_v25 = vpop.f32.mrf.mxu1 }
0x2f75   :  { %v14808_v21 = vpop.f32.mrf.mxu0  ;;  %v14834_v42 = vpop.f32.mrf.mxu1 }
0x2f76   :  { %v11010_v48 = vadd.f32 %v14808_v21, %v12588_v28 }
0x2f77   :  { %v10999_v43 = vpop.f32.mrf.mxu0  ;;  %v11184_v24 = vpop.f32.mrf.mxu1 }
0x2f78   :  { %v11000_v0 = vadd.f32 %v12588_v28, %v10999_v43  ;;  %v11167_v54 = vadd.f32 %v14828_v1, %v11010_v48 }
0x2f79   :  { %v14811_v22 = vpop.f32.mrf.mxu0  ;;  %v14837_v15 = vpop.f32.mrf.mxu1 }
0x2f7a   :  { %v11030_v23 = vadd.f32 %v14811_v22, %v12588_v28  ;;  %v11161_v50 = vadd.f32 %v11160_v34, %v11000_v0 }
0x2f7b   :  { %v11019_v16 = vpop.f32.mrf.mxu0  ;;  %v11196_v31 = vpop.f32.mrf.mxu1 }
0x2f7c   :  { %v11020_v32 = vadd.f32 %v12588_v28, %v11019_v16  ;;  %v11179_v5 = vadd.f32 %v14831_v62, %v11030_v23 }
0x2f7d   :  { %v14814_v19 = vpop.f32.mrf.mxu0  ;;  %v14868_v58 = vpop.f32.mrf.mxu1 }
0x2f7e   :  { %v11050_v30 = vadd.f32 %v14814_v19, %v12588_v28  ;;  %v11173_v35 = vadd.f32 %v11172_v25, %v11020_v32 }
0x2f7f   :  { %v11039_v29 = vpop.f32.mrf.mxu0  ;;  %v11408_v46 = vpop.f32.mrf.mxu1 }
0x2f80   :  { %v11040_v4 = vadd.f32 %v12588_v28, %v11039_v29  ;;  %v11191_v59 = vadd.f32 %v14834_v42, %v11050_v30 }
0x2f81   :  { %v14817_v61 = vpop.f32.mrf.mxu0  ;;  %v14871_v33 = vpop.f32.mrf.mxu1 }
0x2f82   :  { %v11070_v2 = vadd.f32 %v14817_v61, %v12588_v28  ;;  %v11185_v34 = vadd.f32 %v11184_v24, %v11040_v4 }
0x2f83   :  { %v11059_v17 = vpop.f32.mrf.mxu0  ;;  %v11424_v40 = vpop.f32.mrf.mxu1 }
0x2f84   :  { %v11060_v41 = vadd.f32 %v12588_v28, %v11059_v17  ;;  %v11203_v19 = vadd.f32 %v14837_v15, %v11070_v2 }
0x2f85   :  { %v14848_v63 = vpop.f32.mrf.mxu0  ;;  %v14874_v39 = vpop.f32.mrf.mxu1 }
0x2f86   :  { %v11290_v53 = vadd.f32 %v14848_v63, %v11167_v54 }
0x2f87   :  { %v11282_v14 = vpop.f32.mrf.mxu0  ;;  %v11440_v9 = vpop.f32.mrf.mxu1 }
0x2f88   :  { %v11283_v13 = vadd.f32 %v11282_v14, %v11161_v50  ;;  %v11417_v36 = vadd.f32 %v14868_v58, %v11290_v53 }
0x2f89   :  { %v14851_v7 = vpop.f32.mrf.mxu0  ;;  %v17713_v60 = vpop.f32.mrf.mxu1 }
0x2f8a   :  { %v11304_v27 = vadd.f32 %v14851_v7, %v11179_v5  ;;  %v11409_v26 = vadd.f32 %v11408_v46, %v11283_v13  ;;  %v11197_v7 = vadd.f32 %v11196_v31, %v11060_v41 }
0x2f8b   :  { %v11296_v44 = vpop.f32.mrf.mxu0  ;;  %v17715_v12 = vpop.f32.mrf.mxu1 }
0x2f8c   :  { %v11297_v8 = vadd.f32 %v11296_v44, %v11173_v35  ;;  %v11433_v16 = vadd.f32 %v14871_v33, %v11304_v27 }
0x2f8d   :  { %v14854_v45 = vpop.f32.mrf.mxu0  ;;  %v14908_v49 = vpop.f32.mrf.mxu1 }
0x2f8e   :  { %v11318_v1 = vadd.f32 %v14854_v45, %v11191_v59  ;;  %v11425_v42 = vadd.f32 %v11424_v40, %v11297_v8 }
0x2f8f   :  { %v11310_v55 = vpop.f32.mrf.mxu0  ;;  %v11664_v10 = vpop.f32.mrf.mxu1 }
0x2f90   :  { %v11311_v62 = vadd.f32 %v11310_v55, %v11185_v34  ;;  %v11449_v44 = vadd.f32 %v14874_v39, %v11318_v1 }
0x2f91   :  { %v14857_v57 = vpop.f32.mrf.mxu0  ;;  %v14911_v51 = vpop.f32.mrf.mxu1 }
0x2f92   :  { %v11332_v14 = vadd.f32 %v14857_v57, %v11203_v19 }
0x2f93   :  { %v11324_v3 = vpop.f32.mrf.mxu0  ;;  %v11676_v11 = vpop.f32.mrf.mxu1 }
0x2f94   :  { %v11325_v0 = vadd.f32 %v11324_v3, %v11197_v7  ;;  %v11465_v32 = vadd.f32 %v17713_v60, %v11332_v14 }
0x2f95   :  { %v14888_v47 = vpop.f32.mrf.mxu0  ;;  %v14914_v29 = vpop.f32.mrf.mxu1 }
0x2f96   :  { %v11554_v52 = vadd.f32 %v14888_v47, %v11417_v36  ;;  %v11457_v3 = vadd.f32 %v17715_v12, %v11325_v0 }
0x2f97   :  { %v11547_v21 = vpop.f32.mrf.mxu0  ;;  %v11688_v33 = vpop.f32.mrf.mxu1 }
0x2f98   :  { %v11671_v43 = vadd.f32 %v14908_v49, %v11554_v52  ;;  %v11548_v22 = vadd.f32 %v11547_v21, %v11409_v26  ;;  %v11441_v49 = vadd.f32 %v11440_v9, %v11311_v62 }
0x2f99   :  { %v14891_v63 = vpop.f32.mrf.mxu0  ;;  %v14917_v5 = vpop.f32.mrf.mxu1 }
0x2f9a   :  { %v11711_v25 = vmax.f32 %v11671_v43, 0.0  ;;  %v11665_v58 = vadd.f32 %v11664_v10, %v11548_v22  ;;  %v11566_v61 = vadd.f32 %v14891_v63, %v11433_v16 }
0x2f9b   :  { %v11559_v48 = vpop.f32.mrf.mxu0  ;;  %v11700_v34 = vpop.f32.mrf.mxu1 }
0x2f9c   :  { %v11731_v46 = vsel %vm131_vm0, %v11711_v25, 0  ;;  %v11710_v17 = vmax.f32 %v11665_v58, 0.0  ;;  %v11683_v24 = vadd.f32 %v14911_v51, %v11566_v61  ;;  %v11560_v28 = vadd.f32 %v11559_v48, %v11425_v42 }
0x2f9d   :  { %v17718_v45 = vand.u32 4294901760, %v11731_v46  ;;  %v14894_v15 = vpop.f32.mrf.mxu0 }
0x2f9e   :  { %v11728_v23 = vsel %vm131_vm0, %v11710_v17, 0  ;;  %v11713_v54 = vmax.f32 %v11683_v24, 0.0  ;;  %v11677_v55 = vadd.f32 %v11676_v11, %v11560_v28  ;;  %v11578_v40 = vadd.f32 %v14894_v15, %v11449_v44 }
0x2f9f   :  { %v17722_v31 = vsub.f32 %v11731_v46, %v17718_v45  ;;  %v17724_v39 = vand.u32 4294901760, %v11728_v23  ;;  %v11571_v10 = vpop.f32.mrf.mxu0 }
0x2fa0   :  { %v11737_v53 = vsel %vm131_vm0, %v11713_v54, 0  ;;  %v11712_v50 = vmax.f32 %v11677_v55, 0.0  ;;  %v11695_v30 = vadd.f32 %v14914_v29, %v11578_v40  ;;  %v11572_v57 = vadd.f32 %v11571_v10, %v11441_v49 }
0x2fa1   :  { %v11830_v9 = vand.u32 4294901760, %v17722_v31  ;;  %v17730_v51 = vsub.f32 %v11728_v23, %v17724_v39  ;;  %v17732_v13 = vand.u32 4294901760, %v11737_v53  ;;  %v14897_v4 = vpop.f32.mrf.mxu0  ;;  %14938 = vmatprep.mubr.f32.mxu1 %v17724_v39 }
0x2fa2   :  { %v11734_v60 = vsel %vm131_vm0, %v11712_v50, 0  ;;  %v11715_v27 = vmax.f32 %v11695_v30, 0.0  ;;  %v11689_v35 = vadd.f32 %v11688_v33, %v11572_v57  ;;  %v11590_v36 = vadd.f32 %v14897_v4, %v11465_v32  ;;  %14939 = vmatmul.mubr.f32.vlgmr.msra.gmra.mxu1 %v17718_v45 }
0x2fa3   :  { %v11831_v2 = vsub.f32 %v17722_v31, %v11830_v9  ;;  %v17742_v59 = vsub.f32 %v11737_v53, %v17732_v13  ;;  %v17744_v11 = vand.u32 4294901760, %v11734_v60  ;;  %v11583_v47 = vpop.f32.mrf.mxu0  ;;  %v11820_v8 = vand.u32 4294901760, %v17730_v51  ;;  %14967 = vmatpush3.msra.mxu1 %v17684_v56 }
0x2fa4   :  { %v11743_v12 = vsel %vm131_vm0, %v11715_v27, 0  ;;  %v11714_v52 = vmax.f32 %v11689_v35, 0.0  ;;  %v11707_v26 = vadd.f32 %v14917_v5, %v11590_v36  ;;  %v11584_v41 = vadd.f32 %v11583_v47, %v11457_v3  ;;  %14968 = vmatprep.subr.mxu1 %v17690_v37 }
0x2fa5   :  { %v17751_v1 = vsub.f32 %v11734_v60, %v17744_v11  ;;  %v17753_v21 = vand.u32 4294901760, %v11743_v12  ;;  %14941 = vmatprep.mubr.f32.mxu1 %v17744_v11  ;;  %v11821_v43 = vsub.f32 %v17730_v51, %v11820_v8  ;;  %14969 = vmatpush3.msra.mxu1 %v17690_v37  ;;  %v11850_v19 = vand.u32 4294901760, %v17742_v59 }
0x2fa6   :  { %v11740_v22 = vsel %vm131_vm0, %v11714_v52, 0  ;;  %v11717_v16 = vmax.f32 %v11707_v26, 0.0  ;;  %v11701_v62 = vadd.f32 %v11700_v34, %v11584_v41  ;;  %14942 = vmatmul.mubr.f32.gmra.mxu1 %v17732_v13  ;;  %14998 = vmatprep.subr.mxu1 %v17684_v56  ;;  %v11832_v61 = vand.u32 4294901760, %v11831_v2 }
0x2fa7   :  { %v17763_v29 = vsub.f32 %v11743_v12, %v17753_v21  ;;  %v17765_v63 = vand.u32 4294901760, %v11740_v22  ;;  %v11822_v25 = vand.u32 4294901760, %v11821_v43  ;;  %v11840_v58 = vand.u32 4294901760, %v17751_v1 }
0x2fa8   :  { %v11749_v42 = vsel %vm131_vm0, %v11717_v16, 0  ;;  %v11716_v14 = vmax.f32 %v11701_v62, 0.0  ;;  %v11851_v7 = vsub.f32 %v17742_v59, %v11850_v19 }
0x2fa9   :  { %v11859_v48 = vsub.f32 %v11740_v22, %v17765_v63  ;;  %v17771_v44 = vand.u32 4294901760, %v11749_v42  ;;  %14922 = vmatprep.mubr.f32.mxu0 %v11822_v25  ;;  %14944 = vmatprep.mubr.f32.mxu1 %v17765_v63  ;;  %v11841_v46 = vsub.f32 %v17751_v1, %v11840_v58  ;;  %v11870_v17 = vand.u32 4294901760, %v17763_v29 }
0x2faa   :  { %v11746_v24 = vsel %vm131_vm0, %v11716_v14, 0  ;;  %14923 = vmatmul.mubr.f32.vlgmr.msra.gmra.mxu0 %v11832_v61  ;;  %14945 = vmatmul.mubr.f32.gmra.mxu1 %v17753_v21  ;;  %v11852_v49 = vand.u32 4294901760, %v11851_v7 }
0x2fab   :  { %v11889_v28 = vsub.f32 %v11749_v42, %v17771_v44  ;;  %v11878_v0 = vand.u32 4294901760, %v11746_v24  ;;  %14951 = vmatpush3.msra.mxu0 %v17688_v20  ;;  %v11842_v33 = vand.u32 4294901760, %v11841_v46  ;;  %v11860_v15 = vand.u32 4294901760, %v11859_v48 }
0x2fac   :  { %v11871_v23 = vsub.f32 %v17763_v29, %v11870_v17  ;;  %14952 = vmatprep.subr.mxu0 %v17697_v6 }
0x2fad   :  { %v11879_v54 = vsub.f32 %v11746_v24, %v11878_v0  ;;  %14925 = vmatprep.mubr.f32.mxu0 %v11842_v33  ;;  %14947 = vmatprep.mubr.f32.mxu1 %v11878_v0  ;;  %v11861_v55 = vsub.f32 %v11859_v48, %v11860_v15  ;;  %v11890_v40 = vand.u32 4294901760, %v11889_v28 }
0x2fae   :  { %14926 = vmatmul.mubr.f32.gmra.mxu0 %v11852_v49  ;;  %14948 = vmatmul.mubr.f32.gmra.mxu1 %v17771_v44  ;;  %v11872_v32 = vand.u32 4294901760, %v11871_v23 }
0x2faf   :  { %14970 = vmatprep.mubr.f32.mxu1 %v11820_v8  ;;  %v11862_v10 = vand.u32 4294901760, %v11861_v55  ;;  %14953 = vmatpush3.msra.mxu0 %v17697_v6  ;;  %v11880_v20 = vand.u32 4294901760, %v11879_v54  ;;  %v11891_v53 = vsub.f32 %v11889_v28, %v11890_v40 }
0x2fb0   :  { %14982 = vmatprep.subr.mxu0 %v17694_v18 }
0x2fb1   :  { %14928 = vmatprep.mubr.f32.mxu0 %v11862_v10  ;;  %v11881_v50 = vsub.f32 %v11879_v54, %v11880_v20  ;;  %v11892_v57 = vand.u32 4294901760, %v11891_v53 }
0x2fb2   :  { %14929 = vmatmul.mubr.f32.gmra.mxu0 %v11872_v32  ;;  %14971 = vmatmul.mubr.f32.vlgmr.msra.gmra.mxu1 %v11830_v9 }
0x2fb3   :  { %14973 = vmatprep.mubr.f32.mxu1 %v11840_v58  ;;  %v11882_v30 = vand.u32 4294901760, %v11881_v50  ;;  %14999 = vmatpush3.msra.mxu1 %v17684_v56 }
0x2fb4   :  { %15000 = vmatprep.subr.mxu1 %v17690_v37 }
0x2fb5   :  { %14931 = vmatprep.mubr.f32.mxu0 %v11882_v30  ;;  %15001 = vmatpush3.msra.mxu1 %v17690_v37 }
0x2fb6   :  { %14932 = vmatmul.mubr.f32.gmra.mxu0 %v11892_v57  ;;  %14974 = vmatmul.mubr.f32.gmra.mxu1 %v11850_v19 }
0x2fb7   :  { %14954 = vmatprep.mubr.f32.mxu0 %v17730_v51  ;;  %14976 = vmatprep.mubr.f32.mxu1 %v11860_v15 }
0x2fba   :  { %14955 = vmatmul.mubr.f32.vlgmr.msra.gmra.mxu0 %v17722_v31  ;;  %14977 = vmatmul.mubr.f32.gmra.mxu1 %v11870_v17 }
0x2fbb   :  { %14957 = vmatprep.mubr.f32.mxu0 %v17751_v1  ;;  %14979 = vmatprep.mubr.f32.mxu1 %v11880_v20 }
0x2fbc   :  { %14983 = vmatpush3.msra.mxu0 %v17694_v18 }
0x2fbd   :  { %14984 = vmatprep.subr.mxu0 %v17704_v38 }
0x2fbe   :  { %14958 = vmatmul.mubr.f32.gmra.mxu0 %v17742_v59  ;;  %14980 = vmatmul.mubr.f32.gmra.mxu1 %v11890_v40 }
0x2fbf   :  { %14960 = vmatprep.mubr.f32.mxu0 %v11859_v48  ;;  %15002 = vmatprep.mubr.f32.mxu1 %v17724_v39 }
0x2fc0   :  { %14985 = vmatpush3.msra.mxu0 %v17704_v38 }
0x2fc2   :  { %14961 = vmatmul.mubr.f32.gmra.mxu0 %v17763_v29  ;;  %15003 = vmatmul.mubr.f32.vlgmr.msra.gmra.mxu1 %v17718_v45 }
0x2fc3   :  { %14963 = vmatprep.mubr.f32.mxu0 %v11879_v54  ;;  %15005 = vmatprep.mubr.f32.mxu1 %v17744_v11 }
0x2fc6   :  { %14964 = vmatmul.mubr.f32.gmra.mxu0 %v11889_v28  ;;  %15006 = vmatmul.mubr.f32.gmra.mxu1 %v17732_v13 }
0x2fc7   :  { %14986 = vmatprep.mubr.f32.mxu0 %v17724_v39  ;;  %15008 = vmatprep.mubr.f32.mxu1 %v17765_v63 }
0x2fca   :  { %14987 = vmatmul.mubr.f32.vlgmr.msra.gmra.mxu0 %v17718_v45  ;;  %15009 = vmatmul.mubr.f32.gmra.mxu1 %v17753_v21 }
0x2fcb   :  { %14989 = vmatprep.mubr.f32.mxu0 %v17744_v11  ;;  %15011 = vmatprep.mubr.f32.mxu1 %v11878_v0 }
0x2fce   :  { %14990 = vmatmul.mubr.f32.gmra.mxu0 %v17732_v13  ;;  %15012 = vmatmul.mubr.f32.gmra.mxu1 %v17771_v44 }
0x2fcf   :  { %14992 = vmatprep.mubr.f32.mxu0 %v17765_v63 }
0x2fd2   :  { %14993 = vmatmul.mubr.f32.gmra.mxu0 %v17753_v21 }
0x2fd3   :  { %14995 = vmatprep.mubr.f32.mxu0 %v11878_v0 }
0x2fd6   :  { %14996 = vmatmul.mubr.f32.gmra.mxu0 %v17771_v44 }
0x2fd7   :  { %15249 = shalt.err (!%p15246_p10)
}
0x2fd8   :  { %12542 = dma.vmem_to_hbm [thread:$0]  %s12537_s5, 256, %s17855_s16, [#allocation13], %s15310_s29, %s15310_s29, %s15311_s0  }
0x2fd9   :  { %s15320_s18 = smov [#allocation14]  }
0x2fda   :  { %s12548_s3 = sshll.u32 %s15320_s18, 4  ;;  %s12549_s3 = int_to_ptr.vmem [resolvable:$true] %s12548_s3 }
0x2fdb   :  { %s15258_s19 = scalar_lea.vmem %s12549_s3, 256  ;;  %p15263_p12 = scmp.lt.s32.totalorder %s12549_s3, %s12549_s3 }
0x2fdc   :  { %p15259_p11 = scmp.ne.s32.totalorder %s12549_s3, %s15258_s19  ;;  %p15264_p13 = scmp.lt.s32.totalorder %s15258_s19, %s15258_s19 }
0x2fde   :  { %p15265_p0 = por %p15264_p13, %p15263_p12 }
0x2fe0   :  { %p15266_p1 = pnand %p15265_p0, %p15259_p11 }
0x2fe2   :  { %15269 = shalt.err (!%p15266_p1)
}
0x2fe3   :  { %12554 = dma.vmem_to_hbm [thread:$0]  %s12549_s3, 256, %s17856_s17, [#allocation13], %s15310_s29, %s15310_s29, %s15311_s0  }
0x2fe4   :  { %v12589_v8 = vld [vmem:[%s17853_s14] ss:$0 sm:$0xff]  ;;  %s15321_s14 = smov [#allocation11]  }
0x2fe5   :  { %s12524_s20 = sshll.u32 %s15321_s14, 4  ;;  %s12525_s20 = int_to_ptr.vmem [resolvable:$true] %s12524_s20 }
0x2fe6   :  { %s15278_s6 = scalar_lea.vmem %s12525_s20, 1024  ;;  %p15283_p3 = scmp.lt.s32.totalorder %s12525_s20, %s12525_s20 }
0x2fe7   :  { %p15279_p2 = scmp.ne.s32.totalorder %s12525_s20, %s15278_s6  ;;  %p15284_p4 = scmp.lt.s32.totalorder %s15278_s6, %s15278_s6 }
0x2fe9   :  { %p15285_p5 = por %p15284_p4, %p15283_p3 }
0x2feb   :  { %p15286_p6 = pnand %p15285_p5, %p15279_p2 }
0x3062   :  { %v14940_v56 = vpop.f32.mrf.mxu1 }
0x3064   :  { %v11975_v37 = vpop.f32.mrf.mxu1 }
0x3066   :  { %v14943_v18 = vpop.f32.mrf.mxu1 }
0x3068   :  { %v11987_v6 = vpop.f32.mrf.mxu1 }
0x306a   :  { %v14924_v38 = vpop.f32.mrf.mxu0  ;;  %v14946_v45 = vpop.f32.mrf.mxu1 }
0x306b   :  { %v11835_v1 = vadd.f32 %v14924_v38, %v12589_v8 }
0x306c   :  { %v11824_v31 = vpop.f32.mrf.mxu0  ;;  %v11999_v39 = vpop.f32.mrf.mxu1 }
0x306d   :  { %v11825_v43 = vadd.f32 %v12589_v8, %v11824_v31  ;;  %v11982_v19 = vadd.f32 %v14940_v56, %v11835_v1 }
0x306e   :  { %v14927_v9 = vpop.f32.mrf.mxu0  ;;  %v14949_v51 = vpop.f32.mrf.mxu1 }
0x306f   :  { %v11855_v62 = vadd.f32 %v14927_v9, %v12589_v8  ;;  %v11976_v61 = vadd.f32 %v11975_v37, %v11825_v43 }
0x3070   :  { %v11844_v13 = vpop.f32.mrf.mxu0  ;;  %v12011_v5 = vpop.f32.mrf.mxu1 }
0x3071   :  { %v11845_v25 = vadd.f32 %v12589_v8, %v11844_v13  ;;  %v11994_v44 = vadd.f32 %v14943_v18, %v11855_v62 }
0x3072   :  { %v14930_v4 = vpop.f32.mrf.mxu0  ;;  %v14972_v3 = vpop.f32.mrf.mxu1 }
0x3073   :  { %v11875_v7 = vadd.f32 %v14930_v4, %v12589_v8  ;;  %v11988_v28 = vadd.f32 %v11987_v6, %v11845_v25 }
0x3074   :  { %v11864_v60 = vpop.f32.mrf.mxu0  ;;  %v12217_v27 = vpop.f32.mrf.mxu1 }
0x3075   :  { %v11865_v46 = vadd.f32 %v12589_v8, %v11864_v60  ;;  %v12006_v54 = vadd.f32 %v14946_v45, %v11875_v7 }
0x3076   :  { %v14933_v35 = vpop.f32.mrf.mxu0  ;;  %v14975_v36 = vpop.f32.mrf.mxu1 }
0x3077   :  { %v11895_v33 = vadd.f32 %v14933_v35, %v12589_v8  ;;  %v12000_v20 = vadd.f32 %v11999_v39, %v11865_v46 }
0x3078   :  { %v11884_v2 = vpop.f32.mrf.mxu0  ;;  %v12233_v59 = vpop.f32.mrf.mxu1 }
0x3079   :  { %v11885_v10 = vadd.f32 %v12589_v8, %v11884_v2  ;;  %v12018_v56 = vadd.f32 %v14949_v51, %v11895_v33 }
0x307a   :  { %v14956_v11 = vpop.f32.mrf.mxu0  ;;  %v14978_v47 = vpop.f32.mrf.mxu1 }
0x307b   :  { %v12101_v58 = vadd.f32 %v14956_v11, %v11982_v19  ;;  %v12012_v13 = vadd.f32 %v12011_v5, %v11885_v10 }
0x307c   :  { %v12093_v12 = vpop.f32.mrf.mxu0  ;;  %v12249_v52 = vpop.f32.mrf.mxu1 }
0x307d   :  { %v12094_v48 = vadd.f32 %v12093_v12, %v11976_v61  ;;  %v12226_v0 = vadd.f32 %v14972_v3, %v12101_v58 }
0x307e   :  { %v14959_v26 = vpop.f32.mrf.mxu0  ;;  %v17827_v41 = vpop.f32.mrf.mxu1 }
0x307f   :  { %v12115_v24 = vadd.f32 %v14959_v26, %v11994_v44  ;;  %v12218_v40 = vadd.f32 %v12217_v27, %v12094_v48 }
0x3080   :  { %v12107_v34 = vpop.f32.mrf.mxu0  ;;  %v17829_v21 = vpop.f32.mrf.mxu1 }
0x3081   :  { %v12108_v23 = vadd.f32 %v12107_v34, %v11988_v28  ;;  %v12242_v57 = vadd.f32 %v14975_v36, %v12115_v24 }
0x3082   :  { %v14962_v22 = vpop.f32.mrf.mxu0  ;;  %v15004_v16 = vpop.f32.mrf.mxu1 }
0x3083   :  { %v12129_v53 = vadd.f32 %v14962_v22, %v12006_v54  ;;  %v12234_v9 = vadd.f32 %v12233_v59, %v12108_v23 }
0x3084   :  { %v12121_v29 = vpop.f32.mrf.mxu0  ;;  %v12465_v63 = vpop.f32.mrf.mxu1 }
0x3085   :  { %v12122_v38 = vadd.f32 %v12121_v29, %v12000_v20  ;;  %v12258_v39 = vadd.f32 %v14978_v47, %v12129_v53 }
0x3086   :  { %v14965_v42 = vpop.f32.mrf.mxu0  ;;  %v15007_v14 = vpop.f32.mrf.mxu1 }
0x3087   :  { %v12143_v45 = vadd.f32 %v14965_v42, %v12018_v56  ;;  %v12250_v11 = vadd.f32 %v12249_v52, %v12122_v38 }
0x3088   :  { %v12135_v17 = vpop.f32.mrf.mxu0  ;;  %v12477_v15 = vpop.f32.mrf.mxu1 }
0x3089   :  { %v12136_v2 = vadd.f32 %v12135_v17, %v12012_v13  ;;  %v12274_v59 = vadd.f32 %v17827_v41, %v12143_v45 }
0x308a   :  { %v14988_v49 = vpop.f32.mrf.mxu0  ;;  %v15010_v37 = vpop.f32.mrf.mxu1 }
0x308b   :  { %v12357_v55 = vadd.f32 %v14988_v49, %v12226_v0  ;;  %v12266_v47 = vadd.f32 %v17829_v21, %v12136_v2 }
0x308c   :  { %v12350_v32 = vpop.f32.mrf.mxu0  ;;  %v12489_v27 = vpop.f32.mrf.mxu1 }
0x308d   :  { %v12472_v50 = vadd.f32 %v15004_v16, %v12357_v55  ;;  %v12351_v30 = vadd.f32 %v12350_v32, %v12218_v40 }
0x308e   :  { %v14991_v18 = vpop.f32.mrf.mxu0  ;;  %v15013_v5 = vpop.f32.mrf.mxu1 }
0x308f   :  { %12512 = vst [vmem:[#allocation11 + $0x8] sm:$0xff] %v12472_v50  ;;  %v12466_v6 = vadd.f32 %v12465_v63, %v12351_v30  ;;  %v12369_v31 = vadd.f32 %v14991_v18, %v12242_v57 }
0x3090   :  { %v12362_v4 = vpop.f32.mrf.mxu0  ;;  %v12501_v52 = vpop.f32.mrf.mxu1 }
0x3091   :  { %12511 = vst [vmem:[#allocation11] sm:$0xff] %v12466_v6  ;;  %v12484_v3 = vadd.f32 %v15007_v14, %v12369_v31  ;;  %v12363_v60 = vadd.f32 %v12362_v4, %v12234_v9 }
0x3092   :  { %v14994_v35 = vpop.f32.mrf.mxu0 }
0x3093   :  { %12514 = vst [vmem:[#allocation11 + $0x18] sm:$0xff] %v12484_v3  ;;  %v12478_v36 = vadd.f32 %v12477_v15, %v12363_v60  ;;  %v12381_v51 = vadd.f32 %v14994_v35, %v12258_v39 }
0x3094   :  { %v12374_v8 = vpop.f32.mrf.mxu0 }
0x3095   :  { %12513 = vst [vmem:[#allocation11 + $0x10] sm:$0xff] %v12478_v36  ;;  %v12496_v12 = vadd.f32 %v15010_v37, %v12381_v51  ;;  %v12375_v26 = vadd.f32 %v12374_v8, %v12250_v11 }
0x3096   :  { %v14997_v1 = vpop.f32.mrf.mxu0 }
0x3097   :  { %12516 = vst [vmem:[#allocation11 + $0x28] sm:$0xff] %v12496_v12  ;;  %v12490_v34 = vadd.f32 %v12489_v27, %v12375_v26  ;;  %v12393_v43 = vadd.f32 %v14997_v1, %v12274_v59 }
0x3098   :  { %v12386_v22 = vpop.f32.mrf.mxu0 }
0x3099   :  { %12515 = vst [vmem:[#allocation11 + $0x20] sm:$0xff] %v12490_v34  ;;  %v12508_v16 = vadd.f32 %v15013_v5, %v12393_v43  ;;  %v12387_v62 = vadd.f32 %v12386_v22, %v12266_v47 }
0x309b   :  { %12518 = vst [vmem:[#allocation11 + $0x38] sm:$0xff] %v12508_v16  ;;  %v12502_v19 = vadd.f32 %v12501_v52, %v12387_v62 }
0x309d   :  { %12517 = vst [vmem:[#allocation11 + $0x30] sm:$0xff] %v12502_v19 }
0x309e   :  { %15289 = shalt.err (!%p15286_p6)
}
0x309f   :  { %12530 = dma.vmem_to_hbm [thread:$0]  %s12525_s20, 1024, %s17854_s15, [#allocation5], %s15310_s29, %s15310_s29, %s15311_s0  }
0x30a0   :  { %15304 = dma.done.wait [#allocation5], 1024  }
0x30a1   :  { %15305 = vsyncadd [#allocation5], 4294966272 }
0x30a2   :  { %15306 = dma.done.wait [#allocation13], 512  }
0x30a3   :  { %15307 = vsyncadd [#allocation13], 4294966784 }
0x30a4   :  { %12564 = vsyncpa [#allocation4], 1 }
0x30a5   :  { %12565 = vsyncpa [#allocation7], 1 }
0x30a6   :  { %12566 = vsyncpa [#allocation10], 1 }
0x30a7   :  { %12567 = vsyncpa [#allocation5], 1 }
0x30a8   :  { %12568 = vsyncpa [#allocation13], 1 }

</bundles_post_ra>
